<compile_context>
chip_gen: v6e
topology: v6e:2x2x1
jax: 0.10.0
libtpu: 0.0.40
codegen_flags: <defaults>
</compile_context>

<pallas_src>
import jax
import jax.numpy as jnp
from jax.experimental import pallas as pl
from jax.experimental.pallas import tpu as pltpu

_BN_EPS = 1e-5
_MATMUL_DTYPE = jnp.bfloat16          # MXU operand dtype (accumulation is f32)
_INTERMEDIATE_DTYPE = jnp.bfloat16    # HBM dtype of y1 / y2
_VMEM_LIMIT = 32 * 1024 * 1024        # explicit, safe on v5e/v6e/v7x
_TARGET_ROWS = 128                    # target MXU M per step (>=128 for v5e;
                                      # 256 also fine on v6e/v7x)


def _pick_th(H, W):
    """Largest divisor TH of H such that TH*W <= _TARGET_ROWS (fallback 1).
    W must be sublane-aligned (W % 8 == 0) for the single-row halo blocks,
    otherwise we fall back to per-row processing (TH == 1)."""
    if W % 8 != 0:
        return 1
    best = 1
    for th in range(1, H + 1):
        if H % th == 0 and th * W <= max(_TARGET_ROWS, W):
            best = th
    return best


# ------------------------------ kernel helpers ------------------------------

def _conv_taps_matmul(ext, w_ref, bias, THW, W, C):
    """3x3 conv of a flat halo-extended block via 9 accumulated MXU matmuls.

    ext: (THW + 2*W + 2, C) f32, row-major over (row, width):
         [zero guard | row -1 | rows 0..TH-1 | row TH | zero guard],
         out-of-image rows already zeroed by the caller.
    Tap (kh, kw) for output position p is ext[p + kh*W + kw]; width-wrapped
    positions (w-1 at w==0, w+1 at w==W-1) are masked to zero.
    w_ref: (9, C, C) bf16, tap k = kh*3 + kw, layout (k, ci, co).
    Returns (THW, C) f32: conv + bias."""
    col = jax.lax.broadcasted_iota(jnp.int32, (THW, 1), 0) % W
    keep = [
        (col != 0).astype(jnp.float32),        # kw == 0: drop wrapped w-1
        None,                                  # kw == 1: no width mask
        (col != W - 1).astype(jnp.float32),    # kw == 2: drop wrapped w+1
    ]
    acc = jnp.zeros((THW, C), jnp.float32)
    for kh in range(3):
        for kw in range(3):
            s = kh * W + kw
            tap = ext[s:s + THW, :]
            if keep[kw] is not None:
                tap = tap * keep[kw]
            acc = acc + jnp.dot(tap.astype(_MATMUL_DTYPE),
                                w_ref[kh * 3 + kw],
                                preferred_element_type=jnp.float32)
    return acc + bias                                        # (THW, C) f32


def _store_and_accumulate(y, y_ref, part_ref, hb):
    """Store the conv block (bf16) and accumulate per-channel (sum, sum_sq)
    BN partials into the VMEM-resident (1, 2, C) output block."""
    _, _, THW, C = y_ref.shape
    yq = y.astype(y_ref.dtype)
    y_ref[...] = yq.reshape(1, 1, THW, C)

    yf = yq.astype(jnp.float32)    # stats of the value the next stage will see
    s = jnp.sum(yf, axis=0, keepdims=True)                   # (1, C)
    sq = jnp.sum(yf * yf, axis=0, keepdims=True)              # (1, C)
    upd = jnp.concatenate([s, sq], axis=0).reshape(1, 2, C)

    @pl.when(hb == 0)
    def _():
        part_ref[...] = jnp.zeros_like(part_ref)

    part_ref[...] += upd


# -------------------------------- kernels -----------------------------------

def conv1_stats_kernel(top_ref, mid_ref, bot_ref, w_ref, b_ref,
                       y_ref, part_ref):
    """y1 = conv1(x) + b1 for TH rows of one image + BN1 partial stats."""
    hb = pl.program_id(1)
    HB = pl.num_programs(1)
    _, _, THW, C = mid_ref.shape
    W = top_ref.shape[2]

    top = top_ref[...].reshape(W, C) * (hb > 0).astype(jnp.float32)
    mid = mid_ref[...].reshape(THW, C)
    bot = bot_ref[...].reshape(W, C) * (hb < HB - 1).astype(jnp.float32)
    guard = jnp.zeros((1, C), jnp.float32)
    ext = jnp.concatenate([guard, top, mid, bot, guard], axis=0)

    y = _conv_taps_matmul(ext, w_ref, b_ref[...], THW, W, C)
    _store_and_accumulate(y, y_ref, part_ref, hb)


def conv2_stats_kernel(top_ref, mid_ref, bot_ref, sc_ref, sh_ref,
                       w_ref, b_ref, y_ref, part_ref):
    """Applies BN1-affine + ReLU to the conv1-output rows on the fly (the
    normalized intermediate never hits HBM), then conv2 + b2 + BN2 partials."""
    hb = pl.program_id(1)
    HB = pl.num_programs(1)
    _, _, THW, C = mid_ref.shape
    W = top_ref.shape[2]
    sc = sc_ref[...]
    sh = sh_ref[...]

    def prep(ref, n_rows, keep):
        v = ref[...].reshape(n_rows, C).astype(jnp.float32)
        v = jnp.maximum(v * sc + sh, 0.0)        # fused bn1 affine + relu
        return v * keep                          # zero out-of-image halo row

    top = prep(top_ref, W, (hb > 0).astype(jnp.float32))
    mid = prep(mid_ref, THW, 1.0)
    bot = prep(bot_ref, W, (hb < HB - 1).astype(jnp.float32))
    guard = jnp.zeros((1, C), jnp.float32)
    ext = jnp.concatenate([guard, top, mid, bot, guard], axis=0)

    y = _conv_taps_matmul(ext, w_ref, b_ref[...], THW, W, C)
    _store_and_accumulate(y, y_ref, part_ref, hb)


def bn_add_relu_kernel(y_ref, x_ref, sc_ref, sh_ref, out_ref):
    """out = relu(bn2(y2) + residual) for one whole image."""
    C = y_ref.shape[-1]
    sc = sc_ref[...].reshape(1, 1, 1, C)
    sh = sh_ref[...].reshape(1, 1, 1, C)
    y = y_ref[...].astype(jnp.float32)
    out_ref[...] = jnp.maximum(y * sc + sh + x_ref[...], 0.0)


# ------------------------------- JAX wrapper ---------------------------------

def _bn_affine(partials, count, gamma, beta):
    """(N, 2, C) partials -> per-channel BN scale/shift (tiny XLA glue)."""
    tot = jnp.sum(partials, axis=0)                          # (2, C)
    mean = tot[0:1] / count                                  # (1, C)
    # One-pass E[y^2] - mean^2 in f32; clamp guards tiny negative cancellation.
    var = jnp.maximum(tot[1:2] / count - mean * mean, 0.0)
    scale = gamma * jax.lax.rsqrt(var + _BN_EPS)             # (1, C)
    shift = beta - mean * scale                              # (1, C)
    return scale, shift


@jax.jit
def residual_block_forward(x_nchw, params):
    w1, b1, g1, bt1, w2, b2, g2, bt2 = params
    x = jnp.transpose(x_nchw, (0, 2, 3, 1)).astype(jnp.float32)   # NCHW -> NHWC
    N, H, W, C = x.shape
    TH = _pick_th(H, W)
    HB = H // TH
    THW = TH * W
    count = N * H * W

    # Free row-major regrouping: (N, H, W, C) -> (N, HB, TH*W, C).
    xb = x.reshape(N, HB, THW, C)

    w1m = w1.astype(_MATMUL_DTYPE)           # (9, C, C), tap k = kh*3 + kw
    w2m = w2.astype(_MATMUL_DTYPE)

    # Halo BlockSpecs: `mid` covers the TH rows of block hb; `top`/`bot` are
    # the single rows just above/below (clamped at the image border, zeroed
    # inside the kernel when out of image).
    top_s = pl.BlockSpec(
        (1, 1, W, C),
        lambda n, hb: (n, jnp.maximum(hb - 1, 0),
                       jnp.where(hb > 0, TH - 1, 0), 0))
    mid_s = pl.BlockSpec((1, 1, THW, C), lambda n, hb: (n, hb, 0, 0))
    bot_s = pl.BlockSpec(
        (1, 1, W, C),
        lambda n, hb: (n, jnp.minimum(hb + 1, HB - 1), 0, 0))
    y_s = pl.BlockSpec((1, 1, THW, C), lambda n, hb: (n, hb, 0, 0))
    part_s = pl.BlockSpec((1, 2, C), lambda n, hb: (n, 0, 0))   # resident over hb
    w_s = pl.BlockSpec((9, C, C), lambda n, hb: (0, 0, 0))
    v_s = pl.BlockSpec((1, C), lambda n, hb: (0, 0))

    cparams = pltpu.CompilerParams(
        dimension_semantics=("parallel", "arbitrary"),
        vmem_limit_bytes=_VMEM_LIMIT)

    conv_out_shape = [
        jax.ShapeDtypeStruct((N, HB, THW, C), _INTERMEDIATE_DTYPE),
        jax.ShapeDtypeStruct((N, 2, C), jnp.float32),
    ]

    # --- stage 1: conv1 + bias (bf16 to HBM) + BN1 partial stats ---
    y1, part1 = pl.pallas_call(
        conv1_stats_kernel,
        grid=(N, HB),
        in_specs=[top_s, mid_s, bot_s, w_s, v_s],
        out_specs=[y_s, part_s],
        out_shape=conv_out_shape,
        compiler_params=cparams,
    )(xb, xb, xb, w1m, b1)
    sc1, sh1 = _bn_affine(part1, count, g1, bt1)

    # --- stage 2: (fused bn1+relu) -> conv2 + bias + BN2 partial stats ---
    y2, part2 = pl.pallas_call(
        conv2_stats_kernel,
        grid=(N, HB),
        in_specs=[top_s, mid_s, bot_s, v_s, v_s, w_s, v_s],
        out_specs=[y_s, part_s],
        out_shape=conv_out_shape,
        compiler_params=cparams,
    )(y1, y1, y1, sc1, sh1, w2m, b2)
    sc2, sh2 = _bn_affine(part2, count, g2, bt2)

    # --- stage 3: bn2 + residual + relu (whole image per step) ---
    img_s = pl.BlockSpec((1, HB, THW, C), lambda n: (n, 0, 0, 0))
    vec_s = pl.BlockSpec((1, C), lambda n: (0, 0))
    out = pl.pallas_call(
        bn_add_relu_kernel,
        grid=(N,),
        in_specs=[img_s, img_s, vec_s, vec_s],
        out_specs=img_s,
        out_shape=jax.ShapeDtypeStruct((N, HB, THW, C), jnp.float32),
        compiler_params=pltpu.CompilerParams(
            dimension_semantics=("parallel",),
            vmem_limit_bytes=_VMEM_LIMIT),
    )(y2, xb, sc2, sh2)

    out = out.reshape(N, H, W, C)
    # TODO(synk): the NCHW<->NHWC transposes are extra HBM passes; keep the
    # activation NHWC end-to-end if the caller allows.
    # TODO(synk): for tiny channel counts (C << 128) the lane axis of the
    # conv stores is still masked; a production variant would pack W into the
    # lane axis for the store path.
    return jnp.transpose(out, (0, 3, 1, 2))                  # NHWC -> NCHW


def init_params(key, channels):
    """Deterministic synthetic parameters.
    Conv weight w[k=kh*3+kw, ci, co] == torch conv.weight[co, ci, kh, kw]."""
    ks = jax.random.split(key, 8)
    def w(k):  return 0.1 * jax.random.normal(k, (9, channels, channels), jnp.float32)
    def v(k):  return 0.1 * jax.random.normal(k, (1, channels), jnp.float32)
    w1, b1 = w(ks[0]), v(ks[1])
    g1, bt1 = 1.0 + v(ks[2]), v(ks[3])
    w2, b2 = w(ks[4]), v(ks[5])
    g2, bt2 = 1.0 + v(ks[6]), v(ks[7])
    return (w1, b1, g1, bt1, w2, b2, g2, bt2)


# ----------------------------- pure-JAX reference ----------------------------

def _reference(x_nchw, params):
    w1, b1, g1, bt1, w2, b2, g2, bt2 = params
    x = jnp.transpose(x_nchw, (0, 2, 3, 1)).astype(jnp.float32)
    C = x.shape[-1]

    def conv(inp, w9, b):
        w = w9.reshape(3, 3, C, C)  # HWIO, tap k = kh*3+kw
        y = jax.lax.conv_general_dilated(
            inp, w, (1, 1), 'SAME',
            dimension_numbers=('NHWC', 'HWIO', 'NHWC'),
            precision=jax.lax.Precision.HIGHEST)
        return y + b.reshape(1, 1, 1, C)

    def bn(y, g, bt):
        mean = jnp.mean(y, axis=(0, 1, 2), keepdims=True)
        var = jnp.mean(jnp.square(y - mean), axis=(0, 1, 2), keepdims=True)
        return ((y - mean) * jax.lax.rsqrt(var + _BN_EPS)
                * g.reshape(1, 1, 1, C) + bt.reshape(1, 1, 1, C))

    out = jax.nn.relu(bn(conv(x, w1, b1), g1, bt1))
    out = bn(conv(out, w2, b2), g2, bt2) + x
    return jnp.transpose(jax.nn.relu(out), (0, 3, 1, 2))


if __name__ == "__main__":
    key = jax.random.PRNGKey(0)
    kx, kp = jax.random.split(key)
    N, C, H, W = 2, 4, 16, 16
    x = jax.random.normal(kx, (N, C, H, W), jnp.float32)
    params = init_params(kp, C)

    out = jax.block_until_ready(residual_block_forward(x, params))
    assert out.shape == (N, C, H, W)

    # TODO(synk): BatchNorm running-statistics update (a training-time side
    # effect, not part of the returned value) is not reproduced.
    ref = _reference(x, params)
    # bf16 MXU operands + bf16 HBM intermediates vs the exact-f32 reference
    # -> relaxed tolerance (observed error ~1e-3..2e-2).
    if not bool(jnp.allclose(out, ref, atol=5e-2, rtol=5e-2)):
        raise AssertionError(
            f"mismatch vs reference, max abs err = "
            f"{float(jnp.max(jnp.abs(out - ref)))}")
    print("KERNEL_OK")
</pallas_src>

<mosaic_0001>
module attributes {stable_mosaic.version = 11 : i64} {
  func.func @conv1_stats_kernel(%arg0: i32, %arg1: i32, %arg2: memref<1x1x16x4xf32, #tpu.memory_space<vmem>>, %arg3: memref<1x1x128x4xf32, #tpu.memory_space<vmem>>, %arg4: memref<1x1x16x4xf32, #tpu.memory_space<vmem>>, %arg5: memref<9x4x4xbf16, #tpu.memory_space<vmem>>, %arg6: memref<1x4xf32, #tpu.memory_space<vmem>>, %arg7: memref<1x1x128x4xbf16, #tpu.memory_space<vmem>>, %arg8: memref<1x2x4xf32, #tpu.memory_space<vmem>>) attributes {dimension_semantics = [#tpu.dimension_semantics<parallel>, #tpu.dimension_semantics<arbitrary>], iteration_bounds = array<i64: 2, 2>, scalar_prefetch = 0 : i64, scratch_operands = 0 : i64, tpu.core_type = #tpu.core_type<tc>, window_params = [{transform_indices = @transform_0, window_bounds = array<i64: 1, 1, 16, 4>}, {transform_indices = @transform_1, window_bounds = array<i64: 1, 1, 128, 4>}, {transform_indices = @transform_2, window_bounds = array<i64: 1, 1, 16, 4>}, {pipeline_mode = #tpu.pipeline_mode<synchronous>, transform_indices = @transform_3, window_bounds = array<i64: 9, 4, 4>}, {pipeline_mode = #tpu.pipeline_mode<synchronous>, transform_indices = @transform_4, window_bounds = array<i64: 1, 4>}, {transform_indices = @transform_5, window_bounds = array<i64: 1, 1, 128, 4>}, {transform_indices = @transform_6, window_bounds = array<i64: 1, 2, 4>}]} {
    %c0 = arith.constant 0 : index
    %c0_0 = arith.constant 0 : index
    %c0_1 = arith.constant 0 : index
    %c0_2 = arith.constant 0 : index
    %0 = vector.load %arg2[%c0, %c0_0, %c0_1, %c0_2] : memref<1x1x16x4xf32, #tpu.memory_space<vmem>>, vector<1x1x16x4xf32>
    %1 = vector.shape_cast %0 : vector<1x1x16x4xf32> to vector<16x4xf32>
    %c0_i32 = arith.constant 0 : i32
    %2 = arith.cmpi sgt, %arg1, %c0_i32 : i32
    %3 = arith.extui %2 : i1 to i32
    %4 = arith.sitofp %3 : i32 to f32
    %5 = vector.broadcast %4 : f32 to vector<16x4xf32>
    %6 = arith.mulf %1, %5 : vector<16x4xf32>
    %c0_3 = arith.constant 0 : index
    %c0_4 = arith.constant 0 : index
    %c0_5 = arith.constant 0 : index
    %c0_6 = arith.constant 0 : index
    %7 = vector.load %arg3[%c0_3, %c0_4, %c0_5, %c0_6] : memref<1x1x128x4xf32, #tpu.memory_space<vmem>>, vector<1x1x128x4xf32>
    %8 = vector.shape_cast %7 : vector<1x1x128x4xf32> to vector<128x4xf32>
    %c0_7 = arith.constant 0 : index
    %c0_8 = arith.constant 0 : index
    %c0_9 = arith.constant 0 : index
    %c0_10 = arith.constant 0 : index
    %9 = vector.load %arg4[%c0_7, %c0_8, %c0_9, %c0_10] : memref<1x1x16x4xf32, #tpu.memory_space<vmem>>, vector<1x1x16x4xf32>
    %10 = vector.shape_cast %9 : vector<1x1x16x4xf32> to vector<16x4xf32>
    %c1_i32 = arith.constant 1 : i32
    %11 = arith.cmpi slt, %arg1, %c1_i32 : i32
    %12 = arith.extui %11 : i1 to i32
    %13 = arith.sitofp %12 : i32 to f32
    %14 = vector.broadcast %13 : f32 to vector<16x4xf32>
    %15 = arith.mulf %10, %14 : vector<16x4xf32>
    %cst = arith.constant 0.000000e+00 : f32
    %16 = vector.broadcast %cst : f32 to vector<1x4xf32>
    %17 = tpu.concatenate %16, %6, %8, %15, %16 in 0 : vector<1x4xf32>, vector<16x4xf32>, vector<128x4xf32>, vector<16x4xf32>, vector<1x4xf32> -> vector<162x4xf32>
    %c0_11 = arith.constant 0 : index
    %c0_12 = arith.constant 0 : index
    %18 = vector.load %arg6[%c0_11, %c0_12] : memref<1x4xf32, #tpu.memory_space<vmem>>, vector<1x4xf32>
    %19 = tpu.iota {dimensions = array<i32: 0>} : vector<128x1xi32>
    %c16_i32 = arith.constant 16 : i32
    %c0_i32_13 = arith.constant 0 : i32
    %20 = arith.cmpi eq, %c16_i32, %c0_i32_13 : i32
    %c1_i32_14 = arith.constant 1 : i32
    %21 = arith.select %20, %c1_i32_14, %c16_i32 : i32
    %22 = vector.broadcast %21 : i32 to vector<128x1xi32>
    %23 = arith.remsi %19, %22 : vector<128x1xi32>
    %c0_i32_15 = arith.constant 0 : i32
    %24 = vector.broadcast %c0_i32_15 : i32 to vector<128x1xi32>
    %25 = arith.cmpi ne, %23, %24 : vector<128x1xi32>
    %c0_i32_16 = arith.constant 0 : i32
    %26 = vector.broadcast %c0_i32_16 : i32 to vector<128x1xi32>
    %27 = arith.cmpi slt, %23, %26 : vector<128x1xi32>
    %c0_i32_17 = arith.constant 0 : i32
    %28 = arith.cmpi slt, %21, %c0_i32_17 : i32
    %29 = vector.broadcast %28 : i1 to vector<128x1xi1>
    %30 = vector.broadcast %29 : vector<128x1xi1> to vector<128x1xi1>
    %31 = arith.xori %27, %30 : vector<128x1xi1>
    %32 = arith.andi %31, %25 : vector<128x1xi1>
    %33 = vector.broadcast %21 : i32 to vector<128x1xi32>
    %34 = arith.addi %23, %33 : vector<128x1xi32>
    %35 = arith.select %32, %34, %23 : vector<128x1xi1>, vector<128x1xi32>
    %c0_i32_18 = arith.constant 0 : i32
    %36 = vector.broadcast %c0_i32_18 : i32 to vector<128x1xi32>
    %37 = arith.cmpi ne, %35, %36 : vector<128x1xi32>
    %38 = arith.extui %37 : vector<128x1xi1> to vector<128x1xi32>
    %39 = arith.sitofp %38 : vector<128x1xi32> to vector<128x1xf32>
    %c15_i32 = arith.constant 15 : i32
    %40 = vector.broadcast %c15_i32 : i32 to vector<128x1xi32>
    %41 = arith.cmpi ne, %35, %40 : vector<128x1xi32>
    %42 = arith.extui %41 : vector<128x1xi1> to vector<128x1xi32>
    %43 = arith.sitofp %42 : vector<128x1xi32> to vector<128x1xf32>
    %cst_19 = arith.constant 0.000000e+00 : f32
    %44 = vector.broadcast %cst_19 : f32 to vector<128x4xf32>
    %45 = vector.extract_strided_slice %17 {offsets = [0, 0], sizes = [128, 4], strides = [1, 1]} : vector<162x4xf32> to vector<128x4xf32>
    %46 = vector.broadcast %39 : vector<128x1xf32> to vector<128x4xf32>
    %47 = arith.mulf %45, %46 : vector<128x4xf32>
    %48 = arith.truncf %47 : vector<128x4xf32> to vector<128x4xbf16>
    %c0_20 = arith.constant 0 : index
    %c0_21 = arith.constant 0 : index
    %c0_22 = arith.constant 0 : index
    %49 = vector.load %arg5[%c0_20, %c0_21, %c0_22] : memref<9x4x4xbf16, #tpu.memory_space<vmem>>, vector<1x4x4xbf16>
    %50 = vector.shape_cast %49 : vector<1x4x4xbf16> to vector<4x4xbf16>
    %cst_23 = arith.constant dense<0.000000e+00> : vector<128x4xf32>
    %51 = tpu.matmul %48, %50, %cst_23 {dimension_numbers = #tpu.dot_dimension_numbers<[1], [0], [0], [1], [0, 0, 1, 1], [], []>} : vector<128x4xbf16>, vector<4x4xbf16>, vector<128x4xf32> -> vector<128x4xf32>
    %52 = arith.addf %44, %51 : vector<128x4xf32>
    %53 = vector.extract_strided_slice %17 {offsets = [1, 0], sizes = [128, 4], strides = [1, 1]} : vector<162x4xf32> to vector<128x4xf32>
    %54 = arith.truncf %53 : vector<128x4xf32> to vector<128x4xbf16>
    %c1 = arith.constant 1 : index
    %c0_24 = arith.constant 0 : index
    %c0_25 = arith.constant 0 : index
    %55 = vector.load %arg5[%c1, %c0_24, %c0_25] : memref<9x4x4xbf16, #tpu.memory_space<vmem>>, vector<1x4x4xbf16>
    %56 = vector.shape_cast %55 : vector<1x4x4xbf16> to vector<4x4xbf16>
    %cst_26 = arith.constant dense<0.000000e+00> : vector<128x4xf32>
    %57 = tpu.matmul %54, %56, %cst_26 {dimension_numbers = #tpu.dot_dimension_numbers<[1], [0], [0], [1], [0, 0, 1, 1], [], []>} : vector<128x4xbf16>, vector<4x4xbf16>, vector<128x4xf32> -> vector<128x4xf32>
    %58 = arith.addf %52, %57 : vector<128x4xf32>
    %59 = vector.extract_strided_slice %17 {offsets = [2, 0], sizes = [128, 4], strides = [1, 1]} : vector<162x4xf32> to vector<128x4xf32>
    %60 = vector.broadcast %43 : vector<128x1xf32> to vector<128x4xf32>
    %61 = arith.mulf %59, %60 : vector<128x4xf32>
    %62 = arith.truncf %61 : vector<128x4xf32> to vector<128x4xbf16>
    %c2 = arith.constant 2 : index
    %c0_27 = arith.constant 0 : index
    %c0_28 = arith.constant 0 : index
    %63 = vector.load %arg5[%c2, %c0_27, %c0_28] : memref<9x4x4xbf16, #tpu.memory_space<vmem>>, vector<1x4x4xbf16>
    %64 = vector.shape_cast %63 : vector<1x4x4xbf16> to vector<4x4xbf16>
    %cst_29 = arith.constant dense<0.000000e+00> : vector<128x4xf32>
    %65 = tpu.matmul %62, %64, %cst_29 {dimension_numbers = #tpu.dot_dimension_numbers<[1], [0], [0], [1], [0, 0, 1, 1], [], []>} : vector<128x4xbf16>, vector<4x4xbf16>, vector<128x4xf32> -> vector<128x4xf32>
    %66 = arith.addf %58, %65 : vector<128x4xf32>
    %67 = vector.extract_strided_slice %17 {offsets = [16, 0], sizes = [128, 4], strides = [1, 1]} : vector<162x4xf32> to vector<128x4xf32>
    %68 = vector.broadcast %39 : vector<128x1xf32> to vector<128x4xf32>
    %69 = arith.mulf %67, %68 : vector<128x4xf32>
    %70 = arith.truncf %69 : vector<128x4xf32> to vector<128x4xbf16>
    %c3 = arith.constant 3 : index
    %c0_30 = arith.constant 0 : index
    %c0_31 = arith.constant 0 : index
    %71 = vector.load %arg5[%c3, %c0_30, %c0_31] : memref<9x4x4xbf16, #tpu.memory_space<vmem>>, vector<1x4x4xbf16>
    %72 = vector.shape_cast %71 : vector<1x4x4xbf16> to vector<4x4xbf16>
    %cst_32 = arith.constant dense<0.000000e+00> : vector<128x4xf32>
    %73 = tpu.matmul %70, %72, %cst_32 {dimension_numbers = #tpu.dot_dimension_numbers<[1], [0], [0], [1], [0, 0, 1, 1], [], []>} : vector<128x4xbf16>, vector<4x4xbf16>, vector<128x4xf32> -> vector<128x4xf32>
    %74 = arith.addf %66, %73 : vector<128x4xf32>
    %75 = vector.extract_strided_slice %17 {offsets = [17, 0], sizes = [128, 4], strides = [1, 1]} : vector<162x4xf32> to vector<128x4xf32>
    %76 = arith.truncf %75 : vector<128x4xf32> to vector<128x4xbf16>
    %c4 = arith.constant 4 : index
    %c0_33 = arith.constant 0 : index
    %c0_34 = arith.constant 0 : index
    %77 = vector.load %arg5[%c4, %c0_33, %c0_34] : memref<9x4x4xbf16, #tpu.memory_space<vmem>>, vector<1x4x4xbf16>
    %78 = vector.shape_cast %77 : vector<1x4x4xbf16> to vector<4x4xbf16>
    %cst_35 = arith.constant dense<0.000000e+00> : vector<128x4xf32>
    %79 = tpu.matmul %76, %78, %cst_35 {dimension_numbers = #tpu.dot_dimension_numbers<[1], [0], [0], [1], [0, 0, 1, 1], [], []>} : vector<128x4xbf16>, vector<4x4xbf16>, vector<128x4xf32> -> vector<128x4xf32>
    %80 = arith.addf %74, %79 : vector<128x4xf32>
    %81 = vector.extract_strided_slice %17 {offsets = [18, 0], sizes = [128, 4], strides = [1, 1]} : vector<162x4xf32> to vector<128x4xf32>
    %82 = vector.broadcast %43 : vector<128x1xf32> to vector<128x4xf32>
    %83 = arith.mulf %81, %82 : vector<128x4xf32>
    %84 = arith.truncf %83 : vector<128x4xf32> to vector<128x4xbf16>
    %c5 = arith.constant 5 : index
    %c0_36 = arith.constant 0 : index
    %c0_37 = arith.constant 0 : index
    %85 = vector.load %arg5[%c5, %c0_36, %c0_37] : memref<9x4x4xbf16, #tpu.memory_space<vmem>>, vector<1x4x4xbf16>
    %86 = vector.shape_cast %85 : vector<1x4x4xbf16> to vector<4x4xbf16>
    %cst_38 = arith.constant dense<0.000000e+00> : vector<128x4xf32>
    %87 = tpu.matmul %84, %86, %cst_38 {dimension_numbers = #tpu.dot_dimension_numbers<[1], [0], [0], [1], [0, 0, 1, 1], [], []>} : vector<128x4xbf16>, vector<4x4xbf16>, vector<128x4xf32> -> vector<128x4xf32>
    %88 = arith.addf %80, %87 : vector<128x4xf32>
    %89 = vector.extract_strided_slice %17 {offsets = [32, 0], sizes = [128, 4], strides = [1, 1]} : vector<162x4xf32> to vector<128x4xf32>
    %90 = vector.broadcast %39 : vector<128x1xf32> to vector<128x4xf32>
    %91 = arith.mulf %89, %90 : vector<128x4xf32>
    %92 = arith.truncf %91 : vector<128x4xf32> to vector<128x4xbf16>
    %c6 = arith.constant 6 : index
    %c0_39 = arith.constant 0 : index
    %c0_40 = arith.constant 0 : index
    %93 = vector.load %arg5[%c6, %c0_39, %c0_40] : memref<9x4x4xbf16, #tpu.memory_space<vmem>>, vector<1x4x4xbf16>
    %94 = vector.shape_cast %93 : vector<1x4x4xbf16> to vector<4x4xbf16>
    %cst_41 = arith.constant dense<0.000000e+00> : vector<128x4xf32>
    %95 = tpu.matmul %92, %94, %cst_41 {dimension_numbers = #tpu.dot_dimension_numbers<[1], [0], [0], [1], [0, 0, 1, 1], [], []>} : vector<128x4xbf16>, vector<4x4xbf16>, vector<128x4xf32> -> vector<128x4xf32>
    %96 = arith.addf %88, %95 : vector<128x4xf32>
    %97 = vector.extract_strided_slice %17 {offsets = [33, 0], sizes = [128, 4], strides = [1, 1]} : vector<162x4xf32> to vector<128x4xf32>
    %98 = arith.truncf %97 : vector<128x4xf32> to vector<128x4xbf16>
    %c7 = arith.constant 7 : index
    %c0_42 = arith.constant 0 : index
    %c0_43 = arith.constant 0 : index
    %99 = vector.load %arg5[%c7, %c0_42, %c0_43] : memref<9x4x4xbf16, #tpu.memory_space<vmem>>, vector<1x4x4xbf16>
    %100 = vector.shape_cast %99 : vector<1x4x4xbf16> to vector<4x4xbf16>
    %cst_44 = arith.constant dense<0.000000e+00> : vector<128x4xf32>
    %101 = tpu.matmul %98, %100, %cst_44 {dimension_numbers = #tpu.dot_dimension_numbers<[1], [0], [0], [1], [0, 0, 1, 1], [], []>} : vector<128x4xbf16>, vector<4x4xbf16>, vector<128x4xf32> -> vector<128x4xf32>
    %102 = arith.addf %96, %101 : vector<128x4xf32>
    %103 = vector.extract_strided_slice %17 {offsets = [34, 0], sizes = [128, 4], strides = [1, 1]} : vector<162x4xf32> to vector<128x4xf32>
    %104 = vector.broadcast %43 : vector<128x1xf32> to vector<128x4xf32>
    %105 = arith.mulf %103, %104 : vector<128x4xf32>
    %106 = arith.truncf %105 : vector<128x4xf32> to vector<128x4xbf16>
    %c8 = arith.constant 8 : index
    %c0_45 = arith.constant 0 : index
    %c0_46 = arith.constant 0 : index
    %107 = vector.load %arg5[%c8, %c0_45, %c0_46] : memref<9x4x4xbf16, #tpu.memory_space<vmem>>, vector<1x4x4xbf16>
    %108 = vector.shape_cast %107 : vector<1x4x4xbf16> to vector<4x4xbf16>
    %cst_47 = arith.constant dense<0.000000e+00> : vector<128x4xf32>
    %109 = tpu.matmul %106, %108, %cst_47 {dimension_numbers = #tpu.dot_dimension_numbers<[1], [0], [0], [1], [0, 0, 1, 1], [], []>} : vector<128x4xbf16>, vector<4x4xbf16>, vector<128x4xf32> -> vector<128x4xf32>
    %110 = arith.addf %102, %109 : vector<128x4xf32>
    %111 = vector.broadcast %18 : vector<1x4xf32> to vector<128x4xf32>
    %112 = arith.addf %110, %111 : vector<128x4xf32>
    %113 = arith.truncf %112 : vector<128x4xf32> to vector<128x4xbf16>
    %114 = vector.shape_cast %113 : vector<128x4xbf16> to vector<1x1x128x4xbf16>
    %c0_48 = arith.constant 0 : index
    %c0_49 = arith.constant 0 : index
    %c0_50 = arith.constant 0 : index
    %c0_51 = arith.constant 0 : index
    %115 = vector.load %arg7[%c0_48, %c0_49, %c0_50, %c0_51] : memref<1x1x128x4xbf16, #tpu.memory_space<vmem>>, vector<1x1x128x4xbf16>
    tpu.vector_store %arg7[%c0_48, %c0_49, %c0_50, %c0_51], %114 {strides = array<i32>} : memref<1x1x128x4xbf16, #tpu.memory_space<vmem>>, vector<1x1x128x4xbf16>,
    %116 = arith.extf %113 : vector<128x4xbf16> to vector<128x4xf32>
    %cst_52 = arith.constant dense<0.000000e+00> : vector<4xf32>
    %117 = vector.multi_reduction <add>, %116, %cst_52 [0] : vector<128x4xf32> to vector<4xf32>
    %118 = vector.shape_cast %117 : vector<4xf32> to vector<1x4xf32>
    %119 = arith.mulf %116, %116 : vector<128x4xf32>
    %cst_53 = arith.constant dense<0.000000e+00> : vector<4xf32>
    %120 = vector.multi_reduction <add>, %119, %cst_53 [0] : vector<128x4xf32> to vector<4xf32>
    %121 = vector.shape_cast %120 : vector<4xf32> to vector<1x4xf32>
    %122 = tpu.concatenate %118, %121 in 0 : vector<1x4xf32>, vector<1x4xf32> -> vector<2x4xf32>
    %123 = vector.shape_cast %122 : vector<2x4xf32> to vector<1x2x4xf32>
    %c0_i32_54 = arith.constant 0 : i32
    %124 = arith.cmpi eq, %arg1, %c0_i32_54 : i32
    %125 = arith.extui %124 : i1 to i32
    %c0_i32_55 = arith.constant 0 : i32
    %126 = arith.cmpi ne, %125, %c0_i32_55 : i32
    scf.if %126 {
      %cst_62 = arith.constant 0.000000e+00 : f32
      %130 = vector.broadcast %cst_62 : f32 to vector<1x2x4xf32>
      %c0_63 = arith.constant 0 : index
      %c0_64 = arith.constant 0 : index
      %c0_65 = arith.constant 0 : index
      %131 = vector.load %arg8[%c0_63, %c0_64, %c0_65] : memref<1x2x4xf32, #tpu.memory_space<vmem>>, vector<1x2x4xf32>
      tpu.vector_store %arg8[%c0_63, %c0_64, %c0_65], %130 {strides = array<i32>} : memref<1x2x4xf32, #tpu.memory_space<vmem>>, vector<1x2x4xf32>,
    } else {
    }
    %c0_56 = arith.constant 0 : index
    %c0_57 = arith.constant 0 : index
    %c0_58 = arith.constant 0 : index
    %127 = vector.load %arg8[%c0_56, %c0_57, %c0_58] : memref<1x2x4xf32, #tpu.memory_space<vmem>>, vector<1x2x4xf32>
    %128 = arith.addf %127, %123 : vector<1x2x4xf32>
    %c0_59 = arith.constant 0 : index
    %c0_60 = arith.constant 0 : index
    %c0_61 = arith.constant 0 : index
    %129 = vector.load %arg8[%c0_59, %c0_60, %c0_61] : memref<1x2x4xf32, #tpu.memory_space<vmem>>, vector<1x2x4xf32>
    tpu.vector_store %arg8[%c0_59, %c0_60, %c0_61], %128 {strides = array<i32>} : memref<1x2x4xf32, #tpu.memory_space<vmem>>, vector<1x2x4xf32>,
    return
  }
  func.func @transform_0(%arg0: i32, %arg1: i32) -> (i32, i32, i32, i32) {
    %c1_i32 = arith.constant 1 : i32
    %0 = arith.subi %arg1, %c1_i32 : i32
    %c0_i32 = arith.constant 0 : i32
    %1 = arith.maxsi %0, %c0_i32 : i32
    %c0_i32_0 = arith.constant 0 : i32
    %2 = arith.cmpi sgt, %arg1, %c0_i32_0 : i32
    %c7_i32 = arith.constant 7 : i32
    %c0_i32_1 = arith.constant 0 : i32
    %3 = arith.select %2, %c7_i32, %c0_i32_1 : i32
    %c0_i32_2 = arith.constant 0 : i32
    %c0_i32_3 = arith.constant 0 : i32
    return %arg0, %1, %3, %c0_i32_2 : i32, i32, i32, i32
  }
  func.func @transform_1(%arg0: i32, %arg1: i32) -> (i32, i32, i32, i32) {
    %c0_i32 = arith.constant 0 : i32
    %c0_i32_0 = arith.constant 0 : i32
    %c0_i32_1 = arith.constant 0 : i32
    return %arg0, %arg1, %c0_i32, %c0_i32_0 : i32, i32, i32, i32
  }
  func.func @transform_2(%arg0: i32, %arg1: i32) -> (i32, i32, i32, i32) {
    %c1_i32 = arith.constant 1 : i32
    %0 = arith.addi %arg1, %c1_i32 : i32
    %c1_i32_0 = arith.constant 1 : i32
    %1 = arith.minsi %0, %c1_i32_0 : i32
    %c0_i32 = arith.constant 0 : i32
    %c0_i32_1 = arith.constant 0 : i32
    %c0_i32_2 = arith.constant 0 : i32
    return %arg0, %1, %c0_i32, %c0_i32_1 : i32, i32, i32, i32
  }
  func.func @transform_3(%arg0: i32, %arg1: i32) -> (i32, i32, i32) {
    %c0_i32 = arith.constant 0 : i32
    %c0_i32_0 = arith.constant 0 : i32
    %c0_i32_1 = arith.constant 0 : i32
    %c0_i32_2 = arith.constant 0 : i32
    return %c0_i32, %c0_i32_0, %c0_i32_1 : i32, i32, i32
  }
  func.func @transform_4(%arg0: i32, %arg1: i32) -> (i32, i32) {
    %c0_i32 = arith.constant 0 : i32
    %c0_i32_0 = arith.constant 0 : i32
    %c0_i32_1 = arith.constant 0 : i32
    return %c0_i32, %c0_i32_0 : i32, i32
  }
  func.func @transform_5(%arg0: i32, %arg1: i32) -> (i32, i32, i32, i32) {
    %c0_i32 = arith.constant 0 : i32
    %c0_i32_0 = arith.constant 0 : i32
    %c0_i32_1 = arith.constant 0 : i32
    return %arg0, %arg1, %c0_i32, %c0_i32_0 : i32, i32, i32, i32
  }
  func.func @transform_6(%arg0: i32, %arg1: i32) -> (i32, i32, i32) {
    %c0_i32 = arith.constant 0 : i32
    %c0_i32_0 = arith.constant 0 : i32
    %c0_i32_1 = arith.constant 0 : i32
    return %arg0, %c0_i32, %c0_i32_0 : i32, i32, i32
  }
}

module attributes {stable_mosaic.version = 11 : i64} {
  func.func @bn_add_relu_kernel(%arg0: i32, %arg1: memref<1x2x128x4xbf16, #tpu.memory_space<vmem>>, %arg2: memref<1x2x128x4xf32, #tpu.memory_space<vmem>>, %arg3: memref<1x4xf32, #tpu.memory_space<vmem>>, %arg4: memref<1x4xf32, #tpu.memory_space<vmem>>, %arg5: memref<1x2x128x4xf32, #tpu.memory_space<vmem>>) attributes {dimension_semantics = [#tpu.dimension_semantics<parallel>], iteration_bounds = array<i64: 2>, scalar_prefetch = 0 : i64, scratch_operands = 0 : i64, tpu.core_type = #tpu.core_type<tc>, window_params = [{transform_indices = @transform_0, window_bounds = array<i64: 1, 2, 128, 4>}, {transform_indices = @transform_1, window_bounds = array<i64: 1, 2, 128, 4>}, {pipeline_mode = #tpu.pipeline_mode<synchronous>, transform_indices = @transform_2, window_bounds = array<i64: 1, 4>}, {pipeline_mode = #tpu.pipeline_mode<synchronous>, transform_indices = @transform_3, window_bounds = array<i64: 1, 4>}, {transform_indices = @transform_4, window_bounds = array<i64: 1, 2, 128, 4>}]} {
    %c0 = arith.constant 0 : index
    %c0_0 = arith.constant 0 : index
    %0 = vector.load %arg3[%c0, %c0_0] : memref<1x4xf32, #tpu.memory_space<vmem>>, vector<1x4xf32>
    %1 = vector.shape_cast %0 : vector<1x4xf32> to vector<1x1x1x4xf32>
    %c0_1 = arith.constant 0 : index
    %c0_2 = arith.constant 0 : index
    %2 = vector.load %arg4[%c0_1, %c0_2] : memref<1x4xf32, #tpu.memory_space<vmem>>, vector<1x4xf32>
    %3 = vector.shape_cast %2 : vector<1x4xf32> to vector<1x1x1x4xf32>
    %c0_3 = arith.constant 0 : index
    %c0_4 = arith.constant 0 : index
    %c0_5 = arith.constant 0 : index
    %c0_6 = arith.constant 0 : index
    %4 = vector.load %arg1[%c0_3, %c0_4, %c0_5, %c0_6] : memref<1x2x128x4xbf16, #tpu.memory_space<vmem>>, vector<1x2x128x4xbf16>
    %5 = arith.extf %4 : vector<1x2x128x4xbf16> to vector<1x2x128x4xf32>
    %6 = vector.broadcast %1 : vector<1x1x1x4xf32> to vector<1x2x128x4xf32>
    %7 = arith.mulf %5, %6 : vector<1x2x128x4xf32>
    %8 = vector.broadcast %3 : vector<1x1x1x4xf32> to vector<1x2x128x4xf32>
    %9 = arith.addf %7, %8 : vector<1x2x128x4xf32>
    %c0_7 = arith.constant 0 : index
    %c0_8 = arith.constant 0 : index
    %c0_9 = arith.constant 0 : index
    %c0_10 = arith.constant 0 : index
    %10 = vector.load %arg2[%c0_7, %c0_8, %c0_9, %c0_10] : memref<1x2x128x4xf32, #tpu.memory_space<vmem>>, vector<1x2x128x4xf32>
    %11 = arith.addf %9, %10 : vector<1x2x128x4xf32>
    %cst = arith.constant 0.000000e+00 : f32
    %12 = vector.broadcast %cst : f32 to vector<1x2x128x4xf32>
    %13 = arith.maximumf %11, %12 : vector<1x2x128x4xf32>
    %c0_11 = arith.constant 0 : index
    %c0_12 = arith.constant 0 : index
    %c0_13 = arith.constant 0 : index
    %c0_14 = arith.constant 0 : index
    %14 = vector.load %arg5[%c0_11, %c0_12, %c0_13, %c0_14] : memref<1x2x128x4xf32, #tpu.memory_space<vmem>>, vector<1x2x128x4xf32>
    tpu.vector_store %arg5[%c0_11, %c0_12, %c0_13, %c0_14], %13 {strides = array<i32>} : memref<1x2x128x4xf32, #tpu.memory_space<vmem>>, vector<1x2x128x4xf32>,
    return
  }
  func.func @transform_0(%arg0: i32) -> (i32, i32, i32, i32) {
    %c0_i32 = arith.constant 0 : i32
    %c0_i32_0 = arith.constant 0 : i32
    %c0_i32_1 = arith.constant 0 : i32
    %c0_i32_2 = arith.constant 0 : i32
    return %arg0, %c0_i32, %c0_i32_0, %c0_i32_1 : i32, i32, i32, i32
  }
  func.func @transform_1(%arg0: i32) -> (i32, i32, i32, i32) {
    %c0_i32 = arith.constant 0 : i32
    %c0_i32_0 = arith.constant 0 : i32
    %c0_i32_1 = arith.constant 0 : i32
    %c0_i32_2 = arith.constant 0 : i32
    return %arg0, %c0_i32, %c0_i32_0, %c0_i32_1 : i32, i32, i32, i32
  }
  func.func @transform_2(%arg0: i32) -> (i32, i32) {
    %c0_i32 = arith.constant 0 : i32
    %c0_i32_0 = arith.constant 0 : i32
    %c0_i32_1 = arith.constant 0 : i32
    return %c0_i32, %c0_i32_0 : i32, i32
  }
  func.func @transform_3(%arg0: i32) -> (i32, i32) {
    %c0_i32 = arith.constant 0 : i32
    %c0_i32_0 = arith.constant 0 : i32
    %c0_i32_1 = arith.constant 0 : i32
    return %c0_i32, %c0_i32_0 : i32, i32
  }
  func.func @transform_4(%arg0: i32) -> (i32, i32, i32, i32) {
    %c0_i32 = arith.constant 0 : i32
    %c0_i32_0 = arith.constant 0 : i32
    %c0_i32_1 = arith.constant 0 : i32
    %c0_i32_2 = arith.constant 0 : i32
    return %arg0, %c0_i32, %c0_i32_0, %c0_i32_1 : i32, i32, i32, i32
  }
}

module attributes {stable_mosaic.version = 11 : i64} {
  func.func @conv2_stats_kernel(%arg0: i32, %arg1: i32, %arg2: memref<1x1x16x4xbf16, #tpu.memory_space<vmem>>, %arg3: memref<1x1x128x4xbf16, #tpu.memory_space<vmem>>, %arg4: memref<1x1x16x4xbf16, #tpu.memory_space<vmem>>, %arg5: memref<1x4xf32, #tpu.memory_space<vmem>>, %arg6: memref<1x4xf32, #tpu.memory_space<vmem>>, %arg7: memref<9x4x4xbf16, #tpu.memory_space<vmem>>, %arg8: memref<1x4xf32, #tpu.memory_space<vmem>>, %arg9: memref<1x1x128x4xbf16, #tpu.memory_space<vmem>>, %arg10: memref<1x2x4xf32, #tpu.memory_space<vmem>>) attributes {dimension_semantics = [#tpu.dimension_semantics<parallel>, #tpu.dimension_semantics<arbitrary>], iteration_bounds = array<i64: 2, 2>, scalar_prefetch = 0 : i64, scratch_operands = 0 : i64, tpu.core_type = #tpu.core_type<tc>, window_params = [{transform_indices = @transform_0, window_bounds = array<i64: 1, 1, 16, 4>}, {transform_indices = @transform_1, window_bounds = array<i64: 1, 1, 128, 4>}, {transform_indices = @transform_2, window_bounds = array<i64: 1, 1, 16, 4>}, {pipeline_mode = #tpu.pipeline_mode<synchronous>, transform_indices = @transform_3, window_bounds = array<i64: 1, 4>}, {pipeline_mode = #tpu.pipeline_mode<synchronous>, transform_indices = @transform_4, window_bounds = array<i64: 1, 4>}, {pipeline_mode = #tpu.pipeline_mode<synchronous>, transform_indices = @transform_5, window_bounds = array<i64: 9, 4, 4>}, {pipeline_mode = #tpu.pipeline_mode<synchronous>, transform_indices = @transform_6, window_bounds = array<i64: 1, 4>}, {transform_indices = @transform_7, window_bounds = array<i64: 1, 1, 128, 4>}, {transform_indices = @transform_8, window_bounds = array<i64: 1, 2, 4>}]} {
    %c0 = arith.constant 0 : index
    %c0_0 = arith.constant 0 : index
    %0 = vector.load %arg5[%c0, %c0_0] : memref<1x4xf32, #tpu.memory_space<vmem>>, vector<1x4xf32>
    %c0_1 = arith.constant 0 : index
    %c0_2 = arith.constant 0 : index
    %1 = vector.load %arg6[%c0_1, %c0_2] : memref<1x4xf32, #tpu.memory_space<vmem>>, vector<1x4xf32>
    %c0_i32 = arith.constant 0 : i32
    %2 = arith.cmpi sgt, %arg1, %c0_i32 : i32
    %3 = arith.extui %2 : i1 to i32
    %4 = arith.sitofp %3 : i32 to f32
    %c0_3 = arith.constant 0 : index
    %c0_4 = arith.constant 0 : index
    %c0_5 = arith.constant 0 : index
    %c0_6 = arith.constant 0 : index
    %5 = vector.load %arg2[%c0_3, %c0_4, %c0_5, %c0_6] : memref<1x1x16x4xbf16, #tpu.memory_space<vmem>>, vector<1x1x16x4xbf16>
    %6 = vector.shape_cast %5 : vector<1x1x16x4xbf16> to vector<16x4xbf16>
    %7 = arith.extf %6 : vector<16x4xbf16> to vector<16x4xf32>
    %8 = vector.broadcast %0 : vector<1x4xf32> to vector<16x4xf32>
    %9 = arith.mulf %7, %8 : vector<16x4xf32>
    %10 = vector.broadcast %1 : vector<1x4xf32> to vector<16x4xf32>
    %11 = arith.addf %9, %10 : vector<16x4xf32>
    %cst = arith.constant 0.000000e+00 : f32
    %12 = vector.broadcast %cst : f32 to vector<16x4xf32>
    %13 = arith.maximumf %11, %12 : vector<16x4xf32>
    %14 = vector.broadcast %4 : f32 to vector<16x4xf32>
    %15 = arith.mulf %13, %14 : vector<16x4xf32>
    %c0_7 = arith.constant 0 : index
    %c0_8 = arith.constant 0 : index
    %c0_9 = arith.constant 0 : index
    %c0_10 = arith.constant 0 : index
    %16 = vector.load %arg3[%c0_7, %c0_8, %c0_9, %c0_10] : memref<1x1x128x4xbf16, #tpu.memory_space<vmem>>, vector<1x1x128x4xbf16>
    %17 = vector.shape_cast %16 : vector<1x1x128x4xbf16> to vector<128x4xbf16>
    %18 = arith.extf %17 : vector<128x4xbf16> to vector<128x4xf32>
    %19 = vector.broadcast %0 : vector<1x4xf32> to vector<128x4xf32>
    %20 = arith.mulf %18, %19 : vector<128x4xf32>
    %21 = vector.broadcast %1 : vector<1x4xf32> to vector<128x4xf32>
    %22 = arith.addf %20, %21 : vector<128x4xf32>
    %cst_11 = arith.constant 0.000000e+00 : f32
    %23 = vector.broadcast %cst_11 : f32 to vector<128x4xf32>
    %24 = arith.maximumf %22, %23 : vector<128x4xf32>
    %cst_12 = arith.constant 1.000000e+00 : f32
    %25 = vector.broadcast %cst_12 : f32 to vector<128x4xf32>
    %26 = arith.mulf %24, %25 : vector<128x4xf32>
    %c1_i32 = arith.constant 1 : i32
    %27 = arith.cmpi slt, %arg1, %c1_i32 : i32
    %28 = arith.extui %27 : i1 to i32
    %29 = arith.sitofp %28 : i32 to f32
    %c0_13 = arith.constant 0 : index
    %c0_14 = arith.constant 0 : index
    %c0_15 = arith.constant 0 : index
    %c0_16 = arith.constant 0 : index
    %30 = vector.load %arg4[%c0_13, %c0_14, %c0_15, %c0_16] : memref<1x1x16x4xbf16, #tpu.memory_space<vmem>>, vector<1x1x16x4xbf16>
    %31 = vector.shape_cast %30 : vector<1x1x16x4xbf16> to vector<16x4xbf16>
    %32 = arith.extf %31 : vector<16x4xbf16> to vector<16x4xf32>
    %33 = vector.broadcast %0 : vector<1x4xf32> to vector<16x4xf32>
    %34 = arith.mulf %32, %33 : vector<16x4xf32>
    %35 = vector.broadcast %1 : vector<1x4xf32> to vector<16x4xf32>
    %36 = arith.addf %34, %35 : vector<16x4xf32>
    %cst_17 = arith.constant 0.000000e+00 : f32
    %37 = vector.broadcast %cst_17 : f32 to vector<16x4xf32>
    %38 = arith.maximumf %36, %37 : vector<16x4xf32>
    %39 = vector.broadcast %29 : f32 to vector<16x4xf32>
    %40 = arith.mulf %38, %39 : vector<16x4xf32>
    %cst_18 = arith.constant 0.000000e+00 : f32
    %41 = vector.broadcast %cst_18 : f32 to vector<1x4xf32>
    %42 = tpu.concatenate %41, %15, %26, %40, %41 in 0 : vector<1x4xf32>, vector<16x4xf32>, vector<128x4xf32>, vector<16x4xf32>, vector<1x4xf32> -> vector<162x4xf32>
    %c0_19 = arith.constant 0 : index
    %c0_20 = arith.constant 0 : index
    %43 = vector.load %arg8[%c0_19, %c0_20] : memref<1x4xf32, #tpu.memory_space<vmem>>, vector<1x4xf32>
    %44 = tpu.iota {dimensions = array<i32: 0>} : vector<128x1xi32>
    %c16_i32 = arith.constant 16 : i32
    %c0_i32_21 = arith.constant 0 : i32
    %45 = arith.cmpi eq, %c16_i32, %c0_i32_21 : i32
    %c1_i32_22 = arith.constant 1 : i32
    %46 = arith.select %45, %c1_i32_22, %c16_i32 : i32
    %47 = vector.broadcast %46 : i32 to vector<128x1xi32>
    %48 = arith.remsi %44, %47 : vector<128x1xi32>
    %c0_i32_23 = arith.constant 0 : i32
    %49 = vector.broadcast %c0_i32_23 : i32 to vector<128x1xi32>
    %50 = arith.cmpi ne, %48, %49 : vector<128x1xi32>
    %c0_i32_24 = arith.constant 0 : i32
    %51 = vector.broadcast %c0_i32_24 : i32 to vector<128x1xi32>
    %52 = arith.cmpi slt, %48, %51 : vector<128x1xi32>
    %c0_i32_25 = arith.constant 0 : i32
    %53 = arith.cmpi slt, %46, %c0_i32_25 : i32
    %54 = vector.broadcast %53 : i1 to vector<128x1xi1>
    %55 = vector.broadcast %54 : vector<128x1xi1> to vector<128x1xi1>
    %56 = arith.xori %52, %55 : vector<128x1xi1>
    %57 = arith.andi %56, %50 : vector<128x1xi1>
    %58 = vector.broadcast %46 : i32 to vector<128x1xi32>
    %59 = arith.addi %48, %58 : vector<128x1xi32>
    %60 = arith.select %57, %59, %48 : vector<128x1xi1>, vector<128x1xi32>
    %c0_i32_26 = arith.constant 0 : i32
    %61 = vector.broadcast %c0_i32_26 : i32 to vector<128x1xi32>
    %62 = arith.cmpi ne, %60, %61 : vector<128x1xi32>
    %63 = arith.extui %62 : vector<128x1xi1> to vector<128x1xi32>
    %64 = arith.sitofp %63 : vector<128x1xi32> to vector<128x1xf32>
    %c15_i32 = arith.constant 15 : i32
    %65 = vector.broadcast %c15_i32 : i32 to vector<128x1xi32>
    %66 = arith.cmpi ne, %60, %65 : vector<128x1xi32>
    %67 = arith.extui %66 : vector<128x1xi1> to vector<128x1xi32>
    %68 = arith.sitofp %67 : vector<128x1xi32> to vector<128x1xf32>
    %cst_27 = arith.constant 0.000000e+00 : f32
    %69 = vector.broadcast %cst_27 : f32 to vector<128x4xf32>
    %70 = vector.extract_strided_slice %42 {offsets = [0, 0], sizes = [128, 4], strides = [1, 1]} : vector<162x4xf32> to vector<128x4xf32>
    %71 = vector.broadcast %64 : vector<128x1xf32> to vector<128x4xf32>
    %72 = arith.mulf %70, %71 : vector<128x4xf32>
    %73 = arith.truncf %72 : vector<128x4xf32> to vector<128x4xbf16>
    %c0_28 = arith.constant 0 : index
    %c0_29 = arith.constant 0 : index
    %c0_30 = arith.constant 0 : index
    %74 = vector.load %arg7[%c0_28, %c0_29, %c0_30] : memref<9x4x4xbf16, #tpu.memory_space<vmem>>, vector<1x4x4xbf16>
    %75 = vector.shape_cast %74 : vector<1x4x4xbf16> to vector<4x4xbf16>
    %cst_31 = arith.constant dense<0.000000e+00> : vector<128x4xf32>
    %76 = tpu.matmul %73, %75, %cst_31 {dimension_numbers = #tpu.dot_dimension_numbers<[1], [0], [0], [1], [0, 0, 1, 1], [], []>} : vector<128x4xbf16>, vector<4x4xbf16>, vector<128x4xf32> -> vector<128x4xf32>
    %77 = arith.addf %69, %76 : vector<128x4xf32>
    %78 = vector.extract_strided_slice %42 {offsets = [1, 0], sizes = [128, 4], strides = [1, 1]} : vector<162x4xf32> to vector<128x4xf32>
    %79 = arith.truncf %78 : vector<128x4xf32> to vector<128x4xbf16>
    %c1 = arith.constant 1 : index
    %c0_32 = arith.constant 0 : index
    %c0_33 = arith.constant 0 : index
    %80 = vector.load %arg7[%c1, %c0_32, %c0_33] : memref<9x4x4xbf16, #tpu.memory_space<vmem>>, vector<1x4x4xbf16>
    %81 = vector.shape_cast %80 : vector<1x4x4xbf16> to vector<4x4xbf16>
    %cst_34 = arith.constant dense<0.000000e+00> : vector<128x4xf32>
    %82 = tpu.matmul %79, %81, %cst_34 {dimension_numbers = #tpu.dot_dimension_numbers<[1], [0], [0], [1], [0, 0, 1, 1], [], []>} : vector<128x4xbf16>, vector<4x4xbf16>, vector<128x4xf32> -> vector<128x4xf32>
    %83 = arith.addf %77, %82 : vector<128x4xf32>
    %84 = vector.extract_strided_slice %42 {offsets = [2, 0], sizes = [128, 4], strides = [1, 1]} : vector<162x4xf32> to vector<128x4xf32>
    %85 = vector.broadcast %68 : vector<128x1xf32> to vector<128x4xf32>
    %86 = arith.mulf %84, %85 : vector<128x4xf32>
    %87 = arith.truncf %86 : vector<128x4xf32> to vector<128x4xbf16>
    %c2 = arith.constant 2 : index
    %c0_35 = arith.constant 0 : index
    %c0_36 = arith.constant 0 : index
    %88 = vector.load %arg7[%c2, %c0_35, %c0_36] : memref<9x4x4xbf16, #tpu.memory_space<vmem>>, vector<1x4x4xbf16>
    %89 = vector.shape_cast %88 : vector<1x4x4xbf16> to vector<4x4xbf16>
    %cst_37 = arith.constant dense<0.000000e+00> : vector<128x4xf32>
    %90 = tpu.matmul %87, %89, %cst_37 {dimension_numbers = #tpu.dot_dimension_numbers<[1], [0], [0], [1], [0, 0, 1, 1], [], []>} : vector<128x4xbf16>, vector<4x4xbf16>, vector<128x4xf32> -> vector<128x4xf32>
    %91 = arith.addf %83, %90 : vector<128x4xf32>
    %92 = vector.extract_strided_slice %42 {offsets = [16, 0], sizes = [128, 4], strides = [1, 1]} : vector<162x4xf32> to vector<128x4xf32>
    %93 = vector.broadcast %64 : vector<128x1xf32> to vector<128x4xf32>
    %94 = arith.mulf %92, %93 : vector<128x4xf32>
    %95 = arith.truncf %94 : vector<128x4xf32> to vector<128x4xbf16>
    %c3 = arith.constant 3 : index
    %c0_38 = arith.constant 0 : index
    %c0_39 = arith.constant 0 : index
    %96 = vector.load %arg7[%c3, %c0_38, %c0_39] : memref<9x4x4xbf16, #tpu.memory_space<vmem>>, vector<1x4x4xbf16>
    %97 = vector.shape_cast %96 : vector<1x4x4xbf16> to vector<4x4xbf16>
    %cst_40 = arith.constant dense<0.000000e+00> : vector<128x4xf32>
    %98 = tpu.matmul %95, %97, %cst_40 {dimension_numbers = #tpu.dot_dimension_numbers<[1], [0], [0], [1], [0, 0, 1, 1], [], []>} : vector<128x4xbf16>, vector<4x4xbf16>, vector<128x4xf32> -> vector<128x4xf32>
    %99 = arith.addf %91, %98 : vector<128x4xf32>
    %100 = vector.extract_strided_slice %42 {offsets = [17, 0], sizes = [128, 4], strides = [1, 1]} : vector<162x4xf32> to vector<128x4xf32>
    %101 = arith.truncf %100 : vector<128x4xf32> to vector<128x4xbf16>
    %c4 = arith.constant 4 : index
    %c0_41 = arith.constant 0 : index
    %c0_42 = arith.constant 0 : index
    %102 = vector.load %arg7[%c4, %c0_41, %c0_42] : memref<9x4x4xbf16, #tpu.memory_space<vmem>>, vector<1x4x4xbf16>
    %103 = vector.shape_cast %102 : vector<1x4x4xbf16> to vector<4x4xbf16>
    %cst_43 = arith.constant dense<0.000000e+00> : vector<128x4xf32>
    %104 = tpu.matmul %101, %103, %cst_43 {dimension_numbers = #tpu.dot_dimension_numbers<[1], [0], [0], [1], [0, 0, 1, 1], [], []>} : vector<128x4xbf16>, vector<4x4xbf16>, vector<128x4xf32> -> vector<128x4xf32>
    %105 = arith.addf %99, %104 : vector<128x4xf32>
    %106 = vector.extract_strided_slice %42 {offsets = [18, 0], sizes = [128, 4], strides = [1, 1]} : vector<162x4xf32> to vector<128x4xf32>
    %107 = vector.broadcast %68 : vector<128x1xf32> to vector<128x4xf32>
    %108 = arith.mulf %106, %107 : vector<128x4xf32>
    %109 = arith.truncf %108 : vector<128x4xf32> to vector<128x4xbf16>
    %c5 = arith.constant 5 : index
    %c0_44 = arith.constant 0 : index
    %c0_45 = arith.constant 0 : index
    %110 = vector.load %arg7[%c5, %c0_44, %c0_45] : memref<9x4x4xbf16, #tpu.memory_space<vmem>>, vector<1x4x4xbf16>
    %111 = vector.shape_cast %110 : vector<1x4x4xbf16> to vector<4x4xbf16>
    %cst_46 = arith.constant dense<0.000000e+00> : vector<128x4xf32>
    %112 = tpu.matmul %109, %111, %cst_46 {dimension_numbers = #tpu.dot_dimension_numbers<[1], [0], [0], [1], [0, 0, 1, 1], [], []>} : vector<128x4xbf16>, vector<4x4xbf16>, vector<128x4xf32> -> vector<128x4xf32>
    %113 = arith.addf %105, %112 : vector<128x4xf32>
    %114 = vector.extract_strided_slice %42 {offsets = [32, 0], sizes = [128, 4], strides = [1, 1]} : vector<162x4xf32> to vector<128x4xf32>
    %115 = vector.broadcast %64 : vector<128x1xf32> to vector<128x4xf32>
    %116 = arith.mulf %114, %115 : vector<128x4xf32>
    %117 = arith.truncf %116 : vector<128x4xf32> to vector<128x4xbf16>
    %c6 = arith.constant 6 : index
    %c0_47 = arith.constant 0 : index
    %c0_48 = arith.constant 0 : index
    %118 = vector.load %arg7[%c6, %c0_47, %c0_48] : memref<9x4x4xbf16, #tpu.memory_space<vmem>>, vector<1x4x4xbf16>
    %119 = vector.shape_cast %118 : vector<1x4x4xbf16> to vector<4x4xbf16>
    %cst_49 = arith.constant dense<0.000000e+00> : vector<128x4xf32>
    %120 = tpu.matmul %117, %119, %cst_49 {dimension_numbers = #tpu.dot_dimension_numbers<[1], [0], [0], [1], [0, 0, 1, 1], [], []>} : vector<128x4xbf16>, vector<4x4xbf16>, vector<128x4xf32> -> vector<128x4xf32>
    %121 = arith.addf %113, %120 : vector<128x4xf32>
    %122 = vector.extract_strided_slice %42 {offsets = [33, 0], sizes = [128, 4], strides = [1, 1]} : vector<162x4xf32> to vector<128x4xf32>
    %123 = arith.truncf %122 : vector<128x4xf32> to vector<128x4xbf16>
    %c7 = arith.constant 7 : index
    %c0_50 = arith.constant 0 : index
    %c0_51 = arith.constant 0 : index
    %124 = vector.load %arg7[%c7, %c0_50, %c0_51] : memref<9x4x4xbf16, #tpu.memory_space<vmem>>, vector<1x4x4xbf16>
    %125 = vector.shape_cast %124 : vector<1x4x4xbf16> to vector<4x4xbf16>
    %cst_52 = arith.constant dense<0.000000e+00> : vector<128x4xf32>
    %126 = tpu.matmul %123, %125, %cst_52 {dimension_numbers = #tpu.dot_dimension_numbers<[1], [0], [0], [1], [0, 0, 1, 1], [], []>} : vector<128x4xbf16>, vector<4x4xbf16>, vector<128x4xf32> -> vector<128x4xf32>
    %127 = arith.addf %121, %126 : vector<128x4xf32>
    %128 = vector.extract_strided_slice %42 {offsets = [34, 0], sizes = [128, 4], strides = [1, 1]} : vector<162x4xf32> to vector<128x4xf32>
    %129 = vector.broadcast %68 : vector<128x1xf32> to vector<128x4xf32>
    %130 = arith.mulf %128, %129 : vector<128x4xf32>
    %131 = arith.truncf %130 : vector<128x4xf32> to vector<128x4xbf16>
    %c8 = arith.constant 8 : index
    %c0_53 = arith.constant 0 : index
    %c0_54 = arith.constant 0 : index
    %132 = vector.load %arg7[%c8, %c0_53, %c0_54] : memref<9x4x4xbf16, #tpu.memory_space<vmem>>, vector<1x4x4xbf16>
    %133 = vector.shape_cast %132 : vector<1x4x4xbf16> to vector<4x4xbf16>
    %cst_55 = arith.constant dense<0.000000e+00> : vector<128x4xf32>
    %134 = tpu.matmul %131, %133, %cst_55 {dimension_numbers = #tpu.dot_dimension_numbers<[1], [0], [0], [1], [0, 0, 1, 1], [], []>} : vector<128x4xbf16>, vector<4x4xbf16>, vector<128x4xf32> -> vector<128x4xf32>
    %135 = arith.addf %127, %134 : vector<128x4xf32>
    %136 = vector.broadcast %43 : vector<1x4xf32> to vector<128x4xf32>
    %137 = arith.addf %135, %136 : vector<128x4xf32>
    %138 = arith.truncf %137 : vector<128x4xf32> to vector<128x4xbf16>
    %139 = vector.shape_cast %138 : vector<128x4xbf16> to vector<1x1x128x4xbf16>
    %c0_56 = arith.constant 0 : index
    %c0_57 = arith.constant 0 : index
    %c0_58 = arith.constant 0 : index
    %c0_59 = arith.constant 0 : index
    %140 = vector.load %arg9[%c0_56, %c0_57, %c0_58, %c0_59] : memref<1x1x128x4xbf16, #tpu.memory_space<vmem>>, vector<1x1x128x4xbf16>
    tpu.vector_store %arg9[%c0_56, %c0_57, %c0_58, %c0_59], %139 {strides = array<i32>} : memref<1x1x128x4xbf16, #tpu.memory_space<vmem>>, vector<1x1x128x4xbf16>,
    %141 = arith.extf %138 : vector<128x4xbf16> to vector<128x4xf32>
    %cst_60 = arith.constant dense<0.000000e+00> : vector<4xf32>
    %142 = vector.multi_reduction <add>, %141, %cst_60 [0] : vector<128x4xf32> to vector<4xf32>
    %143 = vector.shape_cast %142 : vector<4xf32> to vector<1x4xf32>
    %144 = arith.mulf %141, %141 : vector<128x4xf32>
    %cst_61 = arith.constant dense<0.000000e+00> : vector<4xf32>
    %145 = vector.multi_reduction <add>, %144, %cst_61 [0] : vector<128x4xf32> to vector<4xf32>
    %146 = vector.shape_cast %145 : vector<4xf32> to vector<1x4xf32>
    %147 = tpu.concatenate %143, %146 in 0 : vector<1x4xf32>, vector<1x4xf32> -> vector<2x4xf32>
    %148 = vector.shape_cast %147 : vector<2x4xf32> to vector<1x2x4xf32>
    %c0_i32_62 = arith.constant 0 : i32
    %149 = arith.cmpi eq, %arg1, %c0_i32_62 : i32
    %150 = arith.extui %149 : i1 to i32
    %c0_i32_63 = arith.constant 0 : i32
    %151 = arith.cmpi ne, %150, %c0_i32_63 : i32
    scf.if %151 {
      %cst_70 = arith.constant 0.000000e+00 : f32
      %155 = vector.broadcast %cst_70 : f32 to vector<1x2x4xf32>
      %c0_71 = arith.constant 0 : index
      %c0_72 = arith.constant 0 : index
      %c0_73 = arith.constant 0 : index
      %156 = vector.load %arg10[%c0_71, %c0_72, %c0_73] : memref<1x2x4xf32, #tpu.memory_space<vmem>>, vector<1x2x4xf32>
      tpu.vector_store %arg10[%c0_71, %c0_72, %c0_73], %155 {strides = array<i32>} : memref<1x2x4xf32, #tpu.memory_space<vmem>>, vector<1x2x4xf32>,
    } else {
    }
    %c0_64 = arith.constant 0 : index
    %c0_65 = arith.constant 0 : index
    %c0_66 = arith.constant 0 : index
    %152 = vector.load %arg10[%c0_64, %c0_65, %c0_66] : memref<1x2x4xf32, #tpu.memory_space<vmem>>, vector<1x2x4xf32>
    %153 = arith.addf %152, %148 : vector<1x2x4xf32>
    %c0_67 = arith.constant 0 : index
    %c0_68 = arith.constant 0 : index
    %c0_69 = arith.constant 0 : index
    %154 = vector.load %arg10[%c0_67, %c0_68, %c0_69] : memref<1x2x4xf32, #tpu.memory_space<vmem>>, vector<1x2x4xf32>
    tpu.vector_store %arg10[%c0_67, %c0_68, %c0_69], %153 {strides = array<i32>} : memref<1x2x4xf32, #tpu.memory_space<vmem>>, vector<1x2x4xf32>,
    return
  }
  func.func @transform_0(%arg0: i32, %arg1: i32) -> (i32, i32, i32, i32) {
    %c1_i32 = arith.constant 1 : i32
    %0 = arith.subi %arg1, %c1_i32 : i32
    %c0_i32 = arith.constant 0 : i32
    %1 = arith.maxsi %0, %c0_i32 : i32
    %c0_i32_0 = arith.constant 0 : i32
    %2 = arith.cmpi sgt, %arg1, %c0_i32_0 : i32
    %c7_i32 = arith.constant 7 : i32
    %c0_i32_1 = arith.constant 0 : i32
    %3 = arith.select %2, %c7_i32, %c0_i32_1 : i32
    %c0_i32_2 = arith.constant 0 : i32
    %c0_i32_3 = arith.constant 0 : i32
    return %arg0, %1, %3, %c0_i32_2 : i32, i32, i32, i32
  }
  func.func @transform_1(%arg0: i32, %arg1: i32) -> (i32, i32, i32, i32) {
    %c0_i32 = arith.constant 0 : i32
    %c0_i32_0 = arith.constant 0 : i32
    %c0_i32_1 = arith.constant 0 : i32
    return %arg0, %arg1, %c0_i32, %c0_i32_0 : i32, i32, i32, i32
  }
  func.func @transform_2(%arg0: i32, %arg1: i32) -> (i32, i32, i32, i32) {
    %c1_i32 = arith.constant 1 : i32
    %0 = arith.addi %arg1, %c1_i32 : i32
    %c1_i32_0 = arith.constant 1 : i32
    %1 = arith.minsi %0, %c1_i32_0 : i32
    %c0_i32 = arith.constant 0 : i32
    %c0_i32_1 = arith.constant 0 : i32
    %c0_i32_2 = arith.constant 0 : i32
    return %arg0, %1, %c0_i32, %c0_i32_1 : i32, i32, i32, i32
  }
  func.func @transform_3(%arg0: i32, %arg1: i32) -> (i32, i32) {
    %c0_i32 = arith.constant 0 : i32
    %c0_i32_0 = arith.constant 0 : i32
    %c0_i32_1 = arith.constant 0 : i32
    return %c0_i32, %c0_i32_0 : i32, i32
  }
  func.func @transform_4(%arg0: i32, %arg1: i32) -> (i32, i32) {
    %c0_i32 = arith.constant 0 : i32
    %c0_i32_0 = arith.constant 0 : i32
    %c0_i32_1 = arith.constant 0 : i32
    return %c0_i32, %c0_i32_0 : i32, i32
  }
  func.func @transform_5(%arg0: i32, %arg1: i32) -> (i32, i32, i32) {
    %c0_i32 = arith.constant 0 : i32
    %c0_i32_0 = arith.constant 0 : i32
    %c0_i32_1 = arith.constant 0 : i32
    %c0_i32_2 = arith.constant 0 : i32
    return %c0_i32, %c0_i32_0, %c0_i32_1 : i32, i32, i32
  }
  func.func @transform_6(%arg0: i32, %arg1: i32) -> (i32, i32) {
    %c0_i32 = arith.constant 0 : i32
    %c0_i32_0 = arith.constant 0 : i32
    %c0_i32_1 = arith.constant 0 : i32
    return %c0_i32, %c0_i32_0 : i32, i32
  }
  func.func @transform_7(%arg0: i32, %arg1: i32) -> (i32, i32, i32, i32) {
    %c0_i32 = arith.constant 0 : i32
    %c0_i32_0 = arith.constant 0 : i32
    %c0_i32_1 = arith.constant 0 : i32
    return %arg0, %arg1, %c0_i32, %c0_i32_0 : i32, i32, i32, i32
  }
  func.func @transform_8(%arg0: i32, %arg1: i32) -> (i32, i32, i32) {
    %c0_i32 = arith.constant 0 : i32
    %c0_i32_0 = arith.constant 0 : i32
    %c0_i32_1 = arith.constant 0 : i32
    return %arg0, %c0_i32, %c0_i32_0 : i32, i32, i32
  }
}

</mosaic_0001>

<bundles_post_ra>
// kernel: residual_block_forward.5
= control target key start
LH: loop header
LB: loop body
LE: loop exit
PB: predicated region body
PF: predicated region fallthrough
CT: control target
= control target key end

     0   :  { %s694_s15 = smov 0   ;;  %s914_s0 = inlined_call_operand.vmem [shape: bf16[2,2,128,4], index: 0, kind: input, shape index: {}]   ;;  %s915_s1 = inlined_call_operand.vmem [shape: f32[2,2,128,4], index: 1, kind: input, shape index: {}]   ;;  %s916_s2 = inlined_call_operand.vmem [shape: f32[1,4], index: 2, kind: input, shape index: {}]   ;;  %s917_s3 = inlined_call_operand.vmem [shape: f32[1,4], index: 3, kind: input, shape index: {}]   ;;  %s918_s4 = inlined_call_operand.vmem [shape: f32[2,2,128,4], index: 4, kind: output, shape index: {}]  }
   0x1 LB: > { %s556_s16 = sadd.s32 4294967295, %s667_s15   ;;  %p560_p0 = scmp.ge.s32.totalorder %s667_s15, 1  ;;  %s667_s15 = sphi %s694_s15, %s14_s15  }
   0x2   : > { %p172_p1 = scmp.lt.s32.totalorder %s667_s15, 3 }
   0x4   : > { %p173_p2 = pnand %p560_p0, %p172_p1 }
   0x5   : > { %p203_p3 = scmp.lt.s32.totalorder (!%p173_p2), %s556_s16, 1 }
   0x6   : > { %176 = sbr.rel (%p173_p2) target bundleno = 58 (0x3a), region = 36 }
   0xb   : > { %s920_s16 = smov (!%p203_p3, %s556_s16), 1  ;;  %v714_v0 = vld [vmem:[%s916_s2] ss:$0 sm:$0xff]  ;;  %vm456_vm0 = vcmask 31744  }
   0xc   : > { %s571_s17 = sshll.u32 %s920_s16, 7  ;;  %s572_s18 = sshll.u32 %s920_s16, 8  ;;  %v728_v5 = vld [vmem:[%s917_s3] ss:$0 sm:$0xff] }
   0xd   : > { %s709_s21 = scalar_lea.vmem %s914_s0, %s571_s17  ;;  %s722_s26 = scalar_lea.vmem %s915_s1, %s572_s18 }
   0xe   : > { %v575_v1 = vld [vmem:[%s709_s21] sm:$0xff]   ;;  %v638_v4 = vld [vmem:[%s709_s21 + $0x8] sm:$0xff]   ;;  %v639_v8 = vld [vmem:[%s709_s21 + $0x10] sm:$0xff]   ;;  %s759_s5 = scalar_lea.vmem %s918_s4, %s572_s18 }
   0xf   : > { %v576_v2 = vunpack.c.l.bf16 %v575_v1  ;;  %v577_v3 = vunpack.c.h.bf16 %v575_v1  ;;  %v580_v6 = vunpack.c.l.bf16 %v638_v4  ;;  %v581_v7 = vunpack.c.h.bf16 %v638_v4  ;;  %v640_v13 = vld [vmem:[%s709_s21 + $0x18] sm:$0xff]   ;;  %v360_v14 = vld [vmem:[%s722_s26] sm:$0xff]  ;;  %v361_v15 = vld [vmem:[%s722_s26 + $0x8] sm:$0xff] }
  0x10   : > { %v584_v11 = vunpack.c.l.bf16 %v639_v8  ;;  %v585_v12 = vunpack.c.h.bf16 %v639_v8  ;;  %v588_v18 = vunpack.c.l.bf16 %v640_v13  ;;  %v589_v19 = vunpack.c.h.bf16 %v640_v13  ;;  %v362_v22 = vld [vmem:[%s722_s26 + $0x10] sm:$0xff]  ;;  %v363_v23 = vld [vmem:[%s722_s26 + $0x18] sm:$0xff]  ;;  %v364_v28 = vld [vmem:[%s722_s26 + $0x20] sm:$0xff] }
  0x11   : > { %v290_v9 = vmul.f32 %v576_v2, %v714_v0  ;;  %v291_v10 = vmul.f32 %v577_v3, %v714_v0  ;;  %v292_v16 = vmul.f32 %v580_v6, %v714_v0  ;;  %v293_v17 = vmul.f32 %v581_v7, %v714_v0  ;;  %v365_v29 = vld [vmem:[%s722_s26 + $0x28] sm:$0xff]  ;;  %v366_v36 = vld [vmem:[%s722_s26 + $0x30] sm:$0xff]  ;;  %v367_v37 = vld [vmem:[%s722_s26 + $0x38] sm:$0xff] }
  0x12   : > { %v294_v24 = vmul.f32 %v584_v11, %v714_v0  ;;  %v295_v25 = vmul.f32 %v585_v12, %v714_v0  ;;  %v296_v30 = vmul.f32 %v588_v18, %v714_v0  ;;  %v297_v31 = vmul.f32 %v589_v19, %v714_v0  ;;  %v641_v42 = vld [vmem:[%s709_s21 + $0x20] sm:$0xff]   ;;  %v642_v47 = vld [vmem:[%s709_s21 + $0x28] sm:$0xff]   ;;  %v643_v52 = vld [vmem:[%s709_s21 + $0x30] sm:$0xff]  }
  0x13   : > { %v328_v20 = vadd.f32 %v728_v5, %v290_v9  ;;  %v329_v21 = vadd.f32 %v728_v5, %v291_v10  ;;  %v330_v26 = vadd.f32 %v728_v5, %v292_v16  ;;  %v331_v27 = vadd.f32 %v728_v5, %v293_v17  ;;  %v644_v57 = vld [vmem:[%s709_s21 + $0x38] sm:$0xff]   ;;  %v368_v3 = vld [vmem:[%s722_s26 + $0x40] sm:$0xff]  ;;  %v369_v4 = vld [vmem:[%s722_s26 + $0x48] sm:$0xff] }
  0x14   : > { %v332_v34 = vadd.f32 %v728_v5, %v294_v24  ;;  %v333_v35 = vadd.f32 %v728_v5, %v295_v25  ;;  %v334_v40 = vadd.f32 %v728_v5, %v296_v30  ;;  %v335_v41 = vadd.f32 %v728_v5, %v297_v31  ;;  %v370_v12 = vld [vmem:[%s722_s26 + $0x50] sm:$0xff]  ;;  %v371_v13 = vld [vmem:[%s722_s26 + $0x58] sm:$0xff]  ;;  %v372_v18 = vld [vmem:[%s722_s26 + $0x60] sm:$0xff] }
  0x15   : > { %v392_v32 = vadd.f32 %v360_v14, %v328_v20  ;;  %v393_v33 = vadd.f32 %v361_v15, %v329_v21  ;;  %v394_v38 = vadd.f32 %v362_v22, %v330_v26  ;;  %v395_v39 = vadd.f32 %v363_v23, %v331_v27  ;;  %v373_v19 = vld [vmem:[%s722_s26 + $0x68] sm:$0xff]  ;;  %v374_v26 = vld [vmem:[%s722_s26 + $0x70] sm:$0xff]  ;;  %v375_v27 = vld [vmem:[%s722_s26 + $0x78] sm:$0xff] }
  0x16   : > { %v396_v45 = vadd.f32 %v364_v28, %v332_v34  ;;  %v397_v46 = vadd.f32 %v365_v29, %v333_v35  ;;  %v398_v50 = vadd.f32 %v366_v36, %v334_v40  ;;  %v399_v51 = vadd.f32 %v367_v37, %v335_v41  ;;  %v646_v37 = vld [vmem:[%s709_s21 + $0x48] sm:$0xff]  }
  0x17   : > { %v424_v43 = vmax.f32 %v392_v32, 0.0  ;;  %v425_v44 = vmax.f32 %v393_v33, 0.0  ;;  %v426_v48 = vmax.f32 %v394_v38, 0.0  ;;  %v427_v49 = vmax.f32 %v395_v39, 0.0  ;;  %v645_v32 = vld [vmem:[%s709_s21 + $0x40] sm:$0xff]  }
  0x18   : > { %v428_v53 = vmax.f32 %v396_v45, 0.0  ;;  %v429_v54 = vmax.f32 %v397_v46, 0.0  ;;  %v592_v55 = vunpack.c.l.bf16 %v641_v42  ;;  %v593_v56 = vunpack.c.h.bf16 %v641_v42  ;;  %v647_v42 = vld [vmem:[%s709_s21 + $0x50] sm:$0xff]  }
  0x19   : > { %457 = vst.msk [vmem:[%s759_s5] sm:$0xff] %vm456_vm0, %v424_v43  ;;  %458 = vst.msk [vmem:[%s759_s5 + $0x8] sm:$0xff] %vm456_vm0, %v425_v44  ;;  %v430_v58 = vmax.f32 %v398_v50, 0.0  ;;  %v431_v59 = vmax.f32 %v399_v51, 0.0  ;;  %v596_v60 = vunpack.c.l.bf16 %v642_v47  ;;  %v597_v61 = vunpack.c.h.bf16 %v642_v47  ;;  %v648_v47 = vld [vmem:[%s709_s21 + $0x58] sm:$0xff]  }
  0x1a   : > { %459 = vst.msk [vmem:[%s759_s5 + $0x10] sm:$0xff] %vm456_vm0, %v426_v48  ;;  %460 = vst.msk [vmem:[%s759_s5 + $0x18] sm:$0xff] %vm456_vm0, %v427_v49  ;;  %v298_v62 = vmul.f32 %v592_v55, %v714_v0  ;;  %v299_v63 = vmul.f32 %v593_v56, %v714_v0  ;;  %v600_v1 = vunpack.c.l.bf16 %v643_v52  ;;  %v601_v2 = vunpack.c.h.bf16 %v643_v52  ;;  %v376_v56 = vld [vmem:[%s722_s26 + $0x80] sm:$0xff] }
  0x1b   : > { %461 = vst.msk [vmem:[%s759_s5 + $0x20] sm:$0xff] %vm456_vm0, %v428_v53  ;;  %462 = vst.msk [vmem:[%s759_s5 + $0x28] sm:$0xff] %vm456_vm0, %v429_v54  ;;  %v300_v6 = vmul.f32 %v596_v60, %v714_v0  ;;  %v301_v7 = vmul.f32 %v597_v61, %v714_v0  ;;  %v604_v8 = vunpack.c.l.bf16 %v644_v57  ;;  %v605_v9 = vunpack.c.h.bf16 %v644_v57  ;;  %v377_v57 = vld [vmem:[%s722_s26 + $0x88] sm:$0xff] }
  0x1c   : > { %463 = vst.msk [vmem:[%s759_s5 + $0x30] sm:$0xff] %vm456_vm0, %v430_v58  ;;  %464 = vst.msk [vmem:[%s759_s5 + $0x38] sm:$0xff] %vm456_vm0, %v431_v59  ;;  %v336_v10 = vadd.f32 %v728_v5, %v298_v62  ;;  %v337_v11 = vadd.f32 %v728_v5, %v299_v63  ;;  %v302_v14 = vmul.f32 %v600_v1, %v714_v0  ;;  %v608_v45 = vunpack.c.l.bf16 %v645_v32  ;;  %v378_v1 = vld [vmem:[%s722_s26 + $0x90] sm:$0xff] }
  0x1d   : > { %v303_v15 = vmul.f32 %v601_v2, %v714_v0  ;;  %v338_v16 = vadd.f32 %v728_v5, %v300_v6  ;;  %v339_v17 = vadd.f32 %v728_v5, %v301_v7  ;;  %v304_v20 = vmul.f32 %v604_v8, %v714_v0  ;;  %v379_v2 = vld [vmem:[%s722_s26 + $0x98] sm:$0xff]  ;;  %v380_v8 = vld [vmem:[%s722_s26 + $0xa0] sm:$0xff] }
  0x1e   : > { %v305_v21 = vmul.f32 %v605_v9, %v714_v0  ;;  %v400_v22 = vadd.f32 %v368_v3, %v336_v10  ;;  %v401_v23 = vadd.f32 %v369_v4, %v337_v11  ;;  %v340_v24 = vadd.f32 %v728_v5, %v302_v14  ;;  %v381_v9 = vld [vmem:[%s722_s26 + $0xa8] sm:$0xff] }
  0x1f   : > { %v341_v25 = vadd.f32 %v728_v5, %v303_v15  ;;  %v402_v28 = vadd.f32 %v370_v12, %v338_v16  ;;  %v403_v29 = vadd.f32 %v371_v13, %v339_v17  ;;  %v342_v30 = vadd.f32 %v728_v5, %v304_v20  ;;  %v382_v16 = vld [vmem:[%s722_s26 + $0xb0] sm:$0xff]  ;;  %v383_v17 = vld [vmem:[%s722_s26 + $0xb8] sm:$0xff] }
  0x20   : > { %v343_v31 = vadd.f32 %v728_v5, %v305_v21  ;;  %v432_v33 = vmax.f32 %v400_v22, 0.0  ;;  %v433_v34 = vmax.f32 %v401_v23, 0.0  ;;  %v404_v35 = vadd.f32 %v372_v18, %v340_v24  ;;  %v649_v22 = vld [vmem:[%s709_s21 + $0x60] sm:$0xff]  }
  0x21   : > { %v405_v36 = vadd.f32 %v373_v19, %v341_v25  ;;  %v434_v38 = vmax.f32 %v402_v28, 0.0  ;;  %v435_v39 = vmax.f32 %v403_v29, 0.0  ;;  %v406_v40 = vadd.f32 %v374_v26, %v342_v30 }
  0x22   : > { %v407_v41 = vadd.f32 %v375_v27, %v343_v31  ;;  %465 = vst.msk [vmem:[%s759_s5 + $0x40] sm:$0xff] %vm456_vm0, %v432_v33  ;;  %466 = vst.msk [vmem:[%s759_s5 + $0x48] sm:$0xff] %vm456_vm0, %v433_v34  ;;  %v436_v43 = vmax.f32 %v404_v35, 0.0  ;;  %v609_v46 = vunpack.c.h.bf16 %v645_v32  ;;  %v612_v50 = vunpack.c.l.bf16 %v646_v37  ;;  %v650_v27 = vld [vmem:[%s709_s21 + $0x68] sm:$0xff]   ;;  %v651_v32 = vld [vmem:[%s709_s21 + $0x70] sm:$0xff]  }
  0x23   : > { %v437_v44 = vmax.f32 %v405_v36, 0.0  ;;  %467 = vst.msk [vmem:[%s759_s5 + $0x50] sm:$0xff] %vm456_vm0, %v434_v38  ;;  %468 = vst.msk [vmem:[%s759_s5 + $0x58] sm:$0xff] %vm456_vm0, %v435_v39  ;;  %v438_v48 = vmax.f32 %v406_v40, 0.0  ;;  %v613_v51 = vunpack.c.h.bf16 %v646_v37  ;;  %v306_v52 = vmul.f32 %v608_v45, %v714_v0  ;;  %v652_v37 = vld [vmem:[%s709_s21 + $0x78] sm:$0xff]  }
  0x24   : > { %v439_v49 = vmax.f32 %v407_v41, 0.0  ;;  %469 = vst.msk [vmem:[%s759_s5 + $0x60] sm:$0xff] %vm456_vm0, %v436_v43  ;;  %v307_v53 = vmul.f32 %v609_v46, %v714_v0  ;;  %v616_v54 = vunpack.c.l.bf16 %v647_v42  ;;  %v617_v55 = vunpack.c.h.bf16 %v647_v42  ;;  %v384_v46 = vld [vmem:[%s722_s26 + $0xc0] sm:$0xff] }
  0x25   : > { %470 = vst.msk [vmem:[%s759_s5 + $0x68] sm:$0xff] %vm456_vm0, %v437_v44  ;;  %471 = vst.msk [vmem:[%s759_s5 + $0x70] sm:$0xff] %vm456_vm0, %v438_v48  ;;  %v308_v58 = vmul.f32 %v612_v50, %v714_v0  ;;  %v309_v59 = vmul.f32 %v613_v51, %v714_v0  ;;  %v620_v60 = vunpack.c.l.bf16 %v648_v47  ;;  %v621_v61 = vunpack.c.h.bf16 %v648_v47  ;;  %v385_v47 = vld [vmem:[%s722_s26 + $0xc8] sm:$0xff] }
  0x26   : > { %472 = vst.msk [vmem:[%s759_s5 + $0x78] sm:$0xff] %vm456_vm0, %v439_v49  ;;  %v344_v62 = vadd.f32 %v728_v5, %v306_v52  ;;  %v345_v63 = vadd.f32 %v728_v5, %v307_v53  ;;  %v310_v3 = vmul.f32 %v616_v54, %v714_v0  ;;  %v311_v4 = vmul.f32 %v617_v55, %v714_v0  ;;  %v386_v54 = vld [vmem:[%s722_s26 + $0xd0] sm:$0xff]  ;;  %v387_v55 = vld [vmem:[%s722_s26 + $0xd8] sm:$0xff] }
  0x27   : > { %v346_v6 = vadd.f32 %v728_v5, %v308_v58  ;;  %v347_v7 = vadd.f32 %v728_v5, %v309_v59  ;;  %v312_v10 = vmul.f32 %v620_v60, %v714_v0  ;;  %v313_v11 = vmul.f32 %v621_v61, %v714_v0  ;;  %v388_v60 = vld [vmem:[%s722_s26 + $0xe0] sm:$0xff]  ;;  %v389_v61 = vld [vmem:[%s722_s26 + $0xe8] sm:$0xff] }
  0x28   : > { %v408_v12 = vadd.f32 %v376_v56, %v344_v62  ;;  %v409_v13 = vadd.f32 %v377_v57, %v345_v63  ;;  %v348_v14 = vadd.f32 %v728_v5, %v310_v3  ;;  %v349_v15 = vadd.f32 %v728_v5, %v311_v4 }
  0x29   : > { %v410_v18 = vadd.f32 %v378_v1, %v346_v6  ;;  %v411_v19 = vadd.f32 %v379_v2, %v347_v7  ;;  %v350_v20 = vadd.f32 %v728_v5, %v312_v10  ;;  %v351_v21 = vadd.f32 %v728_v5, %v313_v11  ;;  %v390_v6 = vld [vmem:[%s722_s26 + $0xf0] sm:$0xff]  ;;  %v391_v7 = vld [vmem:[%s722_s26 + $0xf8] sm:$0xff] }
  0x2a   : > { %v440_v23 = vmax.f32 %v408_v12, 0.0  ;;  %v441_v24 = vmax.f32 %v409_v13, 0.0  ;;  %v412_v25 = vadd.f32 %v380_v8, %v348_v14  ;;  %v413_v26 = vadd.f32 %v381_v9, %v349_v15 }
  0x2b   : > { %v442_v28 = vmax.f32 %v410_v18, 0.0  ;;  %v443_v29 = vmax.f32 %v411_v19, 0.0  ;;  %v414_v30 = vadd.f32 %v382_v16, %v350_v20  ;;  %v415_v31 = vadd.f32 %v383_v17, %v351_v21 }
  0x2c   : > { %473 = vst.msk [vmem:[%s759_s5 + $0x80] sm:$0xff] %vm456_vm0, %v440_v23  ;;  %474 = vst.msk [vmem:[%s759_s5 + $0x88] sm:$0xff] %vm456_vm0, %v441_v24  ;;  %v444_v33 = vmax.f32 %v412_v25, 0.0  ;;  %v445_v34 = vmax.f32 %v413_v26, 0.0  ;;  %v624_v35 = vunpack.c.l.bf16 %v649_v22  ;;  %v625_v36 = vunpack.c.h.bf16 %v649_v22 }
  0x2d   : > { %475 = vst.msk [vmem:[%s759_s5 + $0x90] sm:$0xff] %vm456_vm0, %v442_v28  ;;  %476 = vst.msk [vmem:[%s759_s5 + $0x98] sm:$0xff] %vm456_vm0, %v443_v29  ;;  %v446_v38 = vmax.f32 %v414_v30, 0.0  ;;  %v447_v39 = vmax.f32 %v415_v31, 0.0  ;;  %v628_v40 = vunpack.c.l.bf16 %v650_v27  ;;  %v629_v41 = vunpack.c.h.bf16 %v650_v27 }
  0x2e   : > { %477 = vst.msk [vmem:[%s759_s5 + $0xa0] sm:$0xff] %vm456_vm0, %v444_v33  ;;  %478 = vst.msk [vmem:[%s759_s5 + $0xa8] sm:$0xff] %vm456_vm0, %v445_v34  ;;  %v314_v42 = vmul.f32 %v624_v35, %v714_v0  ;;  %v315_v43 = vmul.f32 %v625_v36, %v714_v0  ;;  %v632_v44 = vunpack.c.l.bf16 %v651_v32  ;;  %v633_v45 = vunpack.c.h.bf16 %v651_v32 }
  0x2f   : > { %479 = vst.msk [vmem:[%s759_s5 + $0xb0] sm:$0xff] %vm456_vm0, %v446_v38  ;;  %480 = vst.msk [vmem:[%s759_s5 + $0xb8] sm:$0xff] %vm456_vm0, %v447_v39  ;;  %v316_v48 = vmul.f32 %v628_v40, %v714_v0  ;;  %v317_v49 = vmul.f32 %v629_v41, %v714_v0  ;;  %v636_v50 = vunpack.c.l.bf16 %v652_v37  ;;  %v637_v51 = vunpack.c.h.bf16 %v652_v37 }
  0x30   : > { %v352_v52 = vadd.f32 %v728_v5, %v314_v42  ;;  %v353_v53 = vadd.f32 %v728_v5, %v315_v43  ;;  %v318_v56 = vmul.f32 %v632_v44, %v714_v0  ;;  %v319_v57 = vmul.f32 %v633_v45, %v714_v0 }
  0x31   : > { %v354_v58 = vadd.f32 %v728_v5, %v316_v48  ;;  %v355_v59 = vadd.f32 %v728_v5, %v317_v49  ;;  %v320_v62 = vmul.f32 %v636_v50, %v714_v0  ;;  %v321_v63 = vmul.f32 %v637_v51, %v714_v0 }
  0x32   : > { %v416_v1 = vadd.f32 %v384_v46, %v352_v52  ;;  %v417_v2 = vadd.f32 %v385_v47, %v353_v53  ;;  %v356_v3 = vadd.f32 %v728_v5, %v318_v56  ;;  %v357_v4 = vadd.f32 %v728_v5, %v319_v57 }
  0x33   : > { %v418_v8 = vadd.f32 %v386_v54, %v354_v58  ;;  %v419_v9 = vadd.f32 %v387_v55, %v355_v59  ;;  %v358_v10 = vadd.f32 %v728_v5, %v320_v62  ;;  %v359_v11 = vadd.f32 %v728_v5, %v321_v63 }
  0x34   : > { %v448_v12 = vmax.f32 %v416_v1, 0.0  ;;  %v449_v0 = vmax.f32 %v417_v2, 0.0  ;;  %v420_v13 = vadd.f32 %v388_v60, %v356_v3  ;;  %v421_v14 = vadd.f32 %v389_v61, %v357_v4 }
  0x35   : > { %v450_v15 = vmax.f32 %v418_v8, 0.0  ;;  %v451_v16 = vmax.f32 %v419_v9, 0.0  ;;  %v422_v17 = vadd.f32 %v390_v6, %v358_v10  ;;  %v423_v18 = vadd.f32 %v391_v7, %v359_v11 }
  0x36   : > { %481 = vst.msk [vmem:[%s759_s5 + $0xc0] sm:$0xff] %vm456_vm0, %v448_v12  ;;  %482 = vst.msk [vmem:[%s759_s5 + $0xc8] sm:$0xff] %vm456_vm0, %v449_v0  ;;  %v452_v19 = vmax.f32 %v420_v13, 0.0  ;;  %v453_v20 = vmax.f32 %v421_v14, 0.0 }
  0x37   : > { %483 = vst.msk [vmem:[%s759_s5 + $0xd0] sm:$0xff] %vm456_vm0, %v450_v15  ;;  %484 = vst.msk [vmem:[%s759_s5 + $0xd8] sm:$0xff] %vm456_vm0, %v451_v16  ;;  %v454_v5 = vmax.f32 %v422_v17, 0.0  ;;  %v455_v21 = vmax.f32 %v423_v18, 0.0 }
  0x38   : > { %485 = vst.msk [vmem:[%s759_s5 + $0xe0] sm:$0xff] %vm456_vm0, %v452_v19  ;;  %486 = vst.msk [vmem:[%s759_s5 + $0xe8] sm:$0xff] %vm456_vm0, %v453_v20 }
  0x39   : > { %487 = vst.msk [vmem:[%s759_s5 + $0xf0] sm:$0xff] %vm456_vm0, %v454_v5  ;;  %488 = vst.msk [vmem:[%s759_s5 + $0xf8] sm:$0xff] %vm456_vm0, %v455_v21 }
  0x3a PF: > { %s14_s15 = sadd.s32 1, %s667_s15  }
  0x3b   : > { %p11_p4 = scmp.ge.s32.totalorder %s14_s15, 4  }
  0x3d   :  { %13 = sbr.rel (!%p11_p4) target bundleno = 1 (0x1), region = 69 }

// kernel: residual_block_forward.3
= control target key start
LH: loop header
LB: loop body
LE: loop exit
PB: predicated region body
PF: predicated region fallthrough
CT: control target
= control target key end

     0   :  { %s3406_s21 = smov 0   ;;  %s3408_s22 = smov 0   ;;  %s4664_s0 = inlined_call_operand.vmem [shape: f32[2,2,128,4], index: 0, kind: input, shape index: {}, may-alias: {0,1,2}]   ;;  %s4665_s1 = inlined_call_operand.vmem [shape: f32[2,2,128,4], index: 1, kind: input, shape index: {}, may-alias: {0,1,2}]   ;;  %s4666_s2 = inlined_call_operand.vmem [shape: f32[2,2,128,4], index: 2, kind: input, shape index: {}, may-alias: {0,1,2}]   ;;  %s4667_s3 = inlined_call_operand.vmem [shape: bf16[9,4,4], index: 3, kind: input, shape index: {}]   ;;  %s4668_s4 = inlined_call_operand.vmem [shape: f32[1,4], index: 4, kind: input, shape index: {}]   ;;  %s4669_s5 = inlined_call_operand.vmem [shape: bf16[2,2,128,4], index: 5, kind: output, shape index: {0}]   ;;  %s4670_s6 = inlined_call_operand.vmem [shape: f32[2,2,4], index: 6, kind: output, shape index: {1}]  }
   0x1   :  { %s3410_s23 = smov 0   ;;  %s3412_s24 = smov 0  }
   0x2   :  { %s3414_s25 = smov 0  }
   0x3 LB: > { %s26_s26 = sadd.s32 1, %s3358_s23  ;;  %s29_s27 = sadd.s32 1, %s3362_s24  ;;  %s3366_s25 = sphi %s3414_s25, %s17_s25   ;;  %s3362_s24 = sphi %s3412_s24, %s4764_s24   ;;  %s3358_s23 = sphi %s3410_s23, %s4763_s23   ;;  %s3354_s22 = sphi %s3408_s22, %s4762_s22   ;;  %s3350_s21 = sphi %s3406_s21, %s4761_s21  }
   0x4   : > { %p27_p0 = scmp.ge.s32.totalorder %s26_s26, 2  ;;  %p2872_p1 = scmp.ge.s32.totalorder %s3366_s25, 1 }
   0x5   : > { %p306_p2 = scmp.lt.s32.totalorder %s3366_s25, 5 }
   0x6   : > { %s4766_s26 = smov (%p27_p0, %s26_s26), 0  ;;  %s4768_s27 = smov (!%p27_p0, %s29_s27), %s3362_s24 }
   0x7   : > { %p307_p3 = pnand %p2872_p1, %p306_p2  ;;  %p31_p4 = scmp.ge.s32.totalorder %s4768_s27, 2 }
   0x9   : > { %s4770_s27 = smov (%p31_p4, %s4768_s27), 0  ;;  %310 = sbr.rel (%p307_p3) target bundleno = 438 (0x1b6), region = 40 }
   0xe   : > { %v2912_v0 = vld [vmem:[%s4667_s3 + $0x2] sm:$0x3]  ;;  %vm993_vm0 = vcmask 1041408   ;;  %p384_p5 = scmp.lt.s32.totalorder %s3354_s22, 1  ;;  %p404_p6 = scmp.lt.s32.totalorder %s3350_s21, 1  ;;  %v558_v1 = vlaneseq  ;;  %vm474_vm1 = vcmask 1040384  }
   0xf   : > { %3276 = vmatprep.subr.msk.bf16.mxu1 %vm993_vm0, %v2912_v0  ;;  %v995_v2 = vsel %vm993_vm0, %v2912_v0, 0  ;;  %3275 = vmatprep.subr.msk.bf16.mxu0 %vm993_vm0, %v2912_v0  ;;  %v887_v3 = vld [vmem:[%s4667_s3] sm:$0x3]  ;;  %v2929_v4 = vld [vmem:[%s4667_s3 + $0x4] sm:$0x3]  ;;  %s3484_s20 = sadd.s32 4294967295, %s3350_s21 }
  0x10   : > { %3274 = vmatpush3.bf16.msra.mxu1 %v995_v2  ;;  %s4772_s22 = smov (!%p384_p5, %s3354_s22), 1  ;;  %3112 = vmatpush3.bf16.msra.mxu0 %v995_v2  ;;  %v3451_v5 = vshrl.u32 %v558_v1, 7  ;;  %v3461_v6 = vld [vmem:[%s4667_s3 + $0x6] sm:$0x3]  ;;  %v3474_v10 = vsel %vm993_vm0, %v887_v3, 0  ;;  %v3487_v13 = vsel %vm993_vm0, %v2929_v4, 0 }
  0x11   : > { %s405_s10 = scalar_select %p404_p6, %s3350_s21, 1  ;;  %3277 = vmatprep.subr.msk.bf16.mxu1 %vm993_vm0, %v887_v3  ;;  %3278 = vmatprep.subr.msk.bf16.mxu0 %vm993_vm0, %v2929_v4  ;;  %v3368_v16 = vmov 0.0   ;;  %v3496_v18 = vsel %vm993_vm0, %v3461_v6, 0  ;;  %v3369_v20 = vmov 1.0   ;;  %vm899_vm5 = vsmask.f32 7424 }
  0x12   : > { %s3463_s13 = sshll.u32 %s4772_s22, 5  ;;  %s2895_s14 = sshll.u32 %s4772_s22, 1  ;;  %v579_v7 = vand.u32 15, %v3451_v5  ;;  %v561_v8 = vadd.s32 16, %v3451_v5  ;;  %v560_v9 = vadd.s32 8, %v3451_v5  ;;  %v562_v11 = vadd.s32 24, %v3451_v5 }
  0x13   : > { %s2883_s15 = sshll.u32 %s405_s10, 4  ;;  %s3471_s18 = scalar_lea.vmem %s4670_s6, %s2895_s14  ;;  %v3478_v12 = vadd.s32 40, %v3451_v5  ;;  %v3498_v21 = vrot.slane %v3369_v20, 6  ;;  %v3516_v25 = vadd.s32 32, %v3451_v5  ;;  %v3529_v29 = vadd.s32 48, %v3451_v5 }
  0x14   : > { %s3481_s19 = sadd.s32 %s2883_s15, %s3463_s13  ;;  %vm767_vm2 = vcmp.ne.s32.totalorder %v579_v7, 0  ;;  %v593_v14 = vand.u32 15, %v561_v8  ;;  %v586_v15 = vand.u32 15, %v560_v9  ;;  %p379_p7 = scmp.gt.s32.totalorder %s3484_s20, 0  ;;  %v600_v19 = vand.u32 15, %v562_v11 }
  0x15   : > { %s2885_s22 = sshll.u32 %s3481_s19, 3  ;;  %v3492_v17 = vsel %vm767_vm2, 1.0, %v3368_v16  ;;  %p381_p8 = scmp.gt.s32.totalorder %s3350_s21, 0  ;;  %v614_v24 = vand.u32 15, %v3478_v12  ;;  %v3532_v30 = vadd.s32 56, %v3451_v5  ;;  %vm968_vm6 = vcmask 31744  }
  0x16   : > { %4686 = vst [vmem:[#allocation2_spill] sm:$0xff] %v3492_v17  ;;  %s3503_s30 = scalar_lea.vmem %s4665_s1, %s2885_s22  ;;  %vm3506_vm3 = vcmp.ne.s32.totalorder %v593_v14, 0  ;;  %vm3510_vm4 = vcmp.ne.s32.totalorder %v586_v15, 15  ;;  %p2875_p9 = scmp.lt.s32.totalorder %s3484_s20, 1  ;;  %vm3577_vm7 = vcmp.ne.s32.totalorder %v600_v19, 15  ;;  %vm1319_vm9 = vcmask 1046528  }
  0x17   : > { %v3519_v26 = vld [vmem:[%s3503_s30 + $0x28] sm:$0xff]  ;;  %v454_v27 = vld [vmem:[%s3503_s30 + $0x30] sm:$0xff]  ;;  %v455_v28 = vld [vmem:[%s3503_s30 + $0x38] sm:$0xff]  ;;  %s3526_s7 = scalar_select %p379_p7, %s3484_s20, 0  ;;  %v3559_v46 = vsel %vm3506_vm3, 1.0, %v3368_v16  ;;  %v3594_v58 = vsel %vm3510_vm4, 1.0, %v3368_v16 }
  0x18   : > { %v456_v31 = vld [vmem:[%s3503_s30 + $0x40] sm:$0xff]  ;;  %v457_v32 = vld [vmem:[%s3503_s30 + $0x48] sm:$0xff]  ;;  %v506_v33 = vrot.slane %v3519_v26, 7  ;;  %v508_v34 = vrot.slane %v454_v27, 7  ;;  %v510_v35 = vrot.slane %v455_v28, 7  ;;  %v458_v36 = vld [vmem:[%s3503_s30 + $0x50] sm:$0xff] }
  0x19   : > { %v512_v37 = vrot.slane %v456_v31, 7  ;;  %v514_v38 = vrot.slane %v457_v32, 7  ;;  %v459_v39 = vld [vmem:[%s3503_s30 + $0x58] sm:$0xff]  ;;  %v516_v40 = vrot.slane %v458_v36, 7  ;;  %s3541_s8 = scalar_select %p381_p8, 7, 0 }
  0x1a   : > { %v3546_v41 = vsel %vm474_vm1, %v506_v33, %v508_v34  ;;  %v3549_v42 = vsel %vm474_vm1, %v508_v34, %v510_v35  ;;  %v518_v43 = vrot.slane %v459_v39, 7  ;;  %v3553_v44 = vld [vmem:[%s3503_s30 + $0x8] sm:$0xff]  ;;  %v450_v45 = vld [vmem:[%s3503_s30 + $0x10] sm:$0xff]  ;;  %v3574_v51 = vld [vmem:[%s3503_s30] sm:$0xff]  ;;  %s4774_s7 = smov (!%p2875_p9, %s3526_s7), 1  ;;  %vm3706_vm8 = vcmp.ne.s32.totalorder %v614_v24, 15 }
  0x1b   : > { %v3562_v47 = vsel %vm474_vm1, %v510_v35, %v512_v37  ;;  %v3565_v48 = vsel %vm474_vm1, %v512_v37, %v514_v38  ;;  %v892_v49 = vpack.c.bf16 %v3549_v42, %v3546_v41  ;;  %v3570_v50 = vsel %vm474_vm1, %v514_v38, %v516_v40  ;;  %s2874_s9 = sshll.u32 %s3541_s8, 1  ;;  %v451_v52 = vld [vmem:[%s3503_s30 + $0x18] sm:$0xff]  ;;  %v460_v57 = vld [vmem:[%s3503_s30 + $0x60] sm:$0xff]  ;;  %v461_v63 = vld [vmem:[%s3503_s30 + $0x68] sm:$0xff]  ;;  %s2880_s10 = sshll.u32 %s4774_s7, 4 }
  0x1c   : > { %v893_v54 = vpack.c.bf16 %v3565_v48, %v3562_v47  ;;  %v3584_v55 = vsel %vm474_vm1, %v516_v40, %v518_v43  ;;  %v498_v56 = vrot.slane %v3553_v44, 7  ;;  %v500_v62 = vrot.slane %v450_v45, 7  ;;  %s391_s11 = sadd.s32 %s2880_s10, %s2874_s9  ;;  %v3608_v11 = vld [vmem:[%s3503_s30 + $0x70] sm:$0xff]  ;;  %v452_v14 = vld [vmem:[%s3503_s30 + $0x20] sm:$0xff]  ;;  %s411_s7 = sadd.s32 1, %s3350_s21 }
  0x1d   : > { %v932_v59 = vshll.u32 %v892_v49, 16  ;;  %v936_v60 = vshrl.u32 %v892_v49, 16  ;;  %v894_v61 = vpack.c.bf16 %v3584_v55, %v3570_v50  ;;  %v497_v2 = vrot.slane %v3574_v51, 7  ;;  %s393_s12 = sadd.s32 %s3463_s13, %s391_s11  ;;  %p3787_p10 = scmp.lt.s32.totalorder %s411_s7, 1 }
  0x1e   : > { %v940_v0 = vshll.u32 %v893_v54, 16  ;;  %v944_v1 = vshrl.u32 %v893_v54, 16  ;;  %v502_v3 = vrot.slane %v451_v52, 7  ;;  %v3605_v8 = vsel %vm474_vm1, %v498_v56, %v500_v62  ;;  %s2882_s14 = sshll.u32 %s393_s12, 3  ;;  %p3009_p11 = scmp.ne.s32.totalorder %s3350_s21, 0 }
  0x1f   : > { %v3600_v4 = vrot.slane %v932_v59, 1  ;;  %v948_v7 = vshll.u32 %v894_v61, 16  ;;  %v520_v9 = vrot.slane %v460_v57, 7  ;;  %v522_v20 = vrot.slane %v461_v63, 7  ;;  %s395_s17 = scalar_lea.vmem %s4664_s0, %s2882_s14  ;;  %s4776_s7 = smov (!%p3787_p10, %s411_s7), 1 }
  0x20   : > { %v942_v15 = vrot.slane %v940_v0, 1  ;;  %v3613_v19 = vsel %vm474_vm1, %v500_v62, %v502_v3  ;;  %v952_v22 = vshrl.u32 %v894_v61, 16  ;;  %v4671_v35 = vrot.slane %v3608_v11, 7  ;;  %s443_s20 = scalar_select %p381_p8, 1, 0  ;;  %v440_v54 = vld [vmem:[%s395_s17] sm:$0xff] }
  0x21   : > { %v938_v23 = vor.u32 %v936_v60, %v3600_v4  ;;  %v950_v27 = vrot.slane %v948_v7, 1  ;;  %v890_v28 = vpack.c.bf16 %v3613_v19, %v3605_v8  ;;  %v3619_v31 = vsel %vm474_vm1, %v518_v43, %v520_v9  ;;  %v441_v57 = vld [vmem:[%s395_s17 + $0x8] sm:$0xff]  ;;  %s4778_s7 = smov (!%p3787_p10, %s4776_s7), 1 }
  0x22   : > { %v946_v32 = vor.u32 %v944_v1, %v942_v15  ;;  %v3625_v34 = vsel %vm474_vm1, %v520_v9, %v522_v20  ;;  %v504_v36 = vrot.slane %v452_v14, 7  ;;  %v3643_v45 = vsel %vm474_vm1, %v522_v20, %v4671_v35  ;;  %s444_s22 = scvt.s32.f32 %s443_s20  ;;  %s3867_s11 = sshll.u32 %s4778_s7, 4 }
  0x23   : > { %v3629_v37 = vsel %vm899_vm5, %v938_v23, %v942_v15  ;;  %v916_v38 = vshll.u32 %v890_v28, 16  ;;  %v895_v39 = vpack.c.bf16 %v3625_v34, %v3619_v31  ;;  %v954_v40 = vor.u32 %v952_v22, %v950_v27  ;;  %s420_s15 = sadd.s32 %s3867_s11, %s3463_s13  ;;  %s2894_s11 = sshll.u32 %s3481_s19, 2 }
  0x24   : > { %4693 = vst [vmem:[#allocation3_spill] sm:$0xff] %v3629_v37  ;;  %3121 = vmatprep.mubr.msk.bf16.mxu1 %vm968_vm6, %v3629_v37  ;;  %v3638_v43 = vsel %vm899_vm5, %v946_v32, %v950_v27  ;;  %v3646_v49 = vsel %vm474_vm1, %v502_v3, %v504_v36  ;;  %v3651_v52 = vsel %vm474_vm1, %v504_v36, %v506_v33  ;;  %v920_v33 = vshrl.u32 %v890_v28, 16  ;;  %s3900_s16 = scalar_select %p404_p6, 1, 0 }
  0x25   : > { %4694 = vst [vmem:[#allocation4_spill] sm:$0xff] %v3638_v43  ;;  %3122 = vmatmul.mubr.msk.bf16.vlgmr.msra.gmra.mxu1 %vm968_vm6, %v3638_v43  ;;  %v3655_v59 = vrot.slane %v916_v38, 1  ;;  %v956_v60 = vshll.u32 %v895_v39, 16  ;;  %v896_v61 = vpack.c.bf16 %v3643_v45, %v3643_v45  ;;  %v960_v62 = vshrl.u32 %v895_v39, 16  ;;  %s2891_s13 = sshll.u32 %s420_s15, 3  ;;  %s4533_s14 = scalar_lea.vmem %s4669_s5, %s2894_s11 }
  0x26   : > { %3130 = vmatpush3.bf16.msra.mxu1 %v3474_v10  ;;  %v891_v26 = vpack.c.bf16 %v3651_v52, %v3646_v49  ;;  %v2905_v63 = vsel %vm3577_vm7, 1.0, %v3368_v16  ;;  %v1235_v0 = vrot.slane %v3594_v58, 6  ;;  %v445_v1 = vstv %s444_s22  ;;  %s468_s17 = scvt.s32.f32 %s3900_s16  ;;  %s3931_s28 = scalar_lea.vmem %s4666_s2, %s2891_s13 }
  0x27   : > { %v958_v3 = vrot.slane %v956_v60, 1  ;;  %v964_v7 = vshll.u32 %v896_v61, 16  ;;  %3279 = vmatprep.subr.msk.bf16.mxu1 %vm993_vm0, %v3461_v6  ;;  %v1239_v9 = vrot.slane %v2905_v63, 6  ;;  %v446_v14 = vmul.f32 %v445_v1, %v440_v54 }
  0x28   : > { %v447_v15 = vmul.f32 %v445_v1, %v441_v57  ;;  %v3673_v10 = vsel %vm474_vm1, %v497_v2, %v498_v56  ;;  %v924_v53 = vshll.u32 %v891_v26, 16  ;;  %v922_v23 = vor.u32 %v920_v33, %v3655_v59 }
  0x29   : > { %v3676_v20 = vsel %vm899_vm5, %v954_v40, %v958_v3  ;;  %v3678_v58 = vor.u32 %v960_v62, %v958_v3  ;;  %v966_v22 = vrot.slane %v964_v7, 1  ;;  %v475_v6 = vrot.slane %v446_v14, 7 }
  0x2a   : > { %4695 = vst [vmem:[#allocation5_spill] sm:$0xff] %v3676_v20  ;;  %v476_v27 = vrot.slane %v447_v15, 7  ;;  %3125 = vmatprep.mubr.msk.bf16.mxu1 %vm968_vm6, %v3676_v20  ;;  %v926_v44 = vrot.slane %v924_v53, 1  ;;  %v928_v28 = vshrl.u32 %v891_v26, 16  ;;  %v3687_v32 = vsel %vm993_vm0, %v3498_v21, %v1235_v0 }
  0x2b   : > { %v967_v56 = vsel %vm899_vm5, %v3678_v58, %v966_v22  ;;  %v3691_v36 = vsel %vm993_vm0, %v1235_v0, %v3498_v21  ;;  %v3695_v38 = vsel %vm993_vm0, %v3498_v21, %v1239_v9  ;;  %v553_v40 = vsel %vm474_vm1, 0.0, %v475_v6 }
  0x2c   : > { %v477_v39 = vsel %vm474_vm1, %v475_v6, %v476_v27  ;;  %v3702_v54 = vsel %vm474_vm1, %v476_v27, %v497_v2  ;;  %v3714_v62 = vsel %vm899_vm5, %v922_v23, %v926_v44  ;;  %v863_v51 = vmul.f32 %v3492_v17, %v553_v40 }
  0x2d   : > { %v888_v60 = vpack.c.bf16 %v477_v39, %v553_v40  ;;  %v889_v61 = vpack.c.bf16 %v3673_v10, %v3702_v54  ;;  %3126 = vmatmul.mubr.msk.bf16.gmra.mxu1 %vm968_vm6, %v967_v56  ;;  %v865_v2 = vmul.f32 %v3559_v46, %v3702_v54  ;;  %v1282_v12 = vmul.f32 %v3498_v21, %v553_v40 }
  0x2e   : > { %v1283_v24 = vmul.f32 %v3687_v32, %v477_v39  ;;  %v1284_v26 = vmul.f32 %v3691_v36, %v3702_v54  ;;  %v930_v3 = vor.u32 %v928_v28, %v926_v44  ;;  %v879_v7 = vpack.c.bf16 %v477_v39, %v863_v51 }
  0x2f   : > { %v901_v33 = vshrl.u32 %v888_v60, 16  ;;  %v903_v63 = vshll.u32 %v888_v60, 16  ;;  %v908_v0 = vshll.u32 %v889_v61, 16  ;;  %v912_v1 = vshrl.u32 %v889_v61, 16 }
  0x30   : > { %v880_v14 = vpack.c.bf16 %v3673_v10, %v865_v2  ;;  %v1285_v15 = vmul.f32 %v3695_v38, %v3673_v10  ;;  %v1299_v23 = vpack.c.bf16 %v1283_v24, %v1282_v12  ;;  %v2906_v6 = vsel %vm3706_vm8, 1.0, %v3368_v16  ;;  %3131 = vmatprep.mubr.msk.bf16.mxu1 %vm968_vm6, %v879_v7 }
  0x31   : > { %v905_v53 = vrot.slane %v903_v63, 1  ;;  %v910_v22 = vrot.slane %v908_v0, 1  ;;  %v3732_v44 = vsel %vm993_vm0, %v1239_v9, %v3498_v21  ;;  %v1243_v28 = vrot.slane %v2906_v6, 6  ;;  %v3747_v9 = vld [vmem:[%s4667_s3 + $0xa] sm:$0x3] }
  0x32   : > { %v1300_v27 = vpack.c.bf16 %v1285_v15, %v1284_v26  ;;  %v607_v56 = vand.u32 15, %v3516_v25  ;;  %v1320_v60 = vrot.slane %v1299_v23, 1  ;;  %v1286_v61 = vmul.f32 %v3732_v44, %v3605_v8 }
  0x33   : > { %v906_v39 = vor.u32 %v905_v53, %v901_v33  ;;  %v914_v40 = vor.u32 %v912_v1, %v910_v22  ;;  %v3741_v57 = vsel %vm993_vm0, %v3498_v21, %v1243_v28  ;;  %v621_v2 = vand.u32 15, %v3529_v29 }
  0x34   : > { %v3737_v51 = vrot.slane %v1300_v27, 1  ;;  %vm771_vm10 = vcmp.ne.s32.totalorder %v607_v56, 0  ;;  %v1287_v24 = vmul.f32 %v3741_v57, %v3613_v19  ;;  %v3764_v26 = vsel %vm899_vm5, %v930_v3, %v3600_v4 }
  0x35   : > { %v911_v25 = vsel %vm899_vm5, %v906_v39, %v910_v22  ;;  %v3753_v12 = vsel %vm899_vm5, %v914_v40, %v3655_v59  ;;  %3132 = vmatmul.mubr.msk.bf16.vlgmr.msra.gmra.mxu1 %vm968_vm6, %v880_v14  ;;  %v3759_v29 = vsel %vm771_vm10, 1.0, %v3368_v16  ;;  %v2947_v59 = vld [vmem:[%s4667_s3 + $0x8] sm:$0x3]  ;;  %vm773_vm11 = vcmp.ne.s32.totalorder %v621_v2, 0 }
  0x36   : > { %4698 = vst [vmem:[#allocation6_spill] sm:$0xff] %v3759_v29  ;;  %3113 = vmatprep.mubr.msk.bf16.mxu0 %vm968_vm6, %v911_v25  ;;  %3166 = vmatpush3.bf16.msra.mxu1 %v3496_v18  ;;  %v867_v33 = vmul.f32 %v3759_v29, %v3605_v8  ;;  %v628_v63 = vand.u32 15, %v3532_v30  ;;  %v1301_v0 = vpack.c.bf16 %v1287_v24, %v1286_v61  ;;  %v3776_v1 = vsel %vm773_vm11, 1.0, %v3368_v16 }
  0x37   : > { %3114 = vmatmul.mubr.msk.bf16.vlgmr.msra.gmra.mxu0 %vm968_vm6, %v3753_v12  ;;  %4699 = vst [vmem:[#allocation7_spill] sm:$0xff] %v3776_v1  ;;  %v3780_v18 = vsel %vm993_vm0, %v1243_v28, %v3498_v21  ;;  %v568_v4 = vadd.s32 72, %v3451_v5  ;;  %3281 = vmatprep.subr.msk.bf16.mxu1 %vm993_vm0, %v3747_v9  ;;  %v1322_v30 = vsel %vm1319_vm9, %v1320_v60, %v3737_v51  ;;  %v567_v53 = vadd.s32 64, %v3451_v5 }
  0x38   : > { %3148 = vmatpush3.bf16.msra.mxu0 %v3487_v13  ;;  %3117 = vmatprep.mubr.msk.bf16.mxu0 %vm968_vm6, %v3714_v62  ;;  %v881_v3 = vpack.c.bf16 %v3613_v19, %v867_v33  ;;  %v869_v7 = vmul.f32 %v3776_v1, %v3646_v49  ;;  %vm822_vm12 = vcmp.ne.s32.totalorder %v628_v63, 15  ;;  %v1288_v13 = vmul.f32 %v3780_v18, %v3646_v49 }
  0x39   : > { %3280 = vmatprep.subr.msk.bf16.mxu0 %vm993_vm0, %v2947_v59  ;;  %v2907_v14 = vsel %vm822_vm12, 1.0, %v3368_v16  ;;  %v642_v15 = vand.u32 15, %v568_v4  ;;  %v569_v6 = vadd.s32 80, %v3451_v5  ;;  %v570_v27 = vadd.s32 88, %v3451_v5 }
  0x3a   : > { %3135 = vmatprep.mubr.msk.bf16.mxu1 %vm968_vm6, %v881_v3  ;;  %v882_v22 = vpack.c.bf16 %v3651_v52, %v869_v7  ;;  %v1247_v23 = vrot.slane %v2907_v14, 6  ;;  %v1323_v28 = vrot.slane %v1301_v0, 1  ;;  %v635_v56 = vand.u32 15, %v567_v53 }
  0x3b   : > { %vm824_vm13 = vcmp.ne.s32.totalorder %v642_v15, 15  ;;  %v572_v39 = vadd.s32 104, %v3451_v5  ;;  %v649_v2 = vand.u32 15, %v569_v6  ;;  %v656_v0 = vand.u32 15, %v570_v27 }
  0x3c   : > { %v3817_v40 = vsel %vm993_vm0, %v3498_v21, %v1247_v23  ;;  %v2908_v60 = vsel %vm824_vm13, 1.0, %v3368_v16  ;;  %v3822_v61 = vsel %vm993_vm0, %v1247_v23, %v3498_v21  ;;  %vm775_vm14 = vcmp.ne.s32.totalorder %v635_v56, 0 }
  0x3d   : > { %3136 = vmatmul.mubr.msk.bf16.gmra.mxu1 %vm968_vm6, %v882_v22  ;;  %v1289_v25 = vmul.f32 %v3817_v40, %v3651_v52  ;;  %v1251_v24 = vrot.slane %v2908_v60, 6  ;;  %v1290_v33 = vmul.f32 %v3822_v61, %v3546_v41  ;;  %v3830_v63 = vsel %vm775_vm14, 1.0, %v3368_v16 }
  0x3e   : > { %4701 = vst [vmem:[#allocation8_spill] sm:$0xff] %v3830_v63  ;;  %vm777_vm15 = vcmp.ne.s32.totalorder %v649_v2, 0  ;;  %v670_v4 = vand.u32 15, %v572_v39  ;;  %v871_v14 = vmul.f32 %v3830_v63, %v3546_v41  ;;  %vm826_vm2 = vcmp.ne.s32.totalorder %v656_v0, 15 }
  0x3f   : > { %3118 = vmatmul.mubr.msk.bf16.gmra.mxu0 %vm968_vm6, %v3764_v26  ;;  %v1302_v3 = vpack.c.bf16 %v1289_v25, %v1288_v13  ;;  %v3836_v7 = vsel %vm993_vm0, %v3498_v21, %v1251_v24  ;;  %v3841_v15 = vsel %vm777_vm15, 1.0, %v3368_v16  ;;  %v3853_v22 = vsel %vm993_vm0, %v1251_v24, %v3498_v21 }
  0x40   : > { %4702 = vst [vmem:[#allocation9_spill] sm:$0xff] %v3841_v15  ;;  %3149 = vmatprep.mubr.msk.bf16.mxu0 %vm968_vm6, %v1322_v30  ;;  %v1291_v53 = vmul.f32 %v3836_v7, %v3549_v42  ;;  %v873_v13 = vmul.f32 %v3841_v15, %v3562_v47  ;;  %v1667_v23 = vsel %vm993_vm0, %v2947_v59, 0  ;;  %v883_v27 = vpack.c.bf16 %v3549_v42, %v871_v14 }
  0x41   : > { %v1325_v6 = vrot.slane %v1302_v3, 1  ;;  %v2909_v56 = vsel %vm826_vm2, 1.0, %v3368_v16  ;;  %v1324_v30 = vsel %vm1319_vm9, %v3737_v51, %v1323_v28  ;;  %vm828_vm3 = vcmp.ne.s32.totalorder %v670_v4, 15 }
  0x42   : > { %v884_v39 = vpack.c.bf16 %v3565_v48, %v873_v13  ;;  %v1255_v60 = vrot.slane %v2909_v56, 6  ;;  %3139 = vmatprep.mubr.msk.bf16.mxu1 %vm968_vm6, %v883_v27  ;;  %v1292_v2 = vmul.f32 %v3853_v22, %v3562_v47  ;;  %v2910_v25 = vsel %vm828_vm3, 1.0, %v3368_v16 }
  0x43   : > { %v571_v59 = vadd.s32 96, %v3451_v5  ;;  %v573_v24 = vadd.s32 112, %v3451_v5  ;;  %v1303_v51 = vpack.c.bf16 %v1291_v53, %v1290_v33  ;;  %v1259_v3 = vrot.slane %v2910_v25, 6 }
  0x44   : > { %v3871_v0 = vsel %vm993_vm0, %v3498_v21, %v1255_v60  ;;  %v3875_v4 = vsel %vm993_vm0, %v1255_v60, %v3498_v21  ;;  %v1326_v14 = vsel %vm1319_vm9, %v1323_v28, %v1325_v6  ;;  %v574_v60 = vadd.s32 120, %v3451_v5  ;;  %v3891_v28 = vld [vmem:[%s4667_s3 + $0xc] sm:$0x3] }
  0x45   : > { %3140 = vmatmul.mubr.msk.bf16.gmra.mxu1 %vm968_vm6, %v884_v39  ;;  %v1293_v13 = vmul.f32 %v3871_v0, %v3565_v48  ;;  %v663_v27 = vand.u32 15, %v571_v59  ;;  %v677_v56 = vand.u32 15, %v573_v24  ;;  %v3883_v33 = vsel %vm993_vm0, %v3498_v21, %v1259_v3 }
  0x46   : > { %4703 = vst [vmem:[#allocation10_spill] sm:$0xff] %v3883_v33  ;;  %v1294_v53 = vmul.f32 %v3875_v4, %v3570_v50  ;;  %v1295_v25 = vmul.f32 %v3883_v33, %v3584_v55  ;;  %v1327_v5 = vrot.slane %v1303_v51, 1  ;;  %v1861_v43 = vsel %vm993_vm0, %v3747_v9, 0 }
  0x47   : > { %3150 = vmatmul.mubr.msk.bf16.vlgmr.msra.gmra.mxu0 %vm968_vm6, %v1324_v30  ;;  %v1304_v39 = vpack.c.bf16 %v1293_v13, %v1292_v2  ;;  %vm779_vm4 = vcmp.ne.s32.totalorder %v663_v27, 0  ;;  %vm781_vm7 = vcmp.ne.s32.totalorder %v677_v56, 0  ;;  %v684_v2 = vand.u32 15, %v574_v60 }
  0x48   : > { %3184 = vmatpush3.bf16.msra.mxu0 %v1667_v23  ;;  %3153 = vmatprep.mubr.msk.bf16.mxu0 %vm968_vm6, %v1326_v14  ;;  %v3904_v59 = vsel %vm779_vm4, 1.0, %v3368_v16  ;;  %v3907_v30 = vsel %vm781_vm7, 1.0, %v3368_v16  ;;  %v1477_v23 = vmul.f32 %v3492_v17, %v3702_v54  ;;  %v1305_v51 = vpack.c.bf16 %v1295_v25, %v1294_v53 }
  0x49   : > { %v1329_v24 = vrot.slane %v1304_v39, 1  ;;  %v875_v13 = vmul.f32 %v3904_v59, %v3570_v50  ;;  %v877_v27 = vmul.f32 %v3907_v30, %v3619_v31  ;;  %3282 = vmatprep.subr.msk.bf16.mxu0 %vm993_vm0, %v3891_v28  ;;  %vm830_vm8 = vcmp.ne.s32.totalorder %v684_v2, 15  ;;  %v463_v39 = vld [vmem:[%s3503_s30 + $0x78] sm:$0xff] }
  0x4a   : > { %v3921_v60 = vsel %vm993_vm0, %v1259_v3, %v3498_v21  ;;  %v1328_v35 = vsel %vm1319_vm9, %v1325_v6, %v1327_v5  ;;  %v2911_v20 = vsel %vm830_vm8, 1.0, %v3368_v16  ;;  %v1493_v2 = vpack.c.bf16 %v3673_v10, %v1477_v23 }
  0x4b   : > { %v885_v14 = vpack.c.bf16 %v3584_v55, %v875_v13  ;;  %v886_v56 = vpack.c.bf16 %v3625_v34, %v877_v27  ;;  %v1330_v53 = vsel %vm1319_vm9, %v1327_v5, %v1329_v24  ;;  %v3935_v3 = vrot.slane %v2911_v20, 6  ;;  %v464_v27 = vld [vmem:[%s3931_s28] sm:$0xff] }
  0x4c   : > { %v1296_v6 = vmul.f32 %v3921_v60, %v3619_v31  ;;  %v1479_v16 = vmul.f32 %v3559_v46, %v3605_v8  ;;  %v526_v25 = vrot.slane %v463_v39, 7  ;;  %v1331_v13 = vrot.slane %v1305_v51, 1 }
  0x4d   : > { %3143 = vmatprep.mubr.msk.bf16.mxu1 %vm968_vm6, %v885_v14  ;;  %v3946_v5 = vsel %vm993_vm0, %v3498_v21, %v3935_v3  ;;  %v1481_v20 = vmul.f32 %v3759_v29, %v3646_v49  ;;  %v3952_v23 = vstv %s468_s17  ;;  %v4704_v51 = vrot.slane %v3608_v11, 7 }
  0x4e   : > { %3144 = vmatmul.mubr.msk.bf16.gmra.mxu1 %vm968_vm6, %v886_v56  ;;  %v1297_v14 = vmul.f32 %v3946_v5, %v3625_v34  ;;  %v3968_v17 = vmul.f32 %v3952_v23, %v464_v27  ;;  %v1483_v11 = vmul.f32 %v3776_v1, %v3546_v41  ;;  %v1782_v27 = vmul.f32 %v3498_v21, %v3702_v54 }
  0x4f   : > { %3154 = vmatmul.mubr.msk.bf16.gmra.mxu0 %vm968_vm6, %v1328_v35  ;;  %3167 = vmatprep.mubr.msk.bf16.mxu1 %vm968_vm6, %v1493_v2  ;;  %v1298_v35 = vmul.f32 %v3935_v3, %v3643_v45  ;;  %v3962_v56 = vsel %vm474_vm1, %v4704_v51, %v526_v25  ;;  %v1494_v2 = vpack.c.bf16 %v3613_v19, %v1479_v16 }
  0x50   : > { %3157 = vmatprep.mubr.msk.bf16.mxu0 %vm968_vm6, %v1330_v53  ;;  %v1306_v39 = vpack.c.bf16 %v1297_v14, %v1296_v6  ;;  %v1643_v29 = vpack.c.bf16 %v3962_v56, %v3643_v45  ;;  %v1332_v53 = vsel %vm1319_vm9, %v1329_v24, %v1331_v13  ;;  %v1495_v37 = vpack.c.bf16 %v3651_v52, %v1481_v20 }
  0x51   : > { %v1307_v6 = vpack.c.bf16 %v1298_v35, %v1298_v35  ;;  %v4683_v16 = vrot.slane %v3968_v17, 7  ;;  %v1783_v24 = vmul.f32 %v3687_v32, %v3673_v10  ;;  %v1784_v9 = vmul.f32 %v3691_v36, %v3605_v8  ;;  %v3995_v10 = vld [vmem:[%s4667_s3 + $0xe] sm:$0x3] }
  0x52   : > { %v1333_v51 = vrot.slane %v1306_v39, 1  ;;  %v1648_v14 = vshll.u32 %v1643_v29, 16  ;;  %v1652_v33 = vshrl.u32 %v1643_v29, 16  ;;  %v1785_v29 = vmul.f32 %v3695_v38, %v3613_v19 }
  0x53   : > { %v3988_v35 = vsel %vm474_vm1, %v526_v25, %v4683_v16  ;;  %v1485_v54 = vmul.f32 %v3830_v63, %v3562_v47  ;;  %v1335_v25 = vrot.slane %v1307_v6, 1  ;;  %v4075_v16 = vmul.f32 %v3904_v59, %v3643_v45 }
  0x54   : > { %v1334_v20 = vsel %vm1319_vm9, %v1331_v13, %v1333_v51  ;;  %v1650_v1 = vrot.slane %v1648_v14, 1  ;;  %v1644_v13 = vpack.c.bf16 %v3988_v35, %v3988_v35  ;;  %v1800_v6 = vpack.c.bf16 %v1785_v29, %v1784_v9 }
  0x55   : > { %v4031_v9 = vmul.f32 %v3907_v30, %v3643_v45 }
  0x56   : > { %3168 = vmatmul.mubr.msk.bf16.vlgmr.msra.gmra.mxu1 %vm968_vm6, %v1494_v2  ;;  %v4006_v39 = vsel %vm899_vm5, %v3678_v58, %v1650_v1  ;;  %v4008_v2 = vor.u32 %v1652_v33, %v1650_v1  ;;  %v1656_v14 = vshll.u32 %v1644_v13, 16  ;;  %v1787_v58 = vmul.f32 %v3741_v57, %v3651_v52 }
  0x57   : > { %3158 = vmatmul.mubr.msk.bf16.gmra.mxu0 %vm968_vm6, %v1332_v53  ;;  %3202 = vmatpush3.bf16.msra.mxu1 %v1861_v43  ;;  %v1799_v53 = vpack.c.bf16 %v1783_v24, %v1782_v27  ;;  %v4014_v43 = vmul.f32 %v3559_v46, %v3646_v49  ;;  %v1497_v1 = vpack.c.bf16 %v3565_v48, %v1485_v54  ;;  %v4038_v13 = vrot.slane %v1800_v6, 1 }
  0x58   : > { %3161 = vmatprep.mubr.msk.bf16.mxu0 %vm968_vm6, %v1334_v20  ;;  %3171 = vmatprep.mubr.msk.bf16.mxu1 %vm968_vm6, %v1495_v37  ;;  %v1496_v20 = vpack.c.bf16 %v3549_v42, %v1483_v11  ;;  %v1786_v37 = vmul.f32 %v3732_v44, %v3646_v49  ;;  %v1658_v33 = vrot.slane %v1656_v14, 1  ;;  %v1336_v24 = vsel %vm1319_vm9, %v1333_v51, %v1335_v25 }
  0x59   : > { %3283 = vmatprep.subr.msk.bf16.mxu1 %vm993_vm0, %v3995_v10  ;;  %v1487_v46 = vmul.f32 %v3841_v15, %v3570_v50  ;;  %v1489_v11 = vmul.f32 %v3904_v59, %v3619_v31  ;;  %v1819_v54 = vrot.slane %v1799_v53, 1  ;;  %v1788_v25 = vmul.f32 %v3780_v18, %v3546_v41 }
  0x5a   : > { %v4035_v29 = vsel %vm899_vm5, %v4008_v2, %v1658_v33  ;;  %v1801_v51 = vpack.c.bf16 %v1787_v58, %v1786_v37  ;;  %v1789_v14 = vmul.f32 %v3817_v40, %v3549_v42  ;;  %v2027_v53 = vsel %vm993_vm0, %v3891_v28, 0 }
  0x5b   : > { %v1499_v6 = vpack.c.bf16 %v3625_v34, %v1489_v11  ;;  %v1500_v37 = vpack.c.bf16 %v3962_v56, %v4031_v9  ;;  %v1796_v58 = vmul.f32 %v3921_v60, %v3643_v45  ;;  %v1797_v33 = vmul.f32 %v3946_v5, %v3962_v56 }
  0x5c   : > { %v1802_v28 = vpack.c.bf16 %v1789_v14, %v1788_v25  ;;  %v4067_v11 = vmul.f32 %v3822_v61, %v3562_v47  ;;  %v4071_v9 = vmul.f32 %v3836_v7, %v3565_v48  ;;  %v4080_v25 = vmul.f32 %v3907_v30, %v3988_v35  ;;  %v4098_v30 = vld [vmem:[%s4667_s3 + $0x10] sm:$0x3] }
  0x5d   : > { %v1806_v27 = vpack.c.bf16 %v1797_v33, %v1796_v58  ;;  %v2281_v14 = vmul.f32 %v3498_v21, %v3605_v8  ;;  %v4086_v15 = vmul.f32 %v3853_v22, %v3570_v50  ;;  %v1998_v59 = vpack.c.bf16 %v3962_v56, %v4075_v16 }
  0x5e   : > { %3172 = vmatmul.mubr.msk.bf16.gmra.mxu1 %vm968_vm6, %v1496_v20  ;;  %v1498_v20 = vpack.c.bf16 %v3584_v55, %v1487_v46  ;;  %v1798_v46 = vmul.f32 %v3935_v3, %v3988_v35  ;;  %v2282_v58 = vmul.f32 %v3687_v32, %v3613_v19  ;;  %v2283_v33 = vmul.f32 %v3691_v36, %v3646_v49 }
  0x5f   : > { %3162 = vmatmul.mubr.msk.bf16.gmra.mxu0 %vm968_vm6, %v1336_v24  ;;  %3175 = vmatprep.mubr.msk.bf16.mxu1 %vm968_vm6, %v1497_v1  ;;  %v465_v1 = vld [vmem:[%s3931_s28 + $0x8] sm:$0xff]  ;;  %v4061_v24 = vrot.slane %v1801_v51, 1  ;;  %v4088_v63 = vrot.slane %v1806_v27, 1  ;;  %v2284_v27 = vmul.f32 %v3695_v38, %v3651_v52  ;;  %v4107_v32 = vrot.slane %v1802_v28, 1 }
  0x60   : > { %3185 = vmatprep.mubr.msk.bf16.mxu0 %vm968_vm6, %v3753_v12  ;;  %v1821_v12 = vsel %vm1319_vm9, %v1819_v54, %v4038_v13  ;;  %v1807_v54 = vpack.c.bf16 %v1798_v46, %v1798_v46  ;;  %v471_v51 = vmul.f32 %v3952_v23, %v465_v1  ;;  %v2298_v1 = vpack.c.bf16 %v2282_v58, %v2281_v14 }
  0x61   : > { %v2285_v46 = vmul.f32 %v3732_v44, %v3546_v41  ;;  %v4705_v36 = vrot.slane %v3968_v17, 7  ;;  %v2288_v14 = vmul.f32 %v3817_v40, %v3565_v48  ;;  %v2289_v58 = vmul.f32 %v3822_v61, %v3570_v50  ;;  %v4706_v61 = vld [vmem:[#allocation10_spill] sm:$0xff] }
  0x62   : > { %v1834_v21 = vrot.slane %v1807_v54, 1  ;;  %v548_v23 = vrot.slane %v471_v51, 7  ;;  %v2286_v54 = vmul.f32 %v3741_v57, %v3549_v42  ;;  %v2287_v51 = vmul.f32 %v3780_v18, %v3562_v47 }
  0x63   : > { %v2292_v57 = vmul.f32 %v3871_v0, %v3625_v34  ;;  %v2293_v18 = vmul.f32 %v3875_v4, %v3643_v45  ;;  %v2295_v45 = vmul.f32 %v3921_v60, %v3988_v35 }
  0x64   : > { %v4119_v49 = vsel %vm1319_vm9, %v4088_v63, %v1834_v21  ;;  %v4124_v38 = vsel %vm474_vm1, %v4705_v36, %v548_v23  ;;  %v556_v28 = vsel %vm474_vm1, %v548_v23, 0.0  ;;  %v2290_v21 = vmul.f32 %v3836_v7, %v3584_v55 }
  0x65   : > { %v2300_v23 = vpack.c.bf16 %v2286_v54, %v2285_v46  ;;  %v2301_v40 = vpack.c.bf16 %v2288_v14, %v2287_v51  ;;  %v2294_v36 = vmul.f32 %v4706_v61, %v3962_v56  ;;  %v2142_v46 = vpack.c.bf16 %v4124_v38, %v3988_v35 }
  0x66   : > { %3176 = vmatmul.mubr.msk.bf16.gmra.mxu1 %vm968_vm6, %v1498_v20  ;;  %v4111_v20 = vmul.f32 %v3871_v0, %v3584_v55 }
  0x67   : > { %3186 = vmatmul.mubr.msk.bf16.vlgmr.msra.gmra.mxu0 %vm968_vm6, %v3714_v62  ;;  %3179 = vmatprep.mubr.msk.bf16.mxu1 %vm968_vm6, %v1499_v6  ;;  %v2299_v6 = vpack.c.bf16 %v2284_v27, %v2283_v33  ;;  %v2291_v33 = vmul.f32 %v3853_v22, %v3619_v31  ;;  %v2143_v22 = vpack.c.bf16 %v556_v28, %v556_v28  ;;  %v2323_v0 = vrot.slane %v2301_v40, 1 }
  0x68   : > { %3220 = vmatpush3.bf16.msra.mxu0 %v2027_v53  ;;  %3189 = vmatprep.mubr.msk.bf16.mxu0 %vm968_vm6, %v3764_v26  ;;  %v2318_v53 = vrot.slane %v2298_v1, 1  ;;  %v2302_v1 = vpack.c.bf16 %v2290_v21, %v2289_v58  ;;  %v2304_v44 = vpack.c.bf16 %v2294_v36, %v2293_v18  ;;  %v2147_v58 = vshll.u32 %v2142_v46, 16 }
  0x69   : > { %3284 = vmatprep.subr.msk.bf16.mxu0 %vm993_vm0, %v4098_v30  ;;  %v2319_v17 = vrot.slane %v2299_v6, 1  ;;  %v2321_v6 = vrot.slane %v2300_v23, 1  ;;  %v2303_v7 = vpack.c.bf16 %v2292_v57, %v2291_v33  ;;  %v2151_v21 = vshrl.u32 %v2142_v46, 16  ;;  %v4708_v23 = vld [vmem:[#allocation4_spill] sm:$0xff] }
  0x6a   : > { %v2325_v54 = vrot.slane %v2302_v1, 1  ;;  %v2329_v60 = vrot.slane %v2304_v44, 1  ;;  %v2155_v35 = vshll.u32 %v2143_v22, 16  ;;  %v2297_v18 = vmul.f32 %v3935_v3, %v556_v28 }
  0x6b   : > { %v4148_v27 = vsel %vm1319_vm9, %v2318_v53, %v2319_v17  ;;  %v4707_v53 = vld [vmem:[#allocation3_spill] sm:$0xff]  ;;  %v4161_v51 = vsel %vm1319_vm9, %v2319_v17, %v2321_v6  ;;  %v2327_v14 = vrot.slane %v2303_v7, 1  ;;  %v2296_v17 = vmul.f32 %v3946_v5, %v4124_v38 }
  0x6c   : > { %v4169_v33 = vsel %vm1319_vm9, %v2323_v0, %v2325_v54  ;;  %v1823_v40 = vsel %vm1319_vm9, %v4038_v13, %v4061_v24  ;;  %v1803_v1 = vpack.c.bf16 %v4071_v9, %v4067_v11  ;;  %v2157_v44 = vrot.slane %v2155_v35, 1 }
  0x6d   : > { %v4172_v57 = vsel %vm1319_vm9, %v2325_v54, %v2327_v14  ;;  %v4183_v36 = vsel %vm1319_vm9, %v2327_v14, %v2329_v60  ;;  %v2305_v46 = vpack.c.bf16 %v2296_v17, %v2295_v45  ;;  %v2306_v22 = vpack.c.bf16 %v2297_v18, %v2297_v18  ;;  %v4710_v54 = vld [vmem:[#allocation2_spill] sm:$0xff]  ;;  %v4713_v18 = vld [vmem:[#allocation7_spill] sm:$0xff] }
  0x6e   : > { %3180 = vmatmul.mubr.msk.bf16.gmra.mxu1 %vm968_vm6, %v1500_v37  ;;  %v4166_v37 = vsel %vm1319_vm9, %v2321_v6, %v2323_v0  ;;  %v2166_v3 = vsel %vm993_vm0, %v3995_v10, 0  ;;  %v1804_v5 = vpack.c.bf16 %v4111_v20, %v4086_v15  ;;  %v1825_v13 = vsel %vm1319_vm9, %v4061_v24, %v4107_v32  ;;  %v4709_v0 = vld [vmem:[#allocation5_spill] sm:$0xff] }
  0x6f   : > { %3190 = vmatmul.mubr.msk.bf16.gmra.mxu0 %vm968_vm6, %v4707_v53  ;;  %3203 = vmatprep.mubr.msk.bf16.mxu1 %vm968_vm6, %v1821_v12  ;;  %v2149_v12 = vrot.slane %v2147_v58, 1  ;;  %v2331_v9 = vrot.slane %v2305_v46, 1  ;;  %v2333_v28 = vrot.slane %v2306_v22, 1  ;;  %v1826_v10 = vrot.slane %v1803_v1, 1 }
  0x70   : > { %3193 = vmatprep.mubr.msk.bf16.mxu0 %vm968_vm6, %v4708_v23  ;;  %v1795_v15 = vmul.f32 %v4706_v61, %v3625_v34  ;;  %v1976_v45 = vmul.f32 %v4710_v54, %v3605_v8  ;;  %v4711_v8 = vld [vmem:[#allocation6_spill] sm:$0xff]  ;;  %v2360_v17 = vsel %vm993_vm0, %v4098_v30, 0  ;;  %vm2561_vm0 = vcmask 27648  }
  0x71   : > { %v2150_v6 = vsel %vm899_vm5, %v4008_v2, %v2149_v12  ;;  %v2153_v7 = vor.u32 %v2151_v21, %v2149_v12  ;;  %v1794_v2 = vmul.f32 %v3875_v4, %v3619_v31  ;;  %v2332_v20 = vsel %vm1319_vm9, %v2329_v60, %v2331_v9 }
  0x72   : > { %v2334_v24 = vsel %vm1319_vm9, %v2331_v9, %v2333_v28  ;;  %v1828_v4 = vrot.slane %v1804_v5, 1  ;;  %v1827_v14 = vsel %vm1319_vm9, %v4107_v32, %v1826_v10  ;;  %v1992_v21 = vpack.c.bf16 %v3613_v19, %v1976_v45 }
  0x73   : > { %v2158_v11 = vsel %vm899_vm5, %v2153_v7, %v2157_v44  ;;  %v1805_v58 = vpack.c.bf16 %v1795_v15, %v1794_v2  ;;  %v1980_v35 = vmul.f32 %v4711_v8, %v3546_v41  ;;  %v1982_v41 = vmul.f32 %v4713_v18, %v3562_v47 }
  0x74   : > { %v1829_v61 = vsel %vm1319_vm9, %v1826_v10, %v1828_v4 }
  0x75   : > { %v1830_v60 = vrot.slane %v1805_v58, 1  ;;  %v1994_v12 = vpack.c.bf16 %v3549_v42, %v1980_v35  ;;  %v4714_v42 = vld [vmem:[#allocation8_spill] sm:$0xff]  ;;  %v1995_v30 = vpack.c.bf16 %v3565_v48, %v1982_v41  ;;  %v4716_v48 = vpack.c.bf16 %v4124_v38, %v4080_v25 }
  0x76   : > { %3204 = vmatmul.mubr.msk.bf16.vlgmr.msra.gmra.mxu1 %vm968_vm6, %v1823_v40 }
  0x77   : > { %3194 = vmatmul.mubr.msk.bf16.gmra.mxu0 %vm968_vm6, %v4709_v0  ;;  %3238 = vmatpush3.bf16.msra.mxu1 %v2166_v3  ;;  %v1831_v32 = vsel %vm1319_vm9, %v1828_v4, %v1830_v60  ;;  %v1833_v19 = vsel %vm1319_vm9, %v1830_v60, %v4088_v63  ;;  %v1984_v63 = vmul.f32 %v4714_v42, %v3570_v50 }
  0x78   : > { %3197 = vmatprep.mubr.msk.bf16.mxu0 %vm968_vm6, %v4006_v39  ;;  %3207 = vmatprep.mubr.msk.bf16.mxu1 %vm968_vm6, %v1825_v13 }
  0x79   : > { %v1996_v40 = vpack.c.bf16 %v3584_v55, %v1984_v63 }
  0x7e   : > { %3208 = vmatmul.mubr.msk.bf16.gmra.mxu1 %vm968_vm6, %v1827_v14 }
  0x7f   : > { %3198 = vmatmul.mubr.msk.bf16.gmra.mxu0 %vm968_vm6, %v4035_v29  ;;  %3211 = vmatprep.mubr.msk.bf16.mxu1 %vm968_vm6, %v1829_v61  ;;  %v4712_v29 = vpack.c.bf16 %v3651_v52, %v4014_v43  ;;  %v4715_v52 = vld [vmem:[#allocation9_spill] sm:$0xff] }
  0x80   : > { %3221 = vmatprep.mubr.msk.bf16.mxu0 %vm968_vm6, %v1992_v21  ;;  %v1986_v47 = vmul.f32 %v4715_v52, %v3619_v31 }
  0x82   : > { %v1997_v43 = vpack.c.bf16 %v3625_v34, %v1986_v47 }
  0x86   : > { %3212 = vmatmul.mubr.msk.bf16.gmra.mxu1 %vm968_vm6, %v1831_v32 }
  0x87   : > { %3222 = vmatmul.mubr.msk.bf16.vlgmr.msra.gmra.mxu0 %vm968_vm6, %v4712_v29  ;;  %3215 = vmatprep.mubr.msk.bf16.mxu1 %vm968_vm6, %v1833_v19 }
  0x88   : > { %3256 = vmatpush3.bf16.msra.mxu0 %v2360_v17  ;;  %3225 = vmatprep.mubr.msk.bf16.mxu0 %vm968_vm6, %v1994_v12 }
  0x8e   : > { %3216 = vmatmul.mubr.msk.bf16.gmra.mxu1 %vm968_vm6, %v4119_v49 }
  0x8f   : > { %3226 = vmatmul.mubr.msk.bf16.gmra.mxu0 %vm968_vm6, %v1995_v30  ;;  %3239 = vmatprep.mubr.msk.bf16.mxu1 %vm968_vm6, %v3714_v62 }
  0x90   : > { %3229 = vmatprep.mubr.msk.bf16.mxu0 %vm968_vm6, %v1996_v40 }
  0x96   : > { %3240 = vmatmul.mubr.msk.bf16.vlgmr.msra.gmra.mxu1 %vm968_vm6, %v3764_v26 }
  0x97   : > { %3230 = vmatmul.mubr.msk.bf16.gmra.mxu0 %vm968_vm6, %v1997_v43  ;;  %3243 = vmatprep.mubr.msk.bf16.mxu1 %vm968_vm6, %v4707_v53 }
  0x98   : > { %3233 = vmatprep.mubr.msk.bf16.mxu0 %vm968_vm6, %v1998_v59 }
  0x9e   : > { %3244 = vmatmul.mubr.msk.bf16.gmra.mxu1 %vm968_vm6, %v4708_v23 }
  0x9f   : > { %3234 = vmatmul.mubr.msk.bf16.gmra.mxu0 %vm968_vm6, %v4716_v48  ;;  %3247 = vmatprep.mubr.msk.bf16.mxu1 %vm968_vm6, %v4709_v0 }
  0xa0   : > { %3257 = vmatprep.mubr.msk.bf16.mxu0 %vm968_vm6, %v4148_v27 }
  0xa6   : > { %3248 = vmatmul.mubr.msk.bf16.gmra.mxu1 %vm968_vm6, %v4006_v39 }
  0xa7   : > { %3258 = vmatmul.mubr.msk.bf16.vlgmr.msra.gmra.mxu0 %vm968_vm6, %v4161_v51  ;;  %3251 = vmatprep.mubr.msk.bf16.mxu1 %vm968_vm6, %v2150_v6 }
  0xa8   : > { %3261 = vmatprep.mubr.msk.bf16.mxu0 %vm968_vm6, %v4166_v37 }
  0xae   : > { %3252 = vmatmul.mubr.msk.bf16.gmra.mxu1 %vm968_vm6, %v2158_v11 }
  0xaf   : > { %3262 = vmatmul.mubr.msk.bf16.gmra.mxu0 %vm968_vm6, %v4169_v33 }
  0xb0   : > { %3265 = vmatprep.mubr.msk.bf16.mxu0 %vm968_vm6, %v4172_v57 }
  0xb7   : > { %3266 = vmatmul.mubr.msk.bf16.gmra.mxu0 %vm968_vm6, %v4183_v36 }
  0xb8   : > { %3269 = vmatprep.mubr.msk.bf16.mxu0 %vm968_vm6, %v2332_v20 }
  0xbf   : > { %3270 = vmatmul.mubr.msk.bf16.gmra.mxu0 %vm968_vm6, %v2334_v24 }
  0xe5   : > { %v3123_v50 = vpop.f32.mrf.mxu1 }
  0xe7   : > { %v1063_v55 = vpop.f32.mrf.mxu1 }
  0xe9   : > { %v3124_v31 = vpop.f32.mrf.mxu1 }
  0xeb   : > { %v1066_v34 = vpop.f32.mrf.mxu1 }
  0xed   : > { %v3127_v62 = vpop.f32.mrf.mxu1 }
  0xef   : > { %v1079_v26 = vpop.f32.mrf.mxu1 }
  0xf1   : > { %v3128_v56 = vpop.f32.mrf.mxu1 }
  0xf3   : > { %v1082_v16 = vpop.f32.mrf.mxu1 }
  0xf5   : > { %v3133_v39 = vpop.f32.mrf.mxu1 }
  0xf7   : > { %v3115_v25 = vpop.f32.mrf.mxu0  ;;  %v1155_v59 = vpop.f32.mrf.mxu1 }
  0xf8   : > { %v1164_v49 = vadd.f32 %v3133_v39, %v3115_v25 }
  0xf9   : > { %v1031_v38 = vpop.f32.mrf.mxu0  ;;  %v3134_v27 = vpop.f32.mrf.mxu1 }
  0xfa   : > { %v1156_v53 = vadd.f32 %v1155_v59, %v1031_v38 }
  0xfb   : > { %v3116_v51 = vpop.f32.mrf.mxu0  ;;  %v1158_v23 = vpop.f32.mrf.mxu1 }
  0xfc   : > { %v1167_v37 = vadd.f32 %v3134_v27, %v3116_v51 }
  0xfd   : > { %v1034_v33 = vpop.f32.mrf.mxu0  ;;  %v3137_v57 = vpop.f32.mrf.mxu1 }
  0xfe   : > { %v1159_v1 = vadd.f32 %v1158_v23, %v1034_v33 }
  0xff   : > { %v3119_v36 = vpop.f32.mrf.mxu0  ;;  %v1171_v44 = vpop.f32.mrf.mxu1 }
 0x100   : > { %v1180_v6 = vadd.f32 %v3137_v57, %v3119_v36 }
 0x101   : > { %v1047_v7 = vpop.f32.mrf.mxu0  ;;  %v3138_v46 = vpop.f32.mrf.mxu1 }
 0x102   : > { %v1172_v22 = vadd.f32 %v1171_v44, %v1047_v7 }
 0x103   : > { %v3120_v3 = vpop.f32.mrf.mxu0  ;;  %v1174_v5 = vpop.f32.mrf.mxu1 }
 0x104   : > { %v1183_v13 = vadd.f32 %v3138_v46, %v3120_v3 }
 0x105   : > { %v1050_v11 = vpop.f32.mrf.mxu0  ;;  %v3141_v9 = vpop.f32.mrf.mxu1 }
 0x106   : > { %v1175_v28 = vadd.f32 %v1174_v5, %v1050_v11  ;;  %v1196_v2 = vadd.f32 %v3141_v9, %v3123_v50 }
 0x107   : > { %v3151_v0 = vpop.f32.mrf.mxu0  ;;  %v1187_v10 = vpop.f32.mrf.mxu1 }
 0x108   : > { %v4283_v15 = vadd.f32 %v3151_v0, %v1164_v49  ;;  %v1188_v20 = vadd.f32 %v1187_v10, %v1063_v55 }
 0x109   : > { %v1398_v24 = vpop.f32.mrf.mxu0  ;;  %v3142_v54 = vpop.f32.mrf.mxu1 }
 0x10a   : > { %v4285_v45 = vadd.f32 %v1398_v24, %v1156_v53  ;;  %v1199_v4 = vadd.f32 %v3142_v54, %v3124_v31 }
 0x10b   : > { %v3152_v14 = vpop.f32.mrf.mxu0  ;;  %v1190_v58 = vpop.f32.mrf.mxu1 }
 0x10c   : > { %v4287_v21 = vadd.f32 %v3152_v14, %v1167_v37  ;;  %v1191_v61 = vadd.f32 %v1190_v58, %v1066_v34 }
 0x10d   : > { %v1401_v60 = vpop.f32.mrf.mxu0 }
 0x10e   : > { %v4289_v8 = vadd.f32 %v1401_v60, %v1159_v1  ;;  %v3145_v35 = vpop.f32.mrf.mxu1 }
 0x10f   : > { %v3155_v32 = vpop.f32.mrf.mxu0  ;;  %v1212_v12 = vadd.f32 %v3145_v35, %v3127_v62 }
 0x110   : > { %v4291_v19 = vadd.f32 %v3155_v32, %v1180_v6  ;;  %v1203_v17 = vpop.f32.mrf.mxu1 }
 0x111   : > { %v1414_v29 = vpop.f32.mrf.mxu0  ;;  %v1204_v18 = vadd.f32 %v1203_v17, %v1079_v26 }
 0x112   : > { %v4293_v41 = vadd.f32 %v1414_v29, %v1172_v22  ;;  %v3146_v42 = vpop.f32.mrf.mxu1 }
 0x113   : > { %v3156_v63 = vpop.f32.mrf.mxu0  ;;  %v1215_v30 = vadd.f32 %v3146_v42, %v3128_v56 }
 0x114   : > { %v4295_v40 = vadd.f32 %v3156_v63, %v1183_v13  ;;  %v1206_v52 = vpop.f32.mrf.mxu1 }
 0x115   : > { %v1417_v47 = vpop.f32.mrf.mxu0  ;;  %v1207_v43 = vadd.f32 %v1206_v52, %v1082_v16 }
 0x116   : > { %v4297_v48 = vadd.f32 %v1417_v47, %v1175_v28  ;;  %v4299_v50 = vpop.f32.mrf.mxu1 }
 0x117   : > { %v3159_v55 = vpop.f32.mrf.mxu0 }
 0x118   : > { %v4301_v31 = vadd.f32 %v3159_v55, %v1196_v2  ;;  %v4303_v34 = vpop.f32.mrf.mxu1 }
 0x119   : > { %v1430_v62 = vpop.f32.mrf.mxu0 }
 0x11a   : > { %v4305_v26 = vadd.f32 %v1430_v62, %v1188_v20  ;;  %v4307_v39 = vpop.f32.mrf.mxu1 }
 0x11b   : > { %v3160_v56 = vpop.f32.mrf.mxu0 }
 0x11c   : > { %v4309_v25 = vadd.f32 %v3160_v56, %v1199_v4  ;;  %v4311_v59 = vpop.f32.mrf.mxu1 }
 0x11d   : > { %v1433_v16 = vpop.f32.mrf.mxu0 }
 0x11e   : > { %v4313_v49 = vadd.f32 %v1433_v16, %v1191_v61  ;;  %v4315_v38 = vpop.f32.mrf.mxu1 }
 0x11f   : > { %v3163_v27 = vpop.f32.mrf.mxu0 }
 0x120   : > { %v4317_v53 = vadd.f32 %v3163_v27, %v1212_v12  ;;  %v4319_v51 = vpop.f32.mrf.mxu1 }
 0x121   : > { %v1446_v23 = vpop.f32.mrf.mxu0 }
 0x122   : > { %v4321_v37 = vadd.f32 %v1446_v23, %v1204_v18  ;;  %v4323_v33 = vpop.f32.mrf.mxu1 }
 0x123   : > { %v3164_v57 = vpop.f32.mrf.mxu0 }
 0x124   : > { %v4325_v1 = vadd.f32 %v3164_v57, %v1215_v30  ;;  %v4327_v36 = vpop.f32.mrf.mxu1 }
 0x125   : > { %v1449_v44 = vpop.f32.mrf.mxu0 }
 0x126   : > { %v4329_v6 = vadd.f32 %v1449_v44, %v1207_v43  ;;  %v4331_v7 = vpop.f32.mrf.mxu1 }
 0x127   : > { %v3187_v46 = vpop.f32.mrf.mxu0 }
 0x128   : > { %v4333_v22 = vpop.f32.mrf.mxu1 }
 0x129   : > { %v4335_v3 = vpop.f32.mrf.mxu0 }
 0x12a   : > { %v4337_v5 = vpop.f32.mrf.mxu1 }
 0x12b   : > { %v4339_v13 = vpop.f32.mrf.mxu0 }
 0x12c   : > { %v4341_v11 = vpop.f32.mrf.mxu1 }
 0x12d   : > { %v4343_v9 = vpop.f32.mrf.mxu0 }
 0x12e   : > { %v4345_v28 = vpop.f32.mrf.mxu1 }
 0x12f   : > { %v4347_v2 = vpop.f32.mrf.mxu0 }
 0x130   : > { %v4349_v0 = vpop.f32.mrf.mxu1 }
 0x131   : > { %v4351_v10 = vpop.f32.mrf.mxu0 }
 0x132   : > { %v4353_v20 = vpop.f32.mrf.mxu1 }
 0x133   : > { %v4355_v24 = vpop.f32.mrf.mxu0 }
 0x134   : > { %v4357_v54 = vpop.f32.mrf.mxu1 }
 0x135   : > { %v4359_v4 = vpop.f32.mrf.mxu0 }
 0x136   : > { %v4361_v14 = vpop.f32.mrf.mxu1 }
 0x137   : > { %v4363_v58 = vpop.f32.mrf.mxu0 }
 0x138   : > { %v4365_v61 = vpop.f32.mrf.mxu1 }
 0x139   : > { %v4367_v60 = vpop.f32.mrf.mxu0 }
 0x13a   : > { %v4369_v35 = vpop.f32.mrf.mxu1 }
 0x13b   : > { %v4371_v32 = vpop.f32.mrf.mxu0 }
 0x13c   : > { %v4373_v12 = vpop.f32.mrf.mxu1 }
 0x13d   : > { %v4375_v17 = vpop.f32.mrf.mxu0 }
 0x13e   : > { %v4377_v29 = vpop.f32.mrf.mxu1 }
 0x13f   : > { %v4379_v18 = vpop.f32.mrf.mxu0 }
 0x140   : > { %v4381_v42 = vpop.f32.mrf.mxu1 }
 0x141   : > { %v4383_v63 = vpop.f32.mrf.mxu0 }
 0x142   : > { %v4385_v30 = vpop.f32.mrf.mxu1 }
 0x143   : > { %4717 = vst [vmem:[#allocation10_spill] sm:$0xff] %v4385_v30  ;;  %v4387_v52 = vpop.f32.mrf.mxu0 }
 0x144   : > { %4718 = vst [vmem:[#allocation3_spill] sm:$0xff] %v4387_v52  ;;  %v4389_v47 = vpop.f32.mrf.mxu1 }
 0x145   : > { %4719 = vst [vmem:[#allocation4_spill] sm:$0xff] %v4389_v47  ;;  %v4391_v43 = vpop.f32.mrf.mxu0 }
 0x146   : > { %4720 = vst [vmem:[#allocation5_spill] sm:$0xff] %v4391_v43  ;;  %v4393_v55 = vpop.f32.mrf.mxu1 }
 0x147   : > { %4721 = vst [vmem:[#allocation2_spill] sm:$0xff] %v4393_v55  ;;  %v3223_v62 = vpop.f32.mrf.mxu0 }
 0x148   : > { %v4395_v56 = vpop.f32.mrf.mxu1 }
 0x149   : > { %4722 = vst [vmem:[#allocation6_spill] sm:$0xff] %v4395_v56  ;;  %v4397_v16 = vpop.f32.mrf.mxu0 }
 0x14a   : > { %4723 = vst [vmem:[#allocation7_spill] sm:$0xff] %v4397_v16  ;;  %v4399_v27 = vpop.f32.mrf.mxu1 }
 0x14b   : > { %4724 = vst [vmem:[#allocation8_spill] sm:$0xff] %v4399_v27  ;;  %v4401_v23 = vpop.f32.mrf.mxu0 }
 0x14c   : > { %4725 = vst [vmem:[#allocation9_spill] sm:$0xff] %v4401_v23  ;;  %v4403_v57 = vpop.f32.mrf.mxu1 }
 0x14d   : > { %4726 = vst [vmem:[#allocation11_spill] sm:$0xff] %v4403_v57  ;;  %v4405_v44 = vpop.f32.mrf.mxu0 }
 0x14e   : > { %4727 = vst [vmem:[#allocation12_spill] sm:$0xff] %v4405_v44  ;;  %v4407_v52 = vpop.f32.mrf.mxu1 }
 0x14f   : > { %4728 = vst [vmem:[#allocation13_spill] sm:$0xff] %v4407_v52  ;;  %v4409_v47 = vpop.f32.mrf.mxu0 }
 0x150   : > { %4729 = vst [vmem:[#allocation14_spill] sm:$0xff] %v4409_v47  ;;  %v4411_v43 = vpop.f32.mrf.mxu1 }
 0x151   : > { %4730 = vst [vmem:[#allocation15_spill] sm:$0xff] %v4411_v43  ;;  %v4413_v55 = vpop.f32.mrf.mxu0 }
 0x152   : > { %v4415_v30 = vpop.f32.mrf.mxu1 }
 0x153   : > { %4731 = vst [vmem:[#allocation16_spill] sm:$0xff] %v4415_v30  ;;  %v4417_v56 = vpop.f32.mrf.mxu0  ;;  %v1629_v30 = vadd.f32 %v4299_v50, %v4283_v15  ;;  %v1632_v50 = vadd.f32 %v4327_v36, %v4297_v48  ;;  %v1642_v36 = vadd.f32 %v4353_v20, %v4325_v1 }
 0x154   : > { %4732 = vst [vmem:[#allocation17_spill] sm:$0xff] %v4417_v56  ;;  %v4419_v16 = vpop.f32.mrf.mxu1  ;;  %v1627_v56 = vadd.f32 %v4303_v34, %v4285_v45  ;;  %v1634_v45 = vadd.f32 %v4323_v33, %v4295_v40 }
 0x155   : > { %4733 = vst [vmem:[#allocation18_spill] sm:$0xff] %v4419_v16  ;;  %v4421_v27 = vpop.f32.mrf.mxu0  ;;  %v1768_v15 = vadd.f32 %v3187_v46, %v1629_v30  ;;  %v1771_v46 = vadd.f32 %v4359_v4, %v1632_v50  ;;  %v4743_v30 = vld [vmem:[#allocation5_spill] sm:$0xff]  ;;  %v4748_v50 = vld [vmem:[#allocation11_spill] sm:$0xff] }
 0x156   : > { %4734 = vst [vmem:[#allocation19_spill] sm:$0xff] %v4421_v27  ;;  %v3241_v23 = vpop.f32.mrf.mxu1  ;;  %v1630_v27 = vadd.f32 %v4307_v39, %v4287_v21  ;;  %v1637_v21 = vadd.f32 %v4331_v7, %v4301_v31  ;;  %v1638_v39 = vadd.f32 %v4337_v5, %v4309_v25  ;;  %v1636_v31 = vadd.f32 %v4341_v11, %v4313_v49 }
 0x157   : > { %v4423_v57 = vpop.f32.mrf.mxu0  ;;  %v1639_v25 = vadd.f32 %v4349_v0, %v4321_v37 }
 0x158   : > { %4735 = vst [vmem:[#allocation20_spill] sm:$0xff] %v4423_v57  ;;  %v4425_v44 = vpop.f32.mrf.mxu1  ;;  %v1628_v57 = vadd.f32 %v4311_v59, %v4289_v8  ;;  %v1766_v8 = vadd.f32 %v4335_v3, %v1627_v56  ;;  %v1776_v49 = vadd.f32 %v4363_v58, %v1637_v21  ;;  %v1777_v37 = vadd.f32 %v4371_v32, %v1638_v39  ;;  %v4740_v58 = vld [vmem:[#allocation3_spill] sm:$0xff]  ;;  %v4742_v32 = vld [vmem:[#allocation4_spill] sm:$0xff] }
 0x159   : > { %v4427_v52 = vpop.f32.mrf.mxu0  ;;  %v1778_v20 = vadd.f32 %v4383_v63, %v1639_v25  ;;  %v4746_v56 = vld [vmem:[#allocation8_spill] sm:$0xff] }
 0x15a   : > { %4736 = vst [vmem:[#allocation21_spill] sm:$0xff] %v4427_v52  ;;  %v4429_v47 = vpop.f32.mrf.mxu1  ;;  %v1633_v52 = vadd.f32 %v4315_v38, %v4291_v19  ;;  %v1769_v19 = vadd.f32 %v4339_v13, %v1630_v27  ;;  %v1767_v40 = vadd.f32 %v4343_v9, %v1628_v57  ;;  %v1641_v38 = vadd.f32 %v4345_v28, %v4317_v53  ;;  %v4513_v27 = vld [vmem:[%s4668_s4] ss:$0 sm:$0xff] }
 0x15b   : > { %4737 = vst [vmem:[#allocation22_spill] sm:$0xff] %v4429_v47  ;;  %v4431_v43 = vpop.f32.mrf.mxu0  ;;  %v1640_v53 = vadd.f32 %v4357_v54, %v4329_v6  ;;  %v1960_v13 = vadd.f32 %v4365_v61, %v1766_v8  ;;  %v1775_v9 = vadd.f32 %v4375_v17, %v1636_v31  ;;  %v4739_v54 = vld [vmem:[#allocation10_spill] sm:$0xff]  ;;  %v1781_v61 = vadd.f32 %v4740_v58, %v1642_v36  ;;  %v4751_v31 = vld [vmem:[#allocation13_spill] sm:$0xff] }
 0x15c   : > { %4738 = vst [vmem:[#allocation23_spill] sm:$0xff] %v4431_v43  ;;  %v4437_v16 = vpop.f32.mrf.mxu1  ;;  %v1631_v43 = vadd.f32 %v4319_v51, %v4293_v41  ;;  %v1635_v41 = vadd.f32 %v4333_v22, %v4305_v26  ;;  %v1772_v48 = vadd.f32 %v4347_v2, %v1633_v52  ;;  %v1773_v26 = vadd.f32 %v4355_v24, %v1634_v45 }
 0x15d   : > { %v4447_v47 = vpop.f32.mrf.mxu0  ;;  %v1962_v22 = vadd.f32 %v4361_v14, %v1768_v15  ;;  %v1963_v1 = vadd.f32 %v4369_v35, %v1769_v19  ;;  %v1961_v28 = vadd.f32 %v4373_v12, %v1767_v40  ;;  %v1965_v12 = vadd.f32 %v4742_v32, %v1771_v46  ;;  %v4747_v15 = vld [vmem:[#allocation9_spill] sm:$0xff]  ;;  %v4750_v40 = vld [vmem:[#allocation14_spill] sm:$0xff] }
 0x15e   : > { %v4455_v34 = vpop.f32.mrf.mxu1  ;;  %v1770_v33 = vadd.f32 %v4351_v10, %v1631_v43  ;;  %v1774_v5 = vadd.f32 %v4367_v60, %v1635_v41  ;;  %v1966_v2 = vadd.f32 %v4377_v29, %v1772_v48  ;;  %v1780_v10 = vadd.f32 %v4379_v18, %v1641_v38  ;;  %v4741_v60 = vld [vmem:[#allocation7_spill] sm:$0xff]  ;;  %v4744_v43 = vld [vmem:[#allocation2_spill] sm:$0xff]  ;;  %v4749_v41 = vld [vmem:[#allocation12_spill] sm:$0xff] }
 0x15f   : > { %v4463_v59 = vpop.f32.mrf.mxu0  ;;  %v2128_v6 = vadd.f32 %v3223_v62, %v1962_v22  ;;  %v1967_v4 = vadd.f32 %v4739_v54, %v1773_v26  ;;  %v2126_v35 = vadd.f32 %v4741_v60, %v1960_v13  ;;  %v1779_v52 = vadd.f32 %v4743_v30, %v1640_v53  ;;  %v4745_v62 = vld [vmem:[#allocation6_spill] sm:$0xff]  ;;  %v4755_v13 = vld [vmem:[#allocation19_spill] sm:$0xff] }
 0x160   : > { %v4471_v51 = vpop.f32.mrf.mxu1  ;;  %v1964_v24 = vadd.f32 %v4381_v42, %v1770_v33  ;;  %v1970_v18 = vadd.f32 %v4744_v43, %v1776_v49  ;;  %v1968_v63 = vadd.f32 %v4745_v62, %v1774_v5  ;;  %v1971_v42 = vadd.f32 %v4746_v56, %v1777_v37  ;;  %v4752_v33 = vld [vmem:[#allocation15_spill] sm:$0xff]  ;;  %v4754_v5 = vld [vmem:[#allocation17_spill] sm:$0xff] }
 0x161   : > { %v4479_v7 = vpop.f32.mrf.mxu0  ;;  %v2267_v17 = vadd.f32 %v3241_v23, %v2128_v6  ;;  %v2129_v45 = vadd.f32 %v4747_v15, %v1963_v1  ;;  %v1969_v21 = vadd.f32 %v4748_v50, %v1775_v9  ;;  %v2265_v23 = vadd.f32 %v4425_v44, %v2126_v35  ;;  %v4756_v9 = vld [vmem:[#allocation16_spill] sm:$0xff]  ;;  %v4757_v6 = vld [vmem:[#allocation18_spill] sm:$0xff]  ;;  %v4759_v60 = vld [vmem:[#allocation21_spill] sm:$0xff] }
 0x162   : > { %v4486_v3 = vpop.f32.mrf.mxu1  ;;  %v2127_v39 = vadd.f32 %v4749_v41, %v1961_v28  ;;  %v2132_v48 = vadd.f32 %v4750_v40, %v1966_v2  ;;  %v1974_v38 = vadd.f32 %v4751_v31, %v1780_v10  ;;  %v1972_v26 = vadd.f32 %v4752_v33, %v1778_v20  ;;  %v4753_v46 = vld [vmem:[#allocation22_spill] sm:$0xff] }
 0x163   : > { %v4492_v11 = vpop.f32.mrf.mxu0  ;;  %v2130_v36 = vadd.f32 %v4413_v55, %v1964_v24  ;;  %v2268_v49 = vadd.f32 %v4753_v46, %v2129_v45  ;;  %v2133_v37 = vadd.f32 %v4754_v5, %v1967_v4  ;;  %v2131_v1 = vadd.f32 %v4755_v13, %v1965_v12  ;;  %v4758_v4 = vld [vmem:[#allocation20_spill] sm:$0xff]  ;;  %v4760_v35 = vld [vmem:[#allocation23_spill] sm:$0xff] }
 0x164   : > { %v4497_v0 = vpop.f32.mrf.mxu1  ;;  %v1975_v28 = vadd.f32 %v4756_v9, %v1781_v61  ;;  %v1973_v2 = vadd.f32 %v4757_v6, %v1779_v52  ;;  %v2266_v10 = vadd.f32 %v4437_v16, %v2127_v39  ;;  %v2136_v58 = vadd.f32 %v4758_v4, %v1970_v18 }
 0x165   : > { %v2114_v14 = vpop.f32.mrf.mxu0  ;;  %v2134_v61 = vadd.f32 %v4759_v60, %v1968_v63  ;;  %v2137_v32 = vadd.f32 %v4760_v35, %v1971_v42  ;;  %v2135_v12 = vadd.f32 %v4447_v47, %v1969_v21  ;;  %v2271_v52 = vadd.f32 %v4455_v34, %v2132_v48 }
 0x166   : > { %v3249_v29 = vpop.f32.mrf.mxu1  ;;  %v2140_v56 = vadd.f32 %v4463_v59, %v1974_v38  ;;  %v4547_v18 = vadd.f32 %v4479_v7, %v1972_v26  ;;  %v2269_v63 = vadd.f32 %v4471_v51, %v2130_v36  ;;  %v2272_v47 = vadd.f32 %v4486_v3, %v2133_v37 }
 0x167   : > { %v3259_v57 = vpop.f32.mrf.mxu0  ;;  %v4555_v50 = vadd.f32 %v4492_v11, %v1975_v28  ;;  %v4557_v59 = vadd.f32 %v2114_v14, %v1973_v2  ;;  %v2270_v7 = vadd.f32 %v4497_v0, %v2131_v1  ;;  %v2275_v21 = vadd.f32 %v3249_v29, %v2136_v58 }
 0x168   : > { %v2461_v8 = vadd.f32 %v3259_v57, %v2267_v17  ;;  %v2234_v19 = vpop.f32.mrf.mxu1 }
 0x169   : > { %v2396_v25 = vpop.f32.mrf.mxu0  ;;  %v2273_v31 = vadd.f32 %v2234_v19, %v2134_v61 }
 0x16a   : > { %v2483_v53 = vadd.f32 %v4513_v27, %v2461_v8  ;;  %v2459_v22 = vadd.f32 %v2396_v25, %v2265_v23  ;;  %v3250_v44 = vpop.f32.mrf.mxu1 }
 0x16b   : > { %v3260_v55 = vpop.f32.mrf.mxu0  ;;  %v4563_v38 = vadd.f32 %v3250_v44, %v2137_v32 }
 0x16c   : > { %v3016_v20 = vpack.c.bf16 %v2483_v53, %v2483_v53  ;;  %v2481_v24 = vadd.f32 %v4513_v27, %v2459_v22  ;;  %v2462_v54 = vadd.f32 %v3260_v55, %v2268_v49  ;;  %v2237_v30 = vpop.f32.mrf.mxu1 }
 0x16d   : > { %v2399_v17 = vpop.f32.mrf.mxu0  ;;  %v4568_v29 = vadd.f32 %v2237_v30, %v2135_v12 }
 0x16e   : > { %2564 = vst.msk [vmem:[%s4533_s14 + $0x8] sm:$0xf] %vm2561_vm0, %v3016_v20  ;;  %v3014_v16 = vpack.c.bf16 %v2481_v24, %v2481_v24  ;;  %v2484_v43 = vadd.f32 %v4513_v27, %v2462_v54  ;;  %v2460_v62 = vadd.f32 %v2399_v17, %v2266_v10  ;;  %v3253_v23 = vpop.f32.mrf.mxu1 }
 0x16f   : > { %v3263_v42 = vpop.f32.mrf.mxu0  ;;  %v4570_v33 = vadd.f32 %v3253_v23, %v2140_v56 }
 0x170   : > { %2562 = vst.msk [vmem:[%s4533_s14] sm:$0xf] %vm2561_vm0, %v3014_v16  ;;  %v2498_v57 = vpack.c.bf16 %v2484_v43, %v2483_v53  ;;  %v3017_v15 = vpack.c.bf16 %v2484_v43, %v2484_v43  ;;  %v2482_v34 = vadd.f32 %v4513_v27, %v2460_v62  ;;  %v2465_v45 = vadd.f32 %v3263_v42, %v2271_v52  ;;  %v2250_v28 = vpop.f32.mrf.mxu1 }
 0x171   : > { %v2412_v51 = vpop.f32.mrf.mxu0 }
 0x172   : > { %2565 = vst.msk [vmem:[%s4533_s14 + $0xc] sm:$0xf] %vm2561_vm0, %v3017_v15  ;;  %v2580_v3 = vunpack.c.l.bf16 %v2498_v57  ;;  %v2581_v8 = vunpack.c.h.bf16 %v2498_v57  ;;  %v2497_v41 = vpack.c.bf16 %v2482_v34, %v2481_v24  ;;  %v3015_v39 = vpack.c.bf16 %v2482_v34, %v2482_v34  ;;  %v3254_v43 = vpop.f32.mrf.mxu1 }
 0x173   : > { %v2487_v40 = vadd.f32 %v4513_v27, %v2465_v45  ;;  %v2463_v48 = vadd.f32 %v2412_v51, %v2269_v63  ;;  %v3264_v11 = vpop.f32.mrf.mxu0  ;;  %v2277_v51 = vadd.f32 %v2250_v28, %v4547_v18  ;;  %v2280_v23 = vadd.f32 %v3254_v43, %v4555_v50 }
 0x174   : > { %v2597_v14 = vsel %vm968_vm6, %v2580_v3, 0.0  ;;  %v2633_v0 = vmul.f32 %v2580_v3, %v2580_v3  ;;  %2563 = vst.msk [vmem:[%s4533_s14 + $0x4] sm:$0xf] %vm2561_vm0, %v3015_v39  ;;  %v2578_v26 = vunpack.c.l.bf16 %v2497_v41  ;;  %v2579_v25 = vunpack.c.h.bf16 %v2497_v41 }
 0x175   : > { %v3020_v36 = vpack.c.bf16 %v2487_v40, %v2487_v40  ;;  %v2485_v46 = vadd.f32 %v4513_v27, %v2463_v48  ;;  %v2415_v49 = vpop.f32.mrf.mxu0  ;;  %v2599_v19 = vsel %vm968_vm6, %v2581_v8, 0.0  ;;  %v2634_v53 = vmul.f32 %v2581_v8, %v2581_v8 }
 0x176   : > { %v2466_v22 = vadd.f32 %v3264_v11, %v2272_v47  ;;  %v2464_v44 = vadd.f32 %v2415_v49, %v2270_v7  ;;  %v2594_v5 = vsel %vm968_vm6, %v2578_v26, 0.0  ;;  %v2595_v37 = vsel %vm968_vm6, %v2579_v25, 0.0 }
 0x177   : > { %v2631_v13 = vmul.f32 %v2578_v26, %v2578_v26  ;;  %v2632_v1 = vmul.f32 %v2579_v25, %v2579_v25  ;;  %2568 = vst.msk [vmem:[%s4533_s14 + $0x18] sm:$0xf] %vm2561_vm0, %v3020_v36  ;;  %v3267_v9 = vpop.f32.mrf.mxu0  ;;  %v2596_v6 = vadd.f32 %v2595_v37, %v2594_v5  ;;  %v3018_v2 = vpack.c.bf16 %v2485_v46, %v2485_v46 }
 0x178   : > { %v2488_v55 = vadd.f32 %v4513_v27, %v2466_v22  ;;  %v2486_v10 = vadd.f32 %v4513_v27, %v2464_v44  ;;  %v2650_v20 = vsel %vm968_vm6, %v2633_v0, 0.0  ;;  %v2469_v4 = vadd.f32 %v3267_v9, %v2275_v21 }
 0x179   : > { %v2647_v24 = vsel %vm968_vm6, %v2631_v13, 0.0  ;;  %v2648_v54 = vsel %vm968_vm6, %v2632_v1, 0.0  ;;  %v2428_v58 = vpop.f32.mrf.mxu0  ;;  %v2598_v60 = vadd.f32 %v2597_v14, %v2596_v6  ;;  %2566 = vst.msk [vmem:[%s4533_s14 + $0x10] sm:$0xf] %vm2561_vm0, %v3018_v2  ;;  %v2652_v7 = vsel %vm968_vm6, %v2634_v53, 0.0 }
 0x17a   : > { %v2649_v61 = vadd.f32 %v2648_v54, %v2647_v24  ;;  %v2500_v35 = vpack.c.bf16 %v2488_v55, %v2487_v40  ;;  %v3021_v32 = vpack.c.bf16 %v2488_v55, %v2488_v55  ;;  %v2499_v12 = vpack.c.bf16 %v2486_v10, %v2485_v46  ;;  %v2253_v24 = vpop.f32.mrf.mxu1 }
 0x17b   : > { %v3019_v17 = vpack.c.bf16 %v2486_v10, %v2486_v10  ;;  %v2491_v30 = vadd.f32 %v4513_v27, %v2469_v4  ;;  %v2467_v52 = vadd.f32 %v2428_v58, %v2273_v31  ;;  %v3268_v16 = vpop.f32.mrf.mxu0  ;;  %v2600_v47 = vadd.f32 %v2599_v19, %v2598_v60 }
 0x17c   : > { %v2651_v62 = vadd.f32 %v2650_v20, %v2649_v61  ;;  %2569 = vst.msk [vmem:[%s4533_s14 + $0x1c] sm:$0xf] %vm2561_vm0, %v3021_v32  ;;  %v2584_v56 = vunpack.c.l.bf16 %v2500_v35  ;;  %v2585_v63 = vunpack.c.h.bf16 %v2500_v35  ;;  %v2582_v42 = vunpack.c.l.bf16 %v2499_v12 }
 0x17d   : > { %2567 = vst.msk [vmem:[%s4533_s14 + $0x14] sm:$0xf] %vm2561_vm0, %v3019_v17  ;;  %v2583_v57 = vunpack.c.h.bf16 %v2499_v12  ;;  %v3024_v15 = vpack.c.bf16 %v2491_v30, %v2491_v30  ;;  %v2489_v34 = vadd.f32 %v4513_v27, %v2467_v52  ;;  %v2431_v45 = vpop.f32.mrf.mxu0  ;;  %v2470_v50 = vadd.f32 %v3268_v16, %v4563_v38 }
 0x17e   : > { %v2605_v21 = vsel %vm968_vm6, %v2584_v56, 0.0  ;;  %v2637_v3 = vmul.f32 %v2584_v56, %v2584_v56  ;;  %v2601_v8 = vsel %vm968_vm6, %v2582_v42, 0.0  ;;  %v2635_v41 = vmul.f32 %v2582_v42, %v2582_v42 }
 0x17f   : > { %v2636_v39 = vmul.f32 %v2583_v57, %v2583_v57  ;;  %2572 = vst.msk [vmem:[%s4533_s14 + $0x28] sm:$0xf] %vm2561_vm0, %v3024_v15  ;;  %v3271_v40 = vpop.f32.mrf.mxu0  ;;  %v2607_v48 = vsel %vm968_vm6, %v2585_v63, 0.0  ;;  %v2638_v31 = vmul.f32 %v2585_v63, %v2585_v63  ;;  %v2602_v11 = vadd.f32 %v2601_v8, %v2600_v47 }
 0x180   : > { %v2653_v14 = vadd.f32 %v2652_v7, %v2651_v62  ;;  %v2603_v0 = vsel %vm968_vm6, %v2583_v57, 0.0  ;;  %v2654_v18 = vsel %vm968_vm6, %v2635_v41, 0.0  ;;  %v3022_v26 = vpack.c.bf16 %v2489_v34, %v2489_v34 }
 0x181   : > { %v2444_v25 = vpop.f32.mrf.mxu0  ;;  %v2604_v36 = vadd.f32 %v2603_v0, %v2602_v11  ;;  %v2468_v49 = vadd.f32 %v2431_v45, %v4568_v29  ;;  %v2473_v19 = vadd.f32 %v3271_v40, %v4570_v33  ;;  %v2658_v53 = vsel %vm968_vm6, %v2637_v3, 0.0 }
 0x182   : > { %v2655_v46 = vadd.f32 %v2654_v18, %v2653_v14  ;;  %v2656_v22 = vsel %vm968_vm6, %v2636_v39, 0.0  ;;  %2570 = vst.msk [vmem:[%s4533_s14 + $0x20] sm:$0xf] %vm2561_vm0, %v3022_v26  ;;  %v2492_v44 = vadd.f32 %v4513_v27, %v2470_v50  ;;  %v2471_v5 = vadd.f32 %v2444_v25, %v2277_v51 }
 0x183   : > { %v3272_v37 = vpop.f32.mrf.mxu0  ;;  %v2606_v13 = vadd.f32 %v2605_v21, %v2604_v36  ;;  %v2490_v1 = vadd.f32 %v4513_v27, %v2468_v49  ;;  %v2495_v29 = vadd.f32 %v4513_v27, %v2473_v19  ;;  %v2660_v54 = vsel %vm968_vm6, %v2638_v31, 0.0 }
 0x184   : > { %v2657_v38 = vadd.f32 %v2656_v22, %v2655_v46  ;;  %v2502_v9 = vpack.c.bf16 %v2492_v44, %v2491_v30  ;;  %v3025_v33 = vpack.c.bf16 %v2492_v44, %v2492_v44  ;;  %v2493_v28 = vadd.f32 %v4513_v27, %v2471_v5 }
 0x185   : > { %v2474_v6 = vadd.f32 %v3272_v37, %v2280_v23  ;;  %v2501_v55 = vpack.c.bf16 %v2490_v1, %v2489_v34  ;;  %v3023_v10 = vpack.c.bf16 %v2490_v1, %v2490_v1  ;;  %v2608_v20 = vadd.f32 %v2607_v48, %v2606_v13  ;;  %v2447_v30 = vpop.f32.mrf.mxu0 }
 0x186   : > { %v2659_v2 = vadd.f32 %v2658_v53, %v2657_v38  ;;  %2573 = vst.msk [vmem:[%s4533_s14 + $0x2c] sm:$0xf] %vm2561_vm0, %v3025_v33  ;;  %v2588_v4 = vunpack.c.l.bf16 %v2502_v9  ;;  %v3028_v58 = vpack.c.bf16 %v2495_v29, %v2495_v29  ;;  %v3026_v60 = vpack.c.bf16 %v2493_v28, %v2493_v28 }
 0x187   : > { %2571 = vst.msk [vmem:[%s4533_s14 + $0x24] sm:$0xf] %vm2561_vm0, %v3023_v10  ;;  %v2586_v61 = vunpack.c.l.bf16 %v2501_v55  ;;  %v2587_v35 = vunpack.c.h.bf16 %v2501_v55  ;;  %v2496_v12 = vadd.f32 %v4513_v27, %v2474_v6  ;;  %v2278_v17 = vadd.f32 %v2253_v24, %v4557_v59 }
 0x188   : > { %v2661_v32 = vadd.f32 %v2660_v54, %v2659_v2  ;;  %2576 = vst.msk [vmem:[%s4533_s14 + $0x38] sm:$0xf] %vm2561_vm0, %v3028_v58  ;;  %2574 = vst.msk [vmem:[%s4533_s14 + $0x30] sm:$0xf] %vm2561_vm0, %v3026_v60  ;;  %v2589_v52 = vunpack.c.h.bf16 %v2502_v9  ;;  %v2641_v56 = vmul.f32 %v2588_v4, %v2588_v4  ;;  %v2613_v7 = vsel %vm968_vm6, %v2588_v4, 0.0 }
 0x189   : > { %v2609_v16 = vsel %vm968_vm6, %v2586_v61, 0.0  ;;  %v2639_v43 = vmul.f32 %v2586_v61, %v2586_v61  ;;  %v2640_v62 = vmul.f32 %v2587_v35, %v2587_v35  ;;  %v2504_v47 = vpack.c.bf16 %v2496_v12, %v2495_v29 }
 0x18a   : > { %v2610_v63 = vadd.f32 %v2609_v16, %v2608_v20  ;;  %v2611_v42 = vsel %vm968_vm6, %v2587_v35, 0.0  ;;  %v3029_v15 = vpack.c.bf16 %v2496_v12, %v2496_v12  ;;  %v2472_v59 = vadd.f32 %v2447_v30, %v2278_v17 }
 0x18b   : > { %v2662_v57 = vsel %vm968_vm6, %v2639_v43, 0.0  ;;  %v2642_v21 = vmul.f32 %v2589_v52, %v2589_v52  ;;  %v2664_v51 = vsel %vm968_vm6, %v2640_v62, 0.0  ;;  %v2615_v41 = vsel %vm968_vm6, %v2589_v52, 0.0 }
 0x18c   : > { %v2612_v34 = vadd.f32 %v2611_v42, %v2610_v63  ;;  %v2663_v45 = vadd.f32 %v2662_v57, %v2661_v32  ;;  %2577 = vst.msk [vmem:[%s4533_s14 + $0x3c] sm:$0xf] %vm2561_vm0, %v3029_v15  ;;  %v2494_v23 = vadd.f32 %v4513_v27, %v2472_v59  ;;  %v2666_v39 = vsel %vm968_vm6, %v2641_v56, 0.0 }
 0x18d   : > { %v2668_v14 = vsel %vm968_vm6, %v2642_v21, 0.0  ;;  %v2592_v0 = vunpack.c.l.bf16 %v2504_v47  ;;  %v2593_v25 = vunpack.c.h.bf16 %v2504_v47 }
 0x18e   : > { %v2614_v3 = vadd.f32 %v2613_v7, %v2612_v34  ;;  %v2665_v8 = vadd.f32 %v2664_v51, %v2663_v45  ;;  %v2503_v40 = vpack.c.bf16 %v2494_v23, %v2493_v28  ;;  %v3027_v48 = vpack.c.bf16 %v2494_v23, %v2494_v23 }
 0x18f   : > { %v2645_v19 = vmul.f32 %v2592_v0, %v2592_v0  ;;  %v2621_v37 = vsel %vm968_vm6, %v2592_v0, 0.0  ;;  %v2646_v13 = vmul.f32 %v2593_v25, %v2593_v25  ;;  %v2623_v9 = vsel %vm968_vm6, %v2593_v25, 0.0 }
 0x190   : > { %v2667_v31 = vadd.f32 %v2666_v39, %v2665_v8  ;;  %v2616_v11 = vadd.f32 %v2615_v41, %v2614_v3  ;;  %2575 = vst.msk [vmem:[%s4533_s14 + $0x34] sm:$0xf] %vm2561_vm0, %v3027_v48  ;;  %v2590_v18 = vunpack.c.l.bf16 %v2503_v40  ;;  %v2591_v26 = vunpack.c.h.bf16 %v2503_v40 }
 0x191   : > { %v2674_v33 = vsel %vm968_vm6, %v2645_v19, 0.0  ;;  %v2676_v2 = vsel %vm968_vm6, %v2646_v13, 0.0 }
 0x192   : > { %v2669_v50 = vadd.f32 %v2668_v14, %v2667_v31  ;;  %v2617_v27 = vsel %vm968_vm6, %v2590_v18, 0.0  ;;  %v2643_v36 = vmul.f32 %v2590_v18, %v2590_v18  ;;  %v2644_v46 = vmul.f32 %v2591_v26, %v2591_v26 }
 0x193   : > { %v2618_v49 = vadd.f32 %v2617_v27, %v2616_v11  ;;  %v2619_v53 = vsel %vm968_vm6, %v2591_v26, 0.0 }
 0x194   : > { %v2670_v22 = vsel %vm968_vm6, %v2643_v36, 0.0  ;;  %v2672_v38 = vsel %vm968_vm6, %v2644_v46, 0.0 }
 0x195   : > { %v2620_v44 = vadd.f32 %v2619_v53, %v2618_v49  ;;  %v2671_v5 = vadd.f32 %v2670_v22, %v2669_v50 }
 0x197   : > { %v2622_v1 = vadd.f32 %v2621_v37, %v2620_v44  ;;  %v2673_v29 = vadd.f32 %v2672_v38, %v2671_v5 }
 0x199   : > { %v2624_v28 = vadd.f32 %v2623_v9, %v2622_v1  ;;  %v2675_v6 = vadd.f32 %v2674_v33, %v2673_v29 }
 0x19b   : > { %v2625_v55 = vrot.slane %v2624_v28, 4  ;;  %v2677_v10 = vadd.f32 %v2676_v2, %v2675_v6 }
 0x19d   : > { %v2626_v20 = vadd.f32 %v2625_v55, %v2624_v28  ;;  %v2678_v24 = vrot.slane %v2677_v10, 4 }
 0x19f   : > { %v2627_v54 = vrot.slane %v2626_v20, 2  ;;  %v2679_v4 = vadd.f32 %v2678_v24, %v2677_v10 }
 0x1a1   : > { %v2628_v58 = vadd.f32 %v2627_v54, %v2626_v20  ;;  %v2680_v60 = vrot.slane %v2679_v4, 2 }
 0x1a3   : > { %v2629_v61 = vrot.slane %v2628_v58, 1  ;;  %v2681_v35 = vadd.f32 %v2680_v60, %v2679_v4 }
 0x1a5   : > { %v2682_v32 = vrot.slane %v2681_v35, 1  ;;  %v2630_v12 = vadd.f32 %v2629_v61, %v2628_v58  ;;  %2688 = sbr.rel (%p3009_p11) target bundleno = 428 (0x1ac), region = 44 }
 0x1a7   : > { %v2683_v17 = vadd.f32 %v2682_v32, %v2681_v35 }
 0x1a9   : > { %v2684_v30 = vsel %vm474_vm1, %v2630_v12, %v2683_v17 }
 0x1aa   : > { %vm2689_vm5 = vcmask 25600   ;;  %v3370_v52 = vmov 0.0  }
 0x1ab   : > { %2690 = vst.msk [vmem:[%s3471_s18] sm:$0x3] %vm2689_vm5, %v3370_v52 }
 0x1ac PF: > { %vm2693_vm6 = vcmask 25600  }
 0x1b2   : > { %v2691_v16 = vld [vmem:[%s3471_s18] sm:$0x3] }
 0x1b3   : > { %v2692_v43 = vadd.f32 %v2691_v16, %v2684_v30 }
 0x1b5   : > { %2694 = vst.msk [vmem:[%s3471_s18] sm:$0x3] %vm2693_vm6, %v2692_v43 }
 0x1b6 PF: > { %s17_s25 = sadd.s32 1, %s3366_s25   ;;  %s4761_s21 = smov %s3358_s23 }
 0x1b7   : > { %p14_p12 = scmp.ge.s32.totalorder %s17_s25, 6   ;;  %s4762_s22 = smov %s3362_s24 }
 0x1b8   : > { %s4763_s23 = smov %s4766_s26  ;;  %s4764_s24 = smov %s4770_s27 }
 0x1b9   :  { %16 = sbr.rel (!%p14_p12) target bundleno = 3 (0x3), region = 100 }

// kernel: residual_block_forward.4
= control target key start
LH: loop header
LB: loop body
LE: loop exit
PB: predicated region body
PF: predicated region fallthrough
CT: control target
= control target key end

     0   :  { %s3613_s27 = smov 0   ;;  %s3615_s28 = smov 0   ;;  %s4849_s0 = inlined_call_operand.vmem [shape: bf16[2,2,128,4], index: 0, kind: input, shape index: {}, may-alias: {0,1,2}]   ;;  %s4850_s1 = inlined_call_operand.vmem [shape: bf16[2,2,128,4], index: 1, kind: input, shape index: {}, may-alias: {0,1,2}]   ;;  %s4851_s2 = inlined_call_operand.vmem [shape: bf16[2,2,128,4], index: 2, kind: input, shape index: {}, may-alias: {0,1,2}]   ;;  %s4852_s3 = inlined_call_operand.vmem [shape: f32[1,4], index: 3, kind: input, shape index: {}]   ;;  %s4853_s4 = inlined_call_operand.vmem [shape: f32[1,4], index: 4, kind: input, shape index: {}]   ;;  %s4854_s5 = inlined_call_operand.vmem [shape: bf16[9,4,4], index: 5, kind: input, shape index: {}]   ;;  %s4855_s6 = inlined_call_operand.vmem [shape: f32[1,4], index: 6, kind: input, shape index: {}]   ;;  %s4856_s7 = inlined_call_operand.vmem [shape: bf16[2,2,128,4], index: 7, kind: output, shape index: {0}]   ;;  %s4857_s8 = inlined_call_operand.vmem [shape: f32[2,2,4], index: 8, kind: output, shape index: {1}]  }
   0x1   :  { %s3617_s29 = smov 0   ;;  %s3619_s30 = smov 0  }
   0x2   :  { %s3621_s9 = smov 0  }
   0x3 LB: > { %s28_s10 = sadd.s32 1, %s3555_s29  ;;  %s31_s11 = sadd.s32 1, %s3559_s30  ;;  %s3563_s9 = sphi %s3621_s9, %s19_s9   ;;  %s3559_s30 = sphi %s3619_s30, %s4954_s30   ;;  %s3555_s29 = sphi %s3617_s29, %s4953_s29   ;;  %s3551_s28 = sphi %s3615_s28, %s4952_s28   ;;  %s3547_s27 = sphi %s3613_s27, %s4951_s27  }
   0x4   : > { %p29_p0 = scmp.ge.s32.totalorder %s28_s10, 2  ;;  %p3020_p1 = scmp.ge.s32.totalorder %s3563_s9, 1 }
   0x5   : > { %p356_p2 = scmp.lt.s32.totalorder %s3563_s9, 5 }
   0x6   : > { %s4956_s10 = smov (%p29_p0, %s28_s10), 0  ;;  %s4958_s11 = smov (!%p29_p0, %s31_s11), %s3559_s30 }
   0x7   : > { %p357_p3 = pnand %p3020_p1, %p356_p2  ;;  %p33_p4 = scmp.ge.s32.totalorder %s4958_s11, 2 }
   0x9   : > { %s4960_s11 = smov (%p33_p4, %s4958_s11), 0  ;;  %360 = sbr.rel (%p357_p3) target bundleno = 450 (0x1c2), region = 48 }
   0xe   : > { %v3062_v0 = vld [vmem:[%s4854_s5 + $0x2] sm:$0x3]  ;;  %vm1141_vm0 = vcmask 1041408   ;;  %p438_p5 = scmp.lt.s32.totalorder %s3551_s28, 1  ;;  %p458_p6 = scmp.lt.s32.totalorder %s3547_s27, 1  ;;  %v706_v1 = vlaneseq  ;;  %v3565_v14 = vmov 1.0  }
   0xf   : > { %3473 = vmatprep.subr.msk.bf16.mxu1 %vm1141_vm0, %v3062_v0  ;;  %v1143_v2 = vsel %vm1141_vm0, %v3062_v0, 0  ;;  %3472 = vmatprep.subr.msk.bf16.mxu0 %vm1141_vm0, %v3062_v0  ;;  %v1035_v3 = vld [vmem:[%s4854_s5] sm:$0x3]  ;;  %v3079_v5 = vld [vmem:[%s4854_s5 + $0x4] sm:$0x3]  ;;  %s3692_s12 = sadd.s32 4294967295, %s3547_s27 }
  0x10   : > { %3471 = vmatpush3.bf16.msra.mxu1 %v1143_v2  ;;  %s4962_s28 = smov (!%p438_p5, %s3551_s28), 1  ;;  %3309 = vmatpush3.bf16.msra.mxu0 %v1143_v2  ;;  %v3655_v4 = vshrl.u32 %v706_v1, 7  ;;  %v3678_v9 = vsel %vm1141_vm0, %v1035_v3, 0  ;;  %v3683_v10 = vld [vmem:[%s4854_s5 + $0x6] sm:$0x3]  ;;  %v3695_v12 = vsel %vm1141_vm0, %v3079_v5, 0 }
  0x11   : > { %s459_s16 = scalar_select %p458_p6, %s3547_s27, 1  ;;  %3474 = vmatprep.subr.msk.bf16.mxu1 %vm1141_vm0, %v1035_v3  ;;  %3475 = vmatprep.subr.msk.bf16.mxu0 %vm1141_vm0, %v3079_v5  ;;  %v3697_v15 = vrot.slane %v3565_v14, 6  ;;  %v3703_v16 = vsel %vm1141_vm0, %v3683_v10, 0  ;;  %v3709_v18 = vld [vmem:[%s4854_s5 + $0x8] sm:$0x3]  ;;  %v3566_v20 = vmov 0.0  }
  0x12   : > { %s3664_s19 = sshll.u32 %s4962_s28, 5  ;;  %s3043_s20 = sshll.u32 %s4962_s28, 1  ;;  %v727_v6 = vand.u32 15, %v3655_v4  ;;  %v709_v7 = vadd.s32 16, %v3655_v4  ;;  %v3670_v8 = vadd.s32 8, %v3655_v4  ;;  %v3686_v11 = vadd.s32 24, %v3655_v4 }
  0x13   : > { %s3031_s21 = sshll.u32 %s459_s16, 4  ;;  %s3675_s24 = scalar_lea.vmem %s4857_s8, %s3043_s20  ;;  %v3721_v19 = vld [vmem:[%s4852_s3] ss:$0 sm:$0xff]  ;;  %v3728_v23 = vadd.s32 40, %v3655_v4  ;;  %vm622_vm3 = vcmask 1040384   ;;  %v3743_v28 = vsel %vm1141_vm0, %v3709_v18, 0 }
  0x14   : > { %s3689_s28 = sadd.s32 %s3031_s21, %s3664_s19  ;;  %vm915_vm1 = vcmp.ne.s32.totalorder %v727_v6, 0  ;;  %v741_v13 = vand.u32 15, %v709_v7  ;;  %p433_p7 = scmp.gt.s32.totalorder %s3692_s12, 0  ;;  %v734_v17 = vand.u32 15, %v3670_v8  ;;  %v748_v22 = vand.u32 15, %v3686_v11 }
  0x15   : > { %s3033_s13 = sshll.u32 %s3689_s28, 2  ;;  %v3724_v21 = vsel %vm915_vm1, 1.0, %v3566_v20  ;;  %p435_p8 = scmp.gt.s32.totalorder %s3547_s27, 0  ;;  %v3753_v35 = vld [vmem:[%s4853_s4] ss:$0 sm:$0xff]  ;;  %vm1116_vm5 = vcmask 31744  }
  0x16   : > { %s3716_s18 = scalar_lea.vmem %s4850_s1, %s3033_s13  ;;  %vm917_vm2 = vcmp.ne.s32.totalorder %v741_v13, 0  ;;  %p3023_p9 = scmp.lt.s32.totalorder %s3692_s12, 1  ;;  %vm1047_vm4 = vsmask.f32 7424  ;;  %vm3862_vm6 = vcmp.ne.s32.totalorder %v734_v17, 15  ;;  %vm3868_vm7 = vcmp.ne.s32.totalorder %v748_v22, 15 }
  0x17   : > { %v3731_v24 = vld [vmem:[%s3716_s18 + $0x10] sm:$0xff]   ;;  %v3222_v25 = vld [vmem:[%s3716_s18 + $0x18] sm:$0xff]   ;;  %v3223_v26 = vld [vmem:[%s3716_s18 + $0x20] sm:$0xff]   ;;  %s434_s22 = scalar_select %p433_p7, %s3692_s12, 0  ;;  %v3739_v27 = vsel %vm917_vm2, 1.0, %v3566_v20  ;;  %vm1467_vm8 = vcmask 1046528  }
  0x18   : > { %v3195_v29 = vunpack.c.h.bf16 %v3731_v24  ;;  %v3198_v30 = vunpack.c.l.bf16 %v3222_v25  ;;  %v3199_v31 = vunpack.c.h.bf16 %v3222_v25  ;;  %v3202_v32 = vunpack.c.l.bf16 %v3223_v26  ;;  %v3224_v33 = vld [vmem:[%s3716_s18 + $0x28] sm:$0xff]   ;;  %v3185_v34 = vld [vmem:[%s3716_s18] sm:$0xff]   ;;  %s436_s26 = scalar_select %p435_p8, 7, 0 }
  0x19   : > { %v3203_v36 = vunpack.c.h.bf16 %v3223_v26  ;;  %v3206_v37 = vunpack.c.l.bf16 %v3224_v33  ;;  %v3207_v38 = vunpack.c.h.bf16 %v3224_v33  ;;  %v3186_v39 = vunpack.c.l.bf16 %v3185_v34  ;;  %s4964_s22 = smov (!%p3023_p9, %s434_s22), 1  ;;  %s4711_s21 = scalar_lea.vmem %s4856_s7, %s3033_s13 }
  0x1a   : > { %v561_v40 = vmul.f32 %v3195_v29, %v3721_v19  ;;  %v562_v41 = vmul.f32 %v3198_v30, %v3721_v19  ;;  %v563_v42 = vmul.f32 %v3199_v31, %v3721_v19  ;;  %v564_v43 = vmul.f32 %v3202_v32, %v3721_v19  ;;  %s3022_s14 = sshll.u32 %s436_s26, 1  ;;  %s3028_s12 = sshll.u32 %s4964_s22, 4 }
  0x1b   : > { %v565_v44 = vmul.f32 %v3203_v36, %v3721_v19  ;;  %v566_v45 = vmul.f32 %v3206_v37, %v3721_v19  ;;  %v567_v46 = vmul.f32 %v3207_v38, %v3721_v19  ;;  %v3187_v47 = vunpack.c.h.bf16 %v3185_v34  ;;  %s445_s15 = sadd.s32 %s3028_s12, %s3022_s14  ;;  %p3159_p11 = scmp.ne.s32.totalorder %s3547_s27, 0 }
  0x1c   : > { %v577_v48 = vadd.f32 %v3753_v35, %v561_v40  ;;  %v578_v49 = vadd.f32 %v3753_v35, %v562_v41  ;;  %v579_v50 = vadd.f32 %v3753_v35, %v563_v42  ;;  %v580_v51 = vadd.f32 %v3753_v35, %v564_v43  ;;  %s447_s16 = sadd.s32 %s3664_s19, %s445_s15 }
  0x1d   : > { %v581_v52 = vadd.f32 %v3753_v35, %v565_v44  ;;  %v582_v53 = vadd.f32 %v3753_v35, %v566_v45  ;;  %v583_v54 = vadd.f32 %v3753_v35, %v567_v46  ;;  %v556_v55 = vmul.f32 %v3186_v39, %v3721_v19  ;;  %s3030_s17 = sshll.u32 %s447_s16, 2 }
  0x1e   : > { %v593_v56 = vmax.f32 %v577_v48, 0.0  ;;  %v594_v57 = vmax.f32 %v578_v49, 0.0  ;;  %v595_v58 = vmax.f32 %v579_v50, 0.0  ;;  %v596_v59 = vmax.f32 %v580_v51, 0.0  ;;  %s449_s22 = scalar_lea.vmem %s4849_s0, %s3030_s17  ;;  %v3220_v48 = vld [vmem:[%s3716_s18 + $0x8] sm:$0xff]  }
  0x1f   : > { %v597_v60 = vmax.f32 %v581_v52, 0.0  ;;  %v598_v61 = vmax.f32 %v582_v53, 0.0  ;;  %v599_v62 = vmax.f32 %v583_v54, 0.0  ;;  %v557_v63 = vmul.f32 %v3187_v47, %v3721_v19  ;;  %s497_s23 = scalar_select %p435_p8, 1, 0  ;;  %v3181_v34 = vld [vmem:[%s449_s22] sm:$0xff]  }
  0x20   : > { %v3775_v0 = vrot.slane %v593_v56, 7  ;;  %v656_v1 = vrot.slane %v594_v57, 7  ;;  %v658_v2 = vrot.slane %v595_v58, 7  ;;  %v660_v3 = vrot.slane %v596_v59, 7  ;;  %v3225_v53 = vld [vmem:[%s3716_s18 + $0x30] sm:$0xff]  }
  0x21   : > { %v662_v5 = vrot.slane %v597_v60, 7  ;;  %v664_v6 = vrot.slane %v598_v61, 7  ;;  %v3778_v7 = vrot.slane %v599_v62, 7  ;;  %v572_v13 = vadd.f32 %v3753_v35, %v556_v55  ;;  %s498_s25 = scvt.s32.f32 %s497_s23 }
  0x22   : > { %v3783_v14 = vsel %vm622_vm3, %v3775_v0, %v656_v1  ;;  %v3786_v25 = vsel %vm622_vm3, %v656_v1, %v658_v2  ;;  %v3789_v26 = vsel %vm622_vm3, %v658_v2, %v660_v3  ;;  %v573_v29 = vadd.f32 %v3753_v35, %v557_v63 }
  0x23   : > { %v3796_v30 = vsel %vm622_vm3, %v660_v3, %v662_v5  ;;  %v1040_v31 = vpack.c.bf16 %v3786_v25, %v3783_v14  ;;  %v3801_v32 = vsel %vm622_vm3, %v662_v5, %v664_v6  ;;  %v3805_v33 = vsel %vm622_vm3, %v664_v6, %v3778_v7 }
  0x24   : > { %v1041_v36 = vpack.c.bf16 %v3796_v30, %v3789_v26  ;;  %v1042_v37 = vpack.c.bf16 %v3805_v33, %v3801_v32  ;;  %v3182_v38 = vunpack.c.l.bf16 %v3181_v34  ;;  %v3183_v39 = vunpack.c.h.bf16 %v3181_v34 }
  0x25   : > { %v1080_v40 = vshll.u32 %v1040_v31, 16  ;;  %v1084_v41 = vshrl.u32 %v1040_v31, 16  ;;  %v588_v42 = vmax.f32 %v572_v13, 0.0  ;;  %v589_v43 = vmax.f32 %v573_v29, 0.0  ;;  %v3831_v29 = vld [vmem:[%s3716_s18 + $0x38] sm:$0xff]   ;;  %s465_s18 = sadd.s32 1, %s3547_s27 }
  0x26   : > { %v1088_v44 = vshll.u32 %v1041_v36, 16  ;;  %v1092_v45 = vshrl.u32 %v1041_v36, 16  ;;  %v1096_v46 = vshll.u32 %v1042_v37, 16  ;;  %v509_v47 = vmul.f32 %v3182_v38, %v3721_v19  ;;  %p4012_p10 = scmp.lt.s32.totalorder %s465_s18, 1 }
  0x27   : > { %v3815_v49 = vrot.slane %v1080_v40, 1  ;;  %v510_v50 = vmul.f32 %v3183_v39, %v3721_v19  ;;  %v521_v51 = vstv %s498_s25  ;;  %v645_v52 = vrot.slane %v588_v42, 7  ;;  %s4171_s25 = scalar_select %p458_p6, 1, 0 }
  0x28   : > { %v1090_v54 = vrot.slane %v1088_v44, 1  ;;  %v1098_v55 = vrot.slane %v1096_v46, 1  ;;  %v517_v56 = vadd.f32 %v3753_v35, %v509_v47  ;;  %v646_v57 = vrot.slane %v589_v43, 7  ;;  %s4966_s18 = smov (!%p4012_p10, %s465_s18), 1 }
  0x29   : > { %v1086_v58 = vor.u32 %v1084_v41, %v3815_v49  ;;  %v518_v59 = vadd.f32 %v3753_v35, %v510_v50  ;;  %v3190_v60 = vunpack.c.l.bf16 %v3220_v48  ;;  %v3191_v61 = vunpack.c.h.bf16 %v3220_v48  ;;  %s4968_s18 = smov (!%p4012_p10, %s4966_s18), 1 }
  0x2a   : > { %v1094_v62 = vor.u32 %v1092_v45, %v1090_v54  ;;  %v519_v63 = vmax.f32 %v517_v56, 0.0  ;;  %v3823_v1 = vsel %vm622_vm3, %v645_v52, %v646_v57  ;;  %v3210_v2 = vunpack.c.l.bf16 %v3225_v53  ;;  %s3037_s17 = sshll.u32 %s4968_s18, 4  ;;  %s606_s18 = scvt.s32.f32 %s4171_s25 }
  0x2b   : > { %v3826_v3 = vsel %vm1047_vm4, %v1086_v58, %v1090_v54  ;;  %v520_v5 = vmax.f32 %v518_v59, 0.0  ;;  %v558_v6 = vmul.f32 %v3190_v60, %v3721_v19  ;;  %v559_v13 = vmul.f32 %v3191_v61, %v3721_v19  ;;  %s474_s20 = sadd.s32 %s3037_s17, %s3664_s19 }
  0x2c   : > { %3318 = vmatprep.mubr.msk.bf16.mxu1 %vm1116_vm5, %v3826_v3  ;;  %v3836_v31 = vsel %vm1047_vm4, %v1094_v62, %v1098_v55  ;;  %v522_v34 = vmul.f32 %v521_v51, %v519_v63  ;;  %v3211_v36 = vunpack.c.h.bf16 %v3225_v53  ;;  %v568_v38 = vmul.f32 %v3210_v2, %v3721_v19  ;;  %s3039_s19 = sshll.u32 %s474_s20, 2 }
  0x2d   : > { %4875 = vst [vmem:[#allocation2_spill] sm:$0xff] %v3836_v31  ;;  %3319 = vmatmul.mubr.msk.bf16.vlgmr.msra.gmra.mxu1 %vm1116_vm5, %v3836_v31  ;;  %v523_v39 = vmul.f32 %v521_v51, %v520_v5  ;;  %v574_v40 = vadd.f32 %v3753_v35, %v558_v6  ;;  %v575_v41 = vadd.f32 %v3753_v35, %v559_v13  ;;  %v1100_v42 = vshrl.u32 %v1042_v37, 16  ;;  %s476_s23 = scalar_lea.vmem %s4851_s2, %s3039_s19 }
  0x2e   : > { %3327 = vmatpush3.bf16.msra.mxu1 %v3678_v9  ;;  %v623_v43 = vrot.slane %v522_v34, 7  ;;  %v569_v44 = vmul.f32 %v3211_v36, %v3721_v19  ;;  %v584_v45 = vadd.f32 %v3753_v35, %v568_v38  ;;  %v3214_v46 = vunpack.c.l.bf16 %v3831_v29 }
  0x2f   : > { %v624_v47 = vrot.slane %v523_v39, 7  ;;  %v590_v48 = vmax.f32 %v574_v40, 0.0  ;;  %v591_v50 = vmax.f32 %v575_v41, 0.0  ;;  %v3847_v53 = vor.u32 %v1100_v42, %v1098_v55  ;;  %3476 = vmatprep.subr.msk.bf16.mxu1 %vm1141_vm0, %v3683_v10 }
  0x30   : > { %v701_v51 = vsel %vm622_vm3, 0.0, %v623_v43  ;;  %v585_v37 = vadd.f32 %v3753_v35, %v569_v44  ;;  %v600_v9 = vmax.f32 %v584_v45, 0.0  ;;  %v570_v54 = vmul.f32 %v3214_v46, %v3721_v19 }
  0x31   : > { %v3855_v56 = vsel %vm622_vm3, %v623_v43, %v624_v47  ;;  %v3858_v58 = vsel %vm622_vm3, %v624_v47, %v645_v52  ;;  %v648_v59 = vrot.slane %v590_v48, 7  ;;  %v650_v60 = vrot.slane %v591_v50, 7 }
  0x32   : > { %v1036_v61 = vpack.c.bf16 %v3855_v56, %v701_v51  ;;  %v1037_v52 = vpack.c.bf16 %v3823_v1, %v3858_v58  ;;  %v601_v62 = vmax.f32 %v585_v37, 0.0  ;;  %v668_v63 = vrot.slane %v600_v9, 7 }
  0x33   : > { %v3876_v2 = vsel %vm622_vm3, %v646_v57, %v648_v59  ;;  %v3879_v8 = vsel %vm622_vm3, %v648_v59, %v650_v60  ;;  %v586_v17 = vadd.f32 %v3753_v35, %v570_v54  ;;  %v3194_v11 = vunpack.c.l.bf16 %v3731_v24 }
  0x34   : > { %v1049_v22 = vshrl.u32 %v1036_v61, 16  ;;  %v1051_v5 = vshll.u32 %v1036_v61, 16  ;;  %v1056_v6 = vshll.u32 %v1037_v52, 16  ;;  %v1060_v13 = vshrl.u32 %v1037_v52, 16 }
  0x35   : > { %v1038_v34 = vpack.c.bf16 %v3879_v8, %v3876_v2  ;;  %v3887_v36 = vsel %vm622_vm3, %v3778_v7, %v668_v63  ;;  %v670_v57 = vrot.slane %v601_v62, 7  ;;  %v602_v38 = vmax.f32 %v586_v17, 0.0 }
  0x36   : > { %v1053_v39 = vrot.slane %v1051_v5, 1  ;;  %v1058_v40 = vrot.slane %v1056_v6, 1  ;;  %v560_v41 = vmul.f32 %v3194_v11, %v3721_v19  ;;  %v1011_v42 = vmul.f32 %v3724_v21, %v701_v51 }
  0x37   : > { %v1064_v24 = vshll.u32 %v1038_v34, 16  ;;  %v3892_v43 = vsel %vm622_vm3, %v668_v63, %v670_v57  ;;  %v3894_v44 = vrot.slane %v602_v38, 7  ;;  %v1068_v45 = vshrl.u32 %v1038_v34, 16 }
  0x38   : > { %v1054_v46 = vor.u32 %v1053_v39, %v1049_v22  ;;  %v1062_v47 = vor.u32 %v1060_v13, %v1058_v40  ;;  %v1043_v7 = vpack.c.bf16 %v3892_v43, %v3887_v36  ;;  %v576_v48 = vadd.f32 %v3753_v35, %v560_v41 }
  0x39   : > { %v1066_v50 = vrot.slane %v1064_v24, 1  ;;  %v3901_v37 = vsel %vm622_vm3, %v670_v57, %v3894_v44  ;;  %v1027_v9 = vpack.c.bf16 %v3855_v56, %v1011_v42  ;;  %v3906_v54 = vmul.f32 %v3739_v27, %v3858_v58 }
  0x3a   : > { %v1059_v59 = vsel %vm1047_vm4, %v1054_v46, %v1058_v40  ;;  %v1104_v61 = vshll.u32 %v1043_v7, 16  ;;  %v1044_v52 = vpack.c.bf16 %v3901_v37, %v3901_v37  ;;  %v1108_v62 = vshrl.u32 %v1043_v7, 16 }
  0x3b   : > { %3310 = vmatprep.mubr.msk.bf16.mxu0 %vm1116_vm5, %v1059_v59  ;;  %v3913_v63 = vsel %vm1047_vm4, %v1062_v47, %v1066_v50  ;;  %v592_v17 = vmax.f32 %v576_v48, 0.0  ;;  %v1070_v11 = vor.u32 %v1068_v45, %v1066_v50  ;;  %v1028_v22 = vpack.c.bf16 %v3823_v1, %v3906_v54 }
  0x3c   : > { %3311 = vmatmul.mubr.msk.bf16.vlgmr.msra.gmra.mxu0 %vm1116_vm5, %v3913_v63  ;;  %v1106_v5 = vrot.slane %v1104_v61, 1  ;;  %v1112_v6 = vshll.u32 %v1044_v52, 16  ;;  %v3054_v13 = vsel %vm3862_vm6, 1.0, %v3566_v20  ;;  %v3055_v34 = vsel %vm3868_vm7, 1.0, %v3566_v20 }
  0x3d   : > { %3345 = vmatpush3.bf16.msra.mxu0 %v3695_v12  ;;  %v652_v57 = vrot.slane %v592_v17, 7  ;;  %v1383_v38 = vrot.slane %v3054_v13, 6  ;;  %v1387_v39 = vrot.slane %v3055_v34, 6  ;;  %v1430_v40 = vmul.f32 %v3697_v15, %v701_v51 }
  0x3e   : > { %v3929_v41 = vsel %vm1047_vm4, %v3847_v53, %v1106_v5  ;;  %v3931_v42 = vor.u32 %v1108_v62, %v1106_v5  ;;  %v1114_v55 = vrot.slane %v1112_v6, 1  ;;  %3477 = vmatprep.subr.msk.bf16.mxu0 %vm1141_vm0, %v3709_v18  ;;  %v762_v10 = vand.u32 15, %v3728_v23 }
  0x3f   : > { %4880 = vst [vmem:[#allocation3_spill] sm:$0xff] %v3929_v41  ;;  %3322 = vmatprep.mubr.msk.bf16.mxu1 %vm1116_vm5, %v3929_v41  ;;  %v3939_v12 = vsel %vm622_vm3, %v650_v60, %v652_v57  ;;  %v3943_v51 = vsel %vm622_vm3, %v652_v57, %v3775_v0  ;;  %v3947_v53 = vsel %vm1141_vm0, %v3697_v15, %v1383_v38  ;;  %v711_v62 = vadd.s32 32, %v3655_v4 }
  0x40   : > { %v3951_v24 = vsel %vm1141_vm0, %v1383_v38, %v3697_v15  ;;  %v1115_v18 = vsel %vm1047_vm4, %v3931_v42, %v1114_v55  ;;  %v1039_v23 = vpack.c.bf16 %v3943_v51, %v3939_v12  ;;  %v3959_v60 = vsel %vm1141_vm0, %v3697_v15, %v1387_v39 }
  0x41   : > { %v1431_v0 = vmul.f32 %v3947_v53, %v3855_v56  ;;  %3323 = vmatmul.mubr.msk.bf16.gmra.mxu1 %vm1116_vm5, %v1115_v18  ;;  %v1432_v45 = vmul.f32 %v3951_v24, %v3858_v58  ;;  %v1433_v46 = vmul.f32 %v3959_v60, %v3823_v1  ;;  %vm968_vm9 = vcmp.ne.s32.totalorder %v762_v10, 15 }
  0x42   : > { %v3970_v47 = vsel %vm1141_vm0, %v1387_v39, %v3697_v15  ;;  %v1072_v7 = vshll.u32 %v1039_v23, 16  ;;  %v1076_v48 = vshrl.u32 %v1039_v23, 16  ;;  %3328 = vmatprep.mubr.msk.bf16.mxu1 %vm1116_vm5, %v1027_v9  ;;  %v3056_v56 = vsel %vm968_vm9, 1.0, %v3566_v20 }
  0x43   : > { %v1447_v50 = vpack.c.bf16 %v1431_v0, %v1430_v40  ;;  %v1448_v59 = vpack.c.bf16 %v1433_v46, %v1432_v45  ;;  %v1391_v61 = vrot.slane %v3056_v56, 6  ;;  %v1434_v52 = vmul.f32 %v3970_v47, %v3876_v2 }
  0x44   : > { %v1074_v17 = vrot.slane %v1072_v7, 1  ;;  %v713_v6 = vadd.s32 48, %v3655_v4  ;;  %v714_v13 = vadd.s32 56, %v3655_v4  ;;  %v755_v57 = vand.u32 15, %v711_v62  ;;  %v4008_v7 = vld [vmem:[%s4854_s5 + $0xa] sm:$0x3] }
  0x45   : > { %v1468_v5 = vrot.slane %v1447_v50, 1  ;;  %v1469_v34 = vrot.slane %v1448_v59, 1  ;;  %v3981_v9 = vsel %vm1141_vm0, %v3697_v15, %v1391_v61  ;;  %v3985_v38 = vsel %vm1141_vm0, %v1391_v61, %v3697_v15 }
  0x46   : > { %v3989_v39 = vsel %vm1047_vm4, %v1070_v11, %v1074_v17  ;;  %v1078_v40 = vor.u32 %v1076_v48, %v1074_v17  ;;  %v1435_v55 = vmul.f32 %v3981_v9, %v3879_v8  ;;  %v769_v10 = vand.u32 15, %v713_v6 }
  0x47   : > { %4881 = vst [vmem:[#allocation4_spill] sm:$0xff] %v3989_v39  ;;  %3314 = vmatprep.mubr.msk.bf16.mxu0 %vm1116_vm5, %v3989_v39  ;;  %v1470_v18 = vsel %vm1467_vm8, %v1468_v5, %v1469_v34  ;;  %vm919_vm10 = vcmp.ne.s32.totalorder %v755_v57, 0  ;;  %v776_v23 = vand.u32 15, %v714_v13  ;;  %v1436_v0 = vmul.f32 %v3985_v38, %v3939_v12 }
  0x48   : > { %v4000_v45 = vsel %vm1047_vm4, %v1078_v40, %v3815_v49  ;;  %v1449_v11 = vpack.c.bf16 %v1435_v55, %v1434_v52  ;;  %v4003_v46 = vsel %vm919_vm10, 1.0, %v3566_v20  ;;  %vm921_vm11 = vcmp.ne.s32.totalorder %v769_v10, 0 }
  0x49   : > { %4882 = vst [vmem:[#allocation5_spill] sm:$0xff] %v4000_v45  ;;  %3315 = vmatmul.mubr.msk.bf16.gmra.mxu0 %vm1116_vm5, %v4000_v45  ;;  %3329 = vmatmul.mubr.msk.bf16.vlgmr.msra.gmra.mxu1 %vm1116_vm5, %v1028_v22  ;;  %v1015_v49 = vmul.f32 %v4003_v46, %v3876_v2  ;;  %v4025_v48 = vsel %vm921_vm11, 1.0, %v3566_v20  ;;  %vm970_vm12 = vcmp.ne.s32.totalorder %v776_v23, 15  ;;  %v716_v50 = vadd.s32 72, %v3655_v4 }
  0x4a   : > { %4884 = vst [vmem:[#allocation6_spill] sm:$0xff] %v4025_v48  ;;  %3363 = vmatpush3.bf16.msra.mxu1 %v3703_v16  ;;  %3346 = vmatprep.mubr.msk.bf16.mxu0 %vm1116_vm5, %v1470_v18  ;;  %v1471_v56 = vrot.slane %v1449_v11, 1  ;;  %v1017_v54 = vmul.f32 %v4025_v48, %v3939_v12  ;;  %v3057_v22 = vsel %vm970_vm12, 1.0, %v3566_v20  ;;  %v715_v59 = vadd.s32 64, %v3655_v4 }
  0x4b   : > { %v1029_v61 = vpack.c.bf16 %v3879_v8, %v1015_v49  ;;  %v1395_v52 = vrot.slane %v3057_v22, 6  ;;  %v790_v62 = vand.u32 15, %v716_v50  ;;  %v717_v17 = vadd.s32 80, %v3655_v4  ;;  %3478 = vmatprep.subr.msk.bf16.mxu1 %vm1141_vm0, %v4008_v7 }
  0x4c   : > { %v1472_v16 = vsel %vm1467_vm8, %v1469_v34, %v1471_v56  ;;  %v1030_v5 = vpack.c.bf16 %v3943_v51, %v1017_v54  ;;  %v783_v6 = vand.u32 15, %v715_v59  ;;  %v718_v13 = vadd.s32 88, %v3655_v4 }
  0x4d   : > { %3332 = vmatprep.mubr.msk.bf16.mxu1 %vm1116_vm5, %v1029_v61  ;;  %v4050_v57 = vsel %vm1141_vm0, %v3697_v15, %v1395_v52  ;;  %vm972_vm13 = vcmp.ne.s32.totalorder %v790_v62, 15  ;;  %v4054_v34 = vsel %vm1141_vm0, %v1395_v52, %v3697_v15  ;;  %v797_v40 = vand.u32 15, %v717_v17  ;;  %v4073_v61 = vld [vmem:[%s4854_s5 + $0xc] sm:$0x3] }
  0x4e   : > { %v1437_v55 = vmul.f32 %v4050_v57, %v3943_v51  ;;  %v3058_v10 = vsel %vm972_vm13, 1.0, %v3566_v20  ;;  %v1438_v18 = vmul.f32 %v4054_v34, %v3783_v14  ;;  %vm923_vm14 = vcmp.ne.s32.totalorder %v783_v6, 0 }
  0x4f   : > { %v1399_v23 = vrot.slane %v3058_v10, 6  ;;  %v4062_v11 = vsel %vm923_vm14, 1.0, %v3566_v20  ;;  %vm925_vm15 = vcmp.ne.s32.totalorder %v797_v40, 0  ;;  %v804_v49 = vand.u32 15, %v718_v13 }
  0x50   : > { %4885 = vst [vmem:[#allocation7_spill] sm:$0xff] %v4062_v11  ;;  %v1450_v50 = vpack.c.bf16 %v1437_v55, %v1436_v0  ;;  %v1019_v54 = vmul.f32 %v4062_v11, %v3783_v14  ;;  %v4067_v22 = vsel %vm925_vm15, 1.0, %v3566_v20  ;;  %v720_v59 = vadd.s32 104, %v3655_v4 }
  0x51   : > { %4886 = vst [vmem:[#allocation8_spill] sm:$0xff] %v4067_v22  ;;  %3347 = vmatmul.mubr.msk.bf16.vlgmr.msra.gmra.mxu0 %vm1116_vm5, %v1472_v16  ;;  %3333 = vmatmul.mubr.msk.bf16.gmra.mxu1 %vm1116_vm5, %v1030_v5  ;;  %v4082_v0 = vsel %vm1141_vm0, %v3697_v15, %v1399_v23  ;;  %v1021_v52 = vmul.f32 %v4067_v22, %v3789_v26  ;;  %vm974_vm1 = vcmp.ne.s32.totalorder %v804_v49, 15  ;;  %v719_v49 = vadd.s32 96, %v3655_v4 }
  0x52   : > { %v4088_v62 = vsel %vm1141_vm0, %v1399_v23, %v3697_v15  ;;  %3381 = vmatpush3.bf16.msra.mxu0 %v3743_v28  ;;  %v1473_v17 = vrot.slane %v1450_v50, 1  ;;  %v1439_v16 = vmul.f32 %v4082_v0, %v3786_v25  ;;  %v1031_v5 = vpack.c.bf16 %v3786_v25, %v1019_v54 }
  0x53   : > { %v3059_v6 = vsel %vm974_vm1, 1.0, %v3566_v20  ;;  %v1032_v13 = vpack.c.bf16 %v3796_v30, %v1021_v52  ;;  %v1440_v55 = vmul.f32 %v4088_v62, %v3789_v26  ;;  %v818_v10 = vand.u32 15, %v720_v59  ;;  %3479 = vmatprep.subr.msk.bf16.mxu0 %vm1141_vm0, %v4073_v61 }
  0x54   : > { %v1403_v40 = vrot.slane %v3059_v6, 6  ;;  %v1474_v28 = vsel %vm1467_vm8, %v1471_v56, %v1473_v17  ;;  %v1451_v23 = vpack.c.bf16 %v1439_v16, %v1438_v18  ;;  %3336 = vmatprep.mubr.msk.bf16.mxu1 %vm1116_vm5, %v1031_v5  ;;  %v721_v50 = vadd.s32 112, %v3655_v4 }
  0x55   : > { %3350 = vmatprep.mubr.msk.bf16.mxu0 %vm1116_vm5, %v1474_v28  ;;  %vm976_vm2 = vcmp.ne.s32.totalorder %v818_v10, 15  ;;  %v722_v56 = vadd.s32 120, %v3655_v4  ;;  %v811_v6 = vand.u32 15, %v719_v49  ;;  %v1625_v4 = vmul.f32 %v3724_v21, %v3858_v58 }
  0x56   : > { %v4107_v54 = vsel %vm1141_vm0, %v3697_v15, %v1403_v40  ;;  %v4111_v59 = vsel %vm1141_vm0, %v1403_v40, %v3697_v15  ;;  %v1475_v18 = vrot.slane %v1451_v23, 1  ;;  %v3060_v16 = vsel %vm976_vm2, 1.0, %v3566_v20 }
  0x57   : > { %4887 = vst [vmem:[#allocation9_spill] sm:$0xff] %v4107_v54  ;;  %4888 = vst [vmem:[#allocation10_spill] sm:$0xff] %v4111_v59  ;;  %v1441_v52 = vmul.f32 %v4107_v54, %v3796_v30  ;;  %v1407_v5 = vrot.slane %v3060_v16, 6  ;;  %v825_v28 = vand.u32 15, %v721_v50  ;;  %v832_v41 = vand.u32 15, %v722_v56 }
  0x58   : > { %v1476_v31 = vsel %vm1467_vm8, %v1473_v17, %v1475_v18  ;;  %v1442_v40 = vmul.f32 %v4111_v59, %v3801_v32  ;;  %vm927_vm6 = vcmp.ne.s32.totalorder %v811_v6, 0 }
  0x59   : > { %v1452_v10 = vpack.c.bf16 %v1441_v52, %v1440_v55  ;;  %3351 = vmatmul.mubr.msk.bf16.gmra.mxu0 %vm1116_vm5, %v1476_v31  ;;  %3337 = vmatmul.mubr.msk.bf16.gmra.mxu1 %vm1116_vm5, %v1032_v13  ;;  %v4127_v23 = vsel %vm1141_vm0, %v3697_v15, %v1407_v5  ;;  %vm929_vm7 = vcmp.ne.s32.totalorder %v825_v28, 0  ;;  %vm978_vm9 = vcmp.ne.s32.totalorder %v832_v41, 15 }
  0x5a   : > { %4889 = vst [vmem:[#allocation11_spill] sm:$0xff] %v4127_v23  ;;  %v1443_v17 = vmul.f32 %v4127_v23, %v3805_v33  ;;  %v4132_v55 = vsel %vm927_vm6, 1.0, %v3566_v20  ;;  %v4135_v50 = vsel %vm929_vm7, 1.0, %v3566_v20  ;;  %v3061_v56 = vsel %vm978_vm9, 1.0, %v3566_v20 }
  0x5b   : > { %v1477_v49 = vrot.slane %v1452_v10, 1  ;;  %v1023_v31 = vmul.f32 %v4132_v55, %v3801_v32  ;;  %v1025_v13 = vmul.f32 %v4135_v50, %v3887_v36  ;;  %v4144_v41 = vsel %vm1141_vm0, %v1407_v5, %v3697_v15 }
  0x5c   : > { %v1453_v16 = vpack.c.bf16 %v1443_v17, %v1442_v40  ;;  %v4147_v6 = vrot.slane %v3061_v56, 6  ;;  %v1444_v23 = vmul.f32 %v4144_v41, %v3887_v36  ;;  %v1641_v40 = vpack.c.bf16 %v3823_v1, %v1625_v4  ;;  %v4173_v56 = vld [vmem:[%s476_s23] sm:$0xff]  }
  0x5d   : > { %v1478_v52 = vsel %vm1467_vm8, %v1475_v18, %v1477_v49  ;;  %v1033_v28 = vpack.c.bf16 %v3805_v33, %v1023_v31  ;;  %v1034_v10 = vpack.c.bf16 %v3892_v43, %v1025_v13  ;;  %v1627_v4 = vmul.f32 %v3739_v27, %v3876_v2 }
  0x5e   : > { %3354 = vmatprep.mubr.msk.bf16.mxu0 %vm1116_vm5, %v1478_v52  ;;  %v1479_v20 = vrot.slane %v1453_v16, 1  ;;  %v4160_v18 = vsel %vm1141_vm0, %v3697_v15, %v4147_v6  ;;  %v1446_v5 = vmul.f32 %v4147_v6, %v3901_v37  ;;  %v3215_v16 = vunpack.c.h.bf16 %v3831_v29 }
  0x5f   : > { %3340 = vmatprep.mubr.msk.bf16.mxu1 %vm1116_vm5, %v1033_v28  ;;  %v1445_v17 = vmul.f32 %v4160_v18, %v3892_v43  ;;  %v3218_v54 = vunpack.c.l.bf16 %v4173_v56 }
  0x60   : > { %v1480_v31 = vsel %vm1467_vm8, %v1477_v49, %v1479_v20  ;;  %v1455_v13 = vpack.c.bf16 %v1446_v5, %v1446_v5  ;;  %v1629_v5 = vmul.f32 %v4003_v46, %v3939_v12  ;;  %v571_v59 = vmul.f32 %v3215_v16, %v3721_v19 }
  0x61   : > { %3355 = vmatmul.mubr.msk.bf16.gmra.mxu0 %vm1116_vm5, %v1480_v31  ;;  %3341 = vmatmul.mubr.msk.bf16.gmra.mxu1 %vm1116_vm5, %v1034_v10  ;;  %v1454_v52 = vpack.c.bf16 %v1445_v17, %v1444_v23  ;;  %v1930_v23 = vmul.f32 %v3697_v15, %v3858_v58  ;;  %v1931_v10 = vmul.f32 %v3947_v53, %v3823_v1 }
  0x62   : > { %v1483_v28 = vrot.slane %v1455_v13, 1  ;;  %3364 = vmatprep.mubr.msk.bf16.mxu1 %vm1116_vm5, %v1641_v40  ;;  %v1642_v17 = vpack.c.bf16 %v3879_v8, %v1627_v4  ;;  %v587_v40 = vadd.f32 %v3753_v35, %v571_v59  ;;  %v611_v31 = vmul.f32 %v3218_v54, %v3721_v19 }
  0x63   : > { %v1481_v49 = vrot.slane %v1454_v52, 1  ;;  %v2009_v52 = vsel %vm1141_vm0, %v4008_v7, 0  ;;  %v1947_v16 = vpack.c.bf16 %v1931_v10, %v1930_v23  ;;  %v1934_v58 = vmul.f32 %v3970_v47, %v3939_v12 }
  0x64   : > { %v1643_v1 = vpack.c.bf16 %v3943_v51, %v1629_v5  ;;  %v613_v4 = vadd.f32 %v3753_v35, %v611_v31  ;;  %v1935_v59 = vmul.f32 %v3981_v9, %v3943_v51  ;;  %v1631_v54 = vmul.f32 %v4025_v48, %v3783_v14 }
  0x65   : > { %v1482_v29 = vsel %vm1467_vm8, %v1479_v20, %v1481_v49  ;;  %v1484_v13 = vsel %vm1467_vm8, %v1481_v49, %v1483_v28  ;;  %v603_v20 = vmax.f32 %v587_v40, 0.0  ;;  %v1932_v7 = vmul.f32 %v3951_v24, %v3876_v2  ;;  %v4213_v28 = vld [vmem:[%s4854_s5 + $0xe] sm:$0x3] }
  0x66   : > { %3358 = vmatprep.mubr.msk.bf16.mxu0 %vm1116_vm5, %v1482_v29  ;;  %v4206_v29 = vstv %s606_s18  ;;  %v4217_v49 = vmul.f32 %v3739_v27, %v3939_v12  ;;  %v615_v23 = vmax.f32 %v613_v4, 0.0  ;;  %v1933_v10 = vmul.f32 %v3959_v60, %v3879_v8 }
  0x67   : > { %v674_v5 = vrot.slane %v603_v20, 7  ;;  %v1949_v40 = vpack.c.bf16 %v1935_v59, %v1934_v58  ;;  %v1633_v27 = vmul.f32 %v4062_v11, %v3789_v26  ;;  %v2175_v20 = vsel %vm1141_vm0, %v4073_v61, 0 }
  0x68   : > { %4890 = vst [vmem:[#allocation12_spill] sm:$0xff] %v4217_v49  ;;  %v1637_v31 = vmul.f32 %v4132_v55, %v3887_v36  ;;  %v4333_v49 = vmul.f32 %v4088_v62, %v3801_v32 }
  0x69   : > { %3359 = vmatmul.mubr.msk.bf16.gmra.mxu0 %vm1116_vm5, %v1484_v13  ;;  %3365 = vmatmul.mubr.msk.bf16.vlgmr.msra.gmra.mxu1 %vm1116_vm5, %v1642_v17  ;;  %v4232_v17 = vsel %vm622_vm3, %v3894_v44, %v674_v5  ;;  %v4235_v13 = vmul.f32 %v4206_v29, %v615_v23  ;;  %v1645_v59 = vpack.c.bf16 %v3796_v30, %v1633_v27 }
  0x6a   : > { %3399 = vmatpush3.bf16.msra.mxu1 %v2009_v52  ;;  %3382 = vmatprep.mubr.msk.bf16.mxu0 %vm1116_vm5, %v3913_v63  ;;  %v1791_v63 = vpack.c.bf16 %v4232_v17, %v3901_v37  ;;  %v1644_v52 = vpack.c.bf16 %v3786_v25, %v1631_v54  ;;  %v1635_v23 = vmul.f32 %v4067_v22, %v3801_v32 }
  0x6b   : > { %3368 = vmatprep.mubr.msk.bf16.mxu1 %vm1116_vm5, %v1643_v1  ;;  %3480 = vmatprep.subr.msk.bf16.mxu1 %vm1141_vm0, %v4213_v28  ;;  %v4868_v58 = vrot.slane %v4235_v13, 7  ;;  %v1948_v1 = vpack.c.bf16 %v1933_v10, %v1932_v7  ;;  %v4257_v7 = vmul.f32 %v4135_v50, %v3901_v37  ;;  %v4263_v27 = vmul.f32 %v3724_v21, %v3876_v2 }
  0x6c   : > { %v1796_v4 = vshll.u32 %v1791_v63, 16  ;;  %v1800_v44 = vshrl.u32 %v1791_v63, 16  ;;  %v4268_v63 = vld [vmem:[%s4854_s5 + $0x10] sm:$0x3]  ;;  %v4277_v22 = vmul.f32 %v3985_v38, %v3783_v14 }
  0x6d   : > { %v4253_v54 = vsel %vm622_vm3, %v674_v5, %v4868_v58  ;;  %v1967_v5 = vrot.slane %v1947_v16, 1  ;;  %v1968_v58 = vrot.slane %v1948_v1, 1  ;;  %v4289_v16 = vmul.f32 %v4050_v57, %v3786_v25 }
  0x6e   : > { %v1798_v61 = vrot.slane %v1796_v4, 1  ;;  %v1792_v10 = vpack.c.bf16 %v4253_v54, %v4253_v54  ;;  %v4273_v4 = vrot.slane %v1949_v40, 1  ;;  %v1646_v40 = vpack.c.bf16 %v3805_v33, %v1635_v23 }
  0x6f   : > { %v3219_v1 = vunpack.c.h.bf16 %v4173_v56  ;;  %v1945_v23 = vmul.f32 %v4160_v18, %v4232_v17  ;;  %v1946_v56 = vmul.f32 %v4147_v6, %v4253_v54 }
  0x70   : > { %v4283_v21 = vsel %vm1047_vm4, %v3931_v42, %v1798_v61  ;;  %v4285_v11 = vor.u32 %v1800_v44, %v1798_v61  ;;  %v1648_v42 = vpack.c.bf16 %v4232_v17, %v4257_v7  ;;  %v1944_v61 = vmul.f32 %v4144_v41, %v3901_v37 }
  0x71   : > { %3383 = vmatmul.mubr.msk.bf16.vlgmr.msra.gmra.mxu0 %vm1116_vm5, %v3989_v39  ;;  %3369 = vmatmul.mubr.msk.bf16.gmra.mxu1 %vm1116_vm5, %v1644_v52  ;;  %v1804_v39 = vshll.u32 %v1792_v10, 16  ;;  %v1647_v52 = vpack.c.bf16 %v3892_v43, %v1637_v31  ;;  %v4306_v31 = vmul.f32 %v4054_v34, %v3789_v26  ;;  %v4318_v7 = vsel %vm1467_vm8, %v1968_v58, %v4273_v4 }
  0x72   : > { %3417 = vmatpush3.bf16.msra.mxu0 %v2175_v20  ;;  %3386 = vmatprep.mubr.msk.bf16.mxu0 %vm1116_vm5, %v4000_v45  ;;  %v1950_v10 = vpack.c.bf16 %v4289_v16, %v4277_v22  ;;  %v4328_v44 = vmul.f32 %v4082_v0, %v3796_v30  ;;  %v1954_v45 = vpack.c.bf16 %v1945_v23, %v1944_v61  ;;  %v4891_v23 = vld [vmem:[#allocation2_spill] sm:$0xff] }
  0x73   : > { %3372 = vmatprep.mubr.msk.bf16.mxu1 %vm1116_vm5, %v1645_v59  ;;  %3481 = vmatprep.subr.msk.bf16.mxu0 %vm1141_vm0, %v4268_v63  ;;  %v1806_v20 = vrot.slane %v1804_v39, 1  ;;  %v1969_v59 = vsel %vm1467_vm8, %v1967_v5, %v1968_v58  ;;  %v4324_v5 = vmul.f32 %v4132_v55, %v3901_v37  ;;  %v1955_v48 = vpack.c.bf16 %v1946_v56, %v1946_v56 }
  0x74   : > { %v4339_v22 = vmul.f32 %v4135_v50, %v4253_v54  ;;  %v2429_v55 = vmul.f32 %v3697_v15, %v3876_v2  ;;  %v2430_v61 = vmul.f32 %v3947_v53, %v3879_v8  ;;  %v4356_v15 = vsel %vm1141_vm0, %v4213_v28, 0  ;;  %v4892_v53 = vld [vmem:[#allocation9_spill] sm:$0xff] }
  0x75   : > { %v4314_v39 = vsel %vm1047_vm4, %v4285_v11, %v1806_v20  ;;  %v612_v20 = vmul.f32 %v3219_v1, %v3721_v19  ;;  %v2146_v58 = vpack.c.bf16 %v4232_v17, %v4324_v5  ;;  %v4346_v19 = vrot.slane %v1954_v45, 1 }
  0x76   : > { %v1982_v16 = vrot.slane %v1955_v48, 1  ;;  %v2431_v2 = vmul.f32 %v3951_v24, %v3939_v12  ;;  %v2432_v45 = vmul.f32 %v3959_v60, %v3943_v51  ;;  %v4366_v48 = vmul.f32 %v4892_v53, %v3805_v33 }
  0x77   : > { %v614_v1 = vadd.f32 %v3753_v35, %v612_v20  ;;  %v2433_v35 = vmul.f32 %v3970_v47, %v3783_v14  ;;  %v2446_v28 = vpack.c.bf16 %v2430_v61, %v2429_v55  ;;  %v2434_v12 = vmul.f32 %v3981_v9, %v3786_v25 }
  0x78   : > { %v4370_v50 = vsel %vm1467_vm8, %v4346_v19, %v1982_v16  ;;  %v2435_v24 = vmul.f32 %v3985_v38, %v3789_v26  ;;  %v2436_v60 = vmul.f32 %v4050_v57, %v3796_v30  ;;  %v2437_v20 = vmul.f32 %v4054_v34, %v3801_v32 }
  0x79   : > { %3387 = vmatmul.mubr.msk.bf16.gmra.mxu0 %vm1116_vm5, %v3826_v3  ;;  %3373 = vmatmul.mubr.msk.bf16.gmra.mxu1 %vm1116_vm5, %v1646_v40  ;;  %v616_v40 = vmax.f32 %v614_v1, 0.0  ;;  %v2466_v56 = vrot.slane %v2446_v28, 1  ;;  %v2438_v16 = vmul.f32 %v4082_v0, %v3805_v33  ;;  %v2448_v1 = vpack.c.bf16 %v2434_v12, %v2433_v35  ;;  %v4894_v0 = vld [vmem:[#allocation11_spill] sm:$0xff] }
  0x7a   : > { %3390 = vmatprep.mubr.msk.bf16.mxu0 %vm1116_vm5, %v4891_v23  ;;  %3376 = vmatprep.mubr.msk.bf16.mxu1 %vm1116_vm5, %v1647_v52  ;;  %v2447_v52 = vpack.c.bf16 %v2432_v45, %v2431_v2  ;;  %v2449_v61 = vpack.c.bf16 %v2436_v60, %v2435_v24  ;;  %v2439_v9 = vmul.f32 %v4088_v62, %v3887_v36  ;;  %v4896_v62 = vrot.slane %v4235_v13, 7 }
  0x7b   : > { %v619_v47 = vmul.f32 %v4206_v29, %v616_v40  ;;  %v2450_v38 = vpack.c.bf16 %v2438_v16, %v2437_v20  ;;  %v2440_v57 = vmul.f32 %v4892_v53, %v3892_v43  ;;  %v4893_v29 = vld [vmem:[#allocation10_spill] sm:$0xff]  ;;  %v2469_v34 = vrot.slane %v2448_v1, 1 }
  0x7c   : > { %v2467_v55 = vrot.slane %v2447_v52, 1  ;;  %v2441_v45 = vmul.f32 %v4893_v29, %v3901_v37  ;;  %v2471_v28 = vrot.slane %v2449_v61, 1  ;;  %v2442_v35 = vmul.f32 %v4894_v0, %v4232_v17  ;;  %v4895_v52 = vld [vmem:[#allocation3_spill] sm:$0xff] }
  0x7d   : > { %v696_v2 = vrot.slane %v619_v47, 7  ;;  %v2473_v12 = vrot.slane %v2450_v38, 1  ;;  %v2451_v37 = vpack.c.bf16 %v2440_v57, %v2439_v9  ;;  %v1972_v60 = vrot.slane %v1950_v10, 1 }
  0x7e   : > { %v4390_v40 = vsel %vm1467_vm8, %v2466_v56, %v2467_v55  ;;  %v4412_v13 = vsel %vm1467_vm8, %v2469_v34, %v2471_v28  ;;  %v2452_v16 = vpack.c.bf16 %v2442_v35, %v2441_v45  ;;  %v1951_v45 = vpack.c.bf16 %v4328_v44, %v4306_v31 }
  0x7f   : > { %v4400_v53 = vsel %vm622_vm3, %v4896_v62, %v696_v2  ;;  %v704_v24 = vsel %vm622_vm3, %v696_v2, 0.0  ;;  %v4415_v56 = vsel %vm1467_vm8, %v2471_v28, %v2473_v12  ;;  %v2475_v20 = vrot.slane %v2451_v37, 1 }
  0x80   : > { %v2147_v47 = vpack.c.bf16 %v4400_v53, %v4339_v22  ;;  %v2290_v1 = vpack.c.bf16 %v4400_v53, %v4253_v54  ;;  %v2291_v61 = vpack.c.bf16 %v704_v24, %v704_v24  ;;  %v2444_v10 = vmul.f32 %v4160_v18, %v4400_v53 }
  0x81   : > { %3391 = vmatmul.mubr.msk.bf16.gmra.mxu0 %vm1116_vm5, %v4895_v52  ;;  %3377 = vmatmul.mubr.msk.bf16.gmra.mxu1 %vm1116_vm5, %v1648_v42  ;;  %v4409_v42 = vsel %vm1467_vm8, %v2467_v55, %v2469_v34  ;;  %v2445_v55 = vmul.f32 %v4147_v6, %v704_v24  ;;  %v4425_v9 = vsel %vm1467_vm8, %v2473_v12, %v2475_v20  ;;  %v2477_v2 = vrot.slane %v2452_v16, 1 }
  0x82   : > { %3394 = vmatprep.mubr.msk.bf16.mxu0 %vm1116_vm5, %v4283_v21  ;;  %3400 = vmatprep.mubr.msk.bf16.mxu1 %vm1116_vm5, %v1969_v59  ;;  %v2443_v59 = vmul.f32 %v4144_v41, %v4253_v54  ;;  %v2295_v38 = vshll.u32 %v2290_v1, 16  ;;  %v2299_v57 = vshrl.u32 %v2290_v1, 16  ;;  %v2303_v34 = vshll.u32 %v2291_v61, 16  ;;  %v4900_v1 = vld [vmem:[#allocation6_spill] sm:$0xff] }
  0x83   : > { %v2454_v35 = vpack.c.bf16 %v2445_v55, %v2445_v55  ;;  %v1973_v41 = vsel %vm1467_vm8, %v4273_v4, %v1972_v60  ;;  %v2128_v18 = vmul.f32 %v4003_v46, %v3783_v14  ;;  %v2478_v6 = vsel %vm1467_vm8, %v2475_v20, %v2477_v2 }
  0x84   : > { %v2453_v28 = vpack.c.bf16 %v2444_v10, %v2443_v59  ;;  %v2297_v54 = vrot.slane %v2295_v38, 1  ;;  %v1952_v62 = vpack.c.bf16 %v4366_v48, %v4333_v49  ;;  %v2305_v12 = vrot.slane %v2303_v34, 1 }
  0x85   : > { %v2481_v24 = vrot.slane %v2454_v35, 1  ;;  %v1942_v4 = vmul.f32 %v4893_v29, %v3887_v36  ;;  %v4897_v49 = vpack.c.bf16 %v3879_v8, %v4263_v27  ;;  %v1974_v44 = vrot.slane %v1951_v45, 1 }
  0x86   : > { %v2479_v37 = vrot.slane %v2453_v28, 1  ;;  %v2298_v14 = vsel %vm1047_vm4, %v4285_v11, %v2297_v54  ;;  %v2301_v46 = vor.u32 %v2299_v57, %v2297_v54  ;;  %v1943_v31 = vmul.f32 %v4894_v0, %v3892_v43  ;;  %v4898_v0 = vld [vmem:[#allocation12_spill] sm:$0xff] }
  0x87   : > { %v1976_v48 = vrot.slane %v1952_v62, 1  ;;  %v2142_v29 = vpack.c.bf16 %v3786_v25, %v2128_v18  ;;  %v2508_v27 = vsel %vm1141_vm0, %v4268_v63, 0  ;;  %v4899_v16 = vpack.c.bf16 %v3943_v51, %v4898_v0 }
  0x88   : > { %v2306_v11 = vsel %vm1047_vm4, %v2301_v46, %v2305_v12  ;;  %v1953_v8 = vpack.c.bf16 %v1943_v31, %v1942_v4  ;;  %v2130_v61 = vmul.f32 %v4900_v1, %v3789_v26  ;;  %v4902_v26 = vld [vmem:[#allocation8_spill] sm:$0xff]  ;;  %vm2709_vm0 = vcmask 27648  }
  0x89   : > { %3395 = vmatmul.mubr.msk.bf16.gmra.mxu0 %vm1116_vm5, %v4314_v39  ;;  %3401 = vmatmul.mubr.msk.bf16.vlgmr.msra.gmra.mxu1 %vm1116_vm5, %v4318_v7  ;;  %v2480_v39 = vsel %vm1467_vm8, %v2477_v2, %v2479_v37  ;;  %v2482_v7 = vsel %vm1467_vm8, %v2479_v37, %v2481_v24  ;;  %v1977_v20 = vsel %vm1467_vm8, %v1974_v44, %v1976_v48 }
  0x8a   : > { %3435 = vmatpush3.bf16.msra.mxu1 %v4356_v15  ;;  %3418 = vmatprep.mubr.msk.bf16.mxu0 %vm1116_vm5, %v4897_v49  ;;  %v1975_v15 = vsel %vm1467_vm8, %v1972_v60, %v1974_v44  ;;  %v1978_v25 = vrot.slane %v1953_v8, 1  ;;  %v4901_v60 = vld [vmem:[#allocation7_spill] sm:$0xff]  ;;  %v2143_v63 = vpack.c.bf16 %v3796_v30, %v2130_v61  ;;  %v2134_v2 = vmul.f32 %v4902_v26, %v3887_v36 }
  0x8b   : > { %3404 = vmatprep.mubr.msk.bf16.mxu1 %vm1116_vm5, %v1973_v41  ;;  %v2132_v59 = vmul.f32 %v4901_v60, %v3801_v32  ;;  %v4903_v32 = vld [vmem:[#allocation4_spill] sm:$0xff] }
  0x8c   : > { %v1979_v51 = vsel %vm1467_vm8, %v1976_v48, %v1978_v25  ;;  %v1981_v55 = vsel %vm1467_vm8, %v1978_v25, %v4346_v19  ;;  %v2145_v30 = vpack.c.bf16 %v3892_v43, %v2134_v2 }
  0x8d   : > { %v2144_v10 = vpack.c.bf16 %v3805_v33, %v2132_v59  ;;  %v4904_v33 = vld [vmem:[#allocation5_spill] sm:$0xff] }
  0x91   : > { %3419 = vmatmul.mubr.msk.bf16.vlgmr.msra.gmra.mxu0 %vm1116_vm5, %v4899_v16  ;;  %3405 = vmatmul.mubr.msk.bf16.gmra.mxu1 %vm1116_vm5, %v1975_v15 }
  0x92   : > { %3453 = vmatpush3.bf16.msra.mxu0 %v2508_v27  ;;  %3422 = vmatprep.mubr.msk.bf16.mxu0 %vm1116_vm5, %v2142_v29 }
  0x93   : > { %3408 = vmatprep.mubr.msk.bf16.mxu1 %vm1116_vm5, %v1977_v20 }
  0x99   : > { %3423 = vmatmul.mubr.msk.bf16.gmra.mxu0 %vm1116_vm5, %v2143_v63  ;;  %3409 = vmatmul.mubr.msk.bf16.gmra.mxu1 %vm1116_vm5, %v1979_v51 }
  0x9a   : > { %3426 = vmatprep.mubr.msk.bf16.mxu0 %vm1116_vm5, %v2144_v10  ;;  %3412 = vmatprep.mubr.msk.bf16.mxu1 %vm1116_vm5, %v1981_v55 }
  0xa1   : > { %3427 = vmatmul.mubr.msk.bf16.gmra.mxu0 %vm1116_vm5, %v2145_v30  ;;  %3413 = vmatmul.mubr.msk.bf16.gmra.mxu1 %vm1116_vm5, %v4370_v50 }
  0xa2   : > { %3430 = vmatprep.mubr.msk.bf16.mxu0 %vm1116_vm5, %v2146_v58  ;;  %3436 = vmatprep.mubr.msk.bf16.mxu1 %vm1116_vm5, %v4903_v32 }
  0xa9   : > { %3431 = vmatmul.mubr.msk.bf16.gmra.mxu0 %vm1116_vm5, %v2147_v47  ;;  %3437 = vmatmul.mubr.msk.bf16.vlgmr.msra.gmra.mxu1 %vm1116_vm5, %v4904_v33 }
  0xaa   : > { %3454 = vmatprep.mubr.msk.bf16.mxu0 %vm1116_vm5, %v4390_v40  ;;  %3440 = vmatprep.mubr.msk.bf16.mxu1 %vm1116_vm5, %v3826_v3 }
  0xb1   : > { %3455 = vmatmul.mubr.msk.bf16.vlgmr.msra.gmra.mxu0 %vm1116_vm5, %v4409_v42  ;;  %3441 = vmatmul.mubr.msk.bf16.gmra.mxu1 %vm1116_vm5, %v4891_v23 }
  0xb2   : > { %3458 = vmatprep.mubr.msk.bf16.mxu0 %vm1116_vm5, %v4412_v13  ;;  %3444 = vmatprep.mubr.msk.bf16.mxu1 %vm1116_vm5, %v4895_v52 }
  0xb9   : > { %3459 = vmatmul.mubr.msk.bf16.gmra.mxu0 %vm1116_vm5, %v4415_v56  ;;  %3445 = vmatmul.mubr.msk.bf16.gmra.mxu1 %vm1116_vm5, %v4283_v21 }
  0xba   : > { %3462 = vmatprep.mubr.msk.bf16.mxu0 %vm1116_vm5, %v4425_v9  ;;  %3448 = vmatprep.mubr.msk.bf16.mxu1 %vm1116_vm5, %v2298_v14 }
  0xc1   : > { %3463 = vmatmul.mubr.msk.bf16.gmra.mxu0 %vm1116_vm5, %v2478_v6  ;;  %3449 = vmatmul.mubr.msk.bf16.gmra.mxu1 %vm1116_vm5, %v2306_v11 }
  0xc2   : > { %3466 = vmatprep.mubr.msk.bf16.mxu0 %vm1116_vm5, %v2480_v39 }
  0xc9   : > { %3467 = vmatmul.mubr.msk.bf16.gmra.mxu0 %vm1116_vm5, %v2482_v7 }
  0xed   : > { %v3320_v3 = vpop.f32.mrf.mxu1 }
  0xef   : > { %v1211_v36 = vpop.f32.mrf.mxu1 }
  0xf1   : > { %v3321_v43 = vpop.f32.mrf.mxu1 }
  0xf3   : > { %v1214_v5 = vpop.f32.mrf.mxu1 }
  0xfc   : > { %v3312_v17 = vpop.f32.mrf.mxu0 }
  0xfe   : > { %v1179_v58 = vpop.f32.mrf.mxu0 }
 0x100   : > { %v3313_v22 = vpop.f32.mrf.mxu0 }
 0x101   : > { %v3324_v21 = vpop.f32.mrf.mxu1 }
 0x102   : > { %v1182_v23 = vpop.f32.mrf.mxu0 }
 0x103   : > { %v1227_v19 = vpop.f32.mrf.mxu1 }
 0x105   : > { %v3325_v50 = vpop.f32.mrf.mxu1 }
 0x107   : > { %v1230_v40 = vpop.f32.mrf.mxu1 }
 0x109   : > { %v3316_v52 = vpop.f32.mrf.mxu0  ;;  %v3330_v53 = vpop.f32.mrf.mxu1 }
 0x10a   : > { %v1312_v47 = vadd.f32 %v3330_v53, %v3312_v17 }
 0x10b   : > { %v1195_v42 = vpop.f32.mrf.mxu0  ;;  %v1303_v13 = vpop.f32.mrf.mxu1 }
 0x10c   : > { %v1304_v56 = vadd.f32 %v1303_v13, %v1179_v58 }
 0x10d   : > { %v3317_v9 = vpop.f32.mrf.mxu0  ;;  %v3331_v38 = vpop.f32.mrf.mxu1 }
 0x10e   : > { %v1315_v57 = vadd.f32 %v3331_v38, %v3313_v22 }
 0x10f   : > { %v1198_v45 = vpop.f32.mrf.mxu0  ;;  %v1306_v34 = vpop.f32.mrf.mxu1 }
 0x110   : > { %v1307_v28 = vadd.f32 %v1306_v34, %v1182_v23 }
 0x111   : > { %v3348_v35 = vpop.f32.mrf.mxu0  ;;  %v3334_v41 = vpop.f32.mrf.mxu1 }
 0x112   : > { %v4521_v18 = vadd.f32 %v3348_v35, %v1312_v47  ;;  %v1328_v6 = vadd.f32 %v3334_v41, %v3316_v52 }
 0x113   : > { %v1546_v54 = vpop.f32.mrf.mxu0  ;;  %v1319_v62 = vpop.f32.mrf.mxu1 }
 0x114   : > { %v4523_v12 = vadd.f32 %v1546_v54, %v1304_v56  ;;  %v1320_v37 = vadd.f32 %v1319_v62, %v1195_v42 }
 0x115   : > { %v3349_v24 = vpop.f32.mrf.mxu0  ;;  %v3335_v4 = vpop.f32.mrf.mxu1 }
 0x116   : > { %v4525_v14 = vadd.f32 %v3349_v24, %v1315_v57  ;;  %v1331_v46 = vadd.f32 %v3335_v4, %v3317_v9 }
 0x117   : > { %v1549_v49 = vpop.f32.mrf.mxu0  ;;  %v1322_v44 = vpop.f32.mrf.mxu1 }
 0x118   : > { %v4527_v31 = vadd.f32 %v1549_v49, %v1307_v28  ;;  %v1323_v39 = vadd.f32 %v1322_v44, %v1198_v45 }
 0x119   : > { %v3352_v7 = vpop.f32.mrf.mxu0  ;;  %v3338_v11 = vpop.f32.mrf.mxu1 }
 0x11a   : > { %v4529_v48 = vadd.f32 %v3352_v7, %v1328_v6  ;;  %v1344_v15 = vadd.f32 %v3338_v11, %v3320_v3 }
 0x11b   : > { %v1562_v29 = vpop.f32.mrf.mxu0  ;;  %v1335_v8 = vpop.f32.mrf.mxu1 }
 0x11c   : > { %v4531_v27 = vadd.f32 %v1562_v29, %v1320_v37  ;;  %v1336_v20 = vadd.f32 %v1335_v8, %v1211_v36 }
 0x11d   : > { %v3353_v0 = vpop.f32.mrf.mxu0  ;;  %v3339_v16 = vpop.f32.mrf.mxu1 }
 0x11e   : > { %v4533_v1 = vadd.f32 %v3353_v0, %v1331_v46  ;;  %v1347_v61 = vadd.f32 %v3339_v16, %v3321_v43 }
 0x11f   : > { %v1565_v25 = vpop.f32.mrf.mxu0  ;;  %v1338_v60 = vpop.f32.mrf.mxu1 }
 0x120   : > { %v4535_v59 = vadd.f32 %v1565_v25, %v1323_v39  ;;  %v1339_v63 = vadd.f32 %v1338_v60, %v1214_v5 }
 0x121   : > { %v3356_v51 = vpop.f32.mrf.mxu0  ;;  %v3342_v10 = vpop.f32.mrf.mxu1 }
 0x122   : > { %v4537_v55 = vadd.f32 %v3356_v51, %v1344_v15  ;;  %v1360_v26 = vadd.f32 %v3342_v10, %v3324_v21 }
 0x123   : > { %v1578_v2 = vpop.f32.mrf.mxu0  ;;  %v1351_v30 = vpop.f32.mrf.mxu1 }
 0x124   : > { %v4539_v32 = vadd.f32 %v1578_v2, %v1336_v20  ;;  %v1352_v33 = vadd.f32 %v1351_v30, %v1227_v19 }
 0x125   : > { %v3357_v3 = vpop.f32.mrf.mxu0  ;;  %v3343_v36 = vpop.f32.mrf.mxu1 }
 0x126   : > { %v4541_v17 = vadd.f32 %v3357_v3, %v1347_v61  ;;  %v1363_v43 = vadd.f32 %v3343_v36, %v3325_v50 }
 0x127   : > { %v1581_v58 = vpop.f32.mrf.mxu0  ;;  %v1354_v22 = vpop.f32.mrf.mxu1 }
 0x128   : > { %v4543_v23 = vadd.f32 %v1581_v58, %v1339_v63  ;;  %v1355_v5 = vadd.f32 %v1354_v22, %v1230_v40 }
 0x129   : > { %v3360_v52 = vpop.f32.mrf.mxu0  ;;  %v4545_v53 = vpop.f32.mrf.mxu1 }
 0x12a   : > { %v4547_v47 = vadd.f32 %v3360_v52, %v1360_v26 }
 0x12b   : > { %v1594_v21 = vpop.f32.mrf.mxu0  ;;  %v4549_v42 = vpop.f32.mrf.mxu1 }
 0x12c   : > { %v4551_v13 = vadd.f32 %v1594_v21, %v1352_v33 }
 0x12d   : > { %v3361_v19 = vpop.f32.mrf.mxu0  ;;  %v4553_v56 = vpop.f32.mrf.mxu1 }
 0x12e   : > { %v4555_v9 = vadd.f32 %v3361_v19, %v1363_v43 }
 0x12f   : > { %v1597_v50 = vpop.f32.mrf.mxu0  ;;  %v1715_v38 = vpop.f32.mrf.mxu1 }
 0x130   : > { %v4557_v57 = vadd.f32 %v1597_v50, %v1355_v5 }
 0x131   : > { %v3384_v40 = vpop.f32.mrf.mxu0  ;;  %v3370_v45 = vpop.f32.mrf.mxu1 }
 0x133   : > { %v4559_v34 = vpop.f32.mrf.mxu0  ;;  %v1728_v28 = vpop.f32.mrf.mxu1 }
 0x135   : > { %v3385_v35 = vpop.f32.mrf.mxu0  ;;  %v3371_v41 = vpop.f32.mrf.mxu1 }
 0x137   : > { %v1854_v6 = vpop.f32.mrf.mxu0  ;;  %v1731_v54 = vpop.f32.mrf.mxu1 }
 0x139   : > { %v3388_v62 = vpop.f32.mrf.mxu0  ;;  %v3374_v37 = vpop.f32.mrf.mxu1 }
 0x13b   : > { %v1867_v24 = vpop.f32.mrf.mxu0  ;;  %v4561_v4 = vpop.f32.mrf.mxu1 }
 0x13d   : > { %v4563_v46 = vpop.f32.mrf.mxu0  ;;  %v4565_v49 = vpop.f32.mrf.mxu1 }
 0x13f   : > { %v4567_v44 = vpop.f32.mrf.mxu0  ;;  %v4569_v39 = vpop.f32.mrf.mxu1 }
 0x141   : > { %v4571_v7 = vpop.f32.mrf.mxu0  ;;  %v4573_v11 = vpop.f32.mrf.mxu1 }
 0x143   : > { %v4575_v15 = vpop.f32.mrf.mxu0  ;;  %v4577_v29 = vpop.f32.mrf.mxu1 }
 0x145   : > { %v4579_v8 = vpop.f32.mrf.mxu0  ;;  %v4581_v20 = vpop.f32.mrf.mxu1 }
 0x147   : > { %v4583_v0 = vpop.f32.mrf.mxu0  ;;  %v4585_v16 = vpop.f32.mrf.mxu1 }
 0x149   : > { %v4587_v61 = vpop.f32.mrf.mxu0  ;;  %v3402_v25 = vpop.f32.mrf.mxu1 }
 0x14b   : > { %v4589_v60 = vpop.f32.mrf.mxu0  ;;  %v2045_v63 = vpop.f32.mrf.mxu1 }
 0x14d   : > { %v4591_v51 = vpop.f32.mrf.mxu0  ;;  %v4593_v10 = vpop.f32.mrf.mxu1 }
 0x14f   : > { %v4595_v26 = vpop.f32.mrf.mxu0  ;;  %v4597_v2 = vpop.f32.mrf.mxu1 }
 0x150   : > { %4905 = vst [vmem:[#allocation2_spill] sm:$0xff] %v4597_v2 }
 0x151   : > { %v3420_v30 = vpop.f32.mrf.mxu0  ;;  %v4599_v33 = vpop.f32.mrf.mxu1 }
 0x152   : > { %4906 = vst [vmem:[#allocation9_spill] sm:$0xff] %v4599_v33 }
 0x153   : > { %v4601_v3 = vpop.f32.mrf.mxu0  ;;  %v4603_v36 = vpop.f32.mrf.mxu1 }
 0x154   : > { %4907 = vst [vmem:[#allocation10_spill] sm:$0xff] %v4603_v36 }
 0x155   : > { %v4605_v43 = vpop.f32.mrf.mxu0  ;;  %v4607_v58 = vpop.f32.mrf.mxu1 }
 0x156   : > { %4908 = vst [vmem:[#allocation11_spill] sm:$0xff] %v4605_v43  ;;  %4909 = vst [vmem:[#allocation3_spill] sm:$0xff] %v4607_v58 }
 0x157   : > { %v4609_v22 = vpop.f32.mrf.mxu0  ;;  %v4611_v5 = vpop.f32.mrf.mxu1 }
 0x158   : > { %4910 = vst [vmem:[#allocation12_spill] sm:$0xff] %v4609_v22  ;;  %4911 = vst [vmem:[#allocation6_spill] sm:$0xff] %v4611_v5 }
 0x159   : > { %v4613_v52 = vpop.f32.mrf.mxu0  ;;  %v4615_v21 = vpop.f32.mrf.mxu1 }
 0x15a   : > { %4912 = vst [vmem:[#allocation7_spill] sm:$0xff] %v4613_v52  ;;  %4913 = vst [vmem:[#allocation8_spill] sm:$0xff] %v4615_v21 }
 0x15b   : > { %v4617_v19 = vpop.f32.mrf.mxu0  ;;  %v4619_v50 = vpop.f32.mrf.mxu1 }
 0x15c   : > { %4914 = vst [vmem:[#allocation4_spill] sm:$0xff] %v4617_v19  ;;  %4915 = vst [vmem:[#allocation5_spill] sm:$0xff] %v4619_v50 }
 0x15d   : > { %v4621_v33 = vpop.f32.mrf.mxu0  ;;  %v4623_v2 = vpop.f32.mrf.mxu1 }
 0x15e   : > { %4916 = vst [vmem:[#allocation13_spill] sm:$0xff] %v4621_v33  ;;  %4917 = vst [vmem:[#allocation14_spill] sm:$0xff] %v4623_v2  ;;  %v1777_v33 = vadd.f32 %v4545_v53, %v4521_v18 }
 0x15f   : > { %v4625_v36 = vpop.f32.mrf.mxu0  ;;  %v4627_v43 = vpop.f32.mrf.mxu1 }
 0x160   : > { %4918 = vst [vmem:[#allocation15_spill] sm:$0xff] %v4625_v36  ;;  %4919 = vst [vmem:[#allocation16_spill] sm:$0xff] %v4627_v43 }
 0x161   : > { %v4629_v58 = vpop.f32.mrf.mxu0  ;;  %v4631_v22 = vpop.f32.mrf.mxu1 }
 0x162   : > { %4920 = vst [vmem:[#allocation17_spill] sm:$0xff] %v4629_v58  ;;  %4921 = vst [vmem:[#allocation18_spill] sm:$0xff] %v4631_v22  ;;  %v1775_v58 = vadd.f32 %v4549_v42, %v4523_v12  ;;  %v1778_v22 = vadd.f32 %v4553_v56, %v4525_v14  ;;  %v1780_v12 = vadd.f32 %v1731_v54, %v4535_v59 }
 0x163   : > { %v4633_v5 = vpop.f32.mrf.mxu0  ;;  %v4635_v52 = vpop.f32.mrf.mxu1  ;;  %v1785_v14 = vadd.f32 %v3374_v37, %v4537_v55  ;;  %v1784_v59 = vadd.f32 %v4569_v39, %v4543_v23  ;;  %v1790_v23 = vadd.f32 %v4581_v20, %v4555_v9 }
 0x164   : > { %4922 = vst [vmem:[#allocation19_spill] sm:$0xff] %v4633_v5  ;;  %4923 = vst [vmem:[#allocation20_spill] sm:$0xff] %v4635_v52  ;;  %v1776_v5 = vadd.f32 %v1715_v38, %v4527_v31  ;;  %v1916_v52 = vadd.f32 %v3384_v40, %v1777_v33  ;;  %v1914_v53 = vadd.f32 %v4559_v34, %v1775_v58  ;;  %v4935_v58 = vld [vmem:[#allocation7_spill] sm:$0xff] }
 0x165   : > { %v4637_v21 = vpop.f32.mrf.mxu0  ;;  %v4639_v19 = vpop.f32.mrf.mxu1  ;;  %v1786_v40 = vadd.f32 %v4565_v49, %v4541_v17  ;;  %v1924_v55 = vadd.f32 %v4571_v7, %v1785_v14  ;;  %v1789_v34 = vadd.f32 %v4573_v11, %v4547_v47  ;;  %v1787_v17 = vadd.f32 %v4577_v29, %v4551_v13  ;;  %v4928_v7 = vld [vmem:[#allocation2_spill] sm:$0xff]  ;;  %v4939_v14 = vld [vmem:[#allocation13_spill] sm:$0xff] }
 0x166   : > { %4924 = vst [vmem:[#allocation21_spill] sm:$0xff] %v4637_v21  ;;  %4925 = vst [vmem:[#allocation22_spill] sm:$0xff] %v4639_v19  ;;  %v1781_v21 = vadd.f32 %v3370_v45, %v4529_v48  ;;  %v1779_v19 = vadd.f32 %v1728_v28, %v4531_v27  ;;  %v1915_v50 = vadd.f32 %v1854_v6, %v1776_v5 }
 0x167   : > { %v4643_v2 = vpop.f32.mrf.mxu0  ;;  %v4645_v36 = vpop.f32.mrf.mxu1  ;;  %v1783_v27 = vadd.f32 %v4561_v4, %v4539_v32  ;;  %v2110_v45 = vadd.f32 %v3402_v25, %v1916_v52  ;;  %v1925_v54 = vadd.f32 %v4579_v8, %v1786_v40  ;;  %v1788_v47 = vadd.f32 %v4585_v16, %v4557_v57  ;;  %v4696_v57 = vld [vmem:[%s4855_s6] ss:$0 sm:$0xff]  ;;  %v4929_v8 = vld [vmem:[#allocation9_spill] sm:$0xff] }
 0x168   : > { %4926 = vst [vmem:[#allocation23_spill] sm:$0xff] %v4643_v2  ;;  %4927 = vst [vmem:[#allocation24_spill] sm:$0xff] %v4645_v36  ;;  %v1917_v2 = vadd.f32 %v3385_v35, %v1778_v22  ;;  %v1782_v36 = vadd.f32 %v3371_v41, %v4533_v1  ;;  %v1920_v42 = vadd.f32 %v3388_v62, %v1781_v21 }
 0x169   : > { %v4654_v43 = vpop.f32.mrf.mxu0  ;;  %v3438_v18 = vpop.f32.mrf.mxu1  ;;  %v1918_v31 = vadd.f32 %v1867_v24, %v1779_v19  ;;  %v1919_v1 = vadd.f32 %v4567_v44, %v1780_v12  ;;  %v1922_v32 = vadd.f32 %v4575_v15, %v1783_v27  ;;  %v2108_v41 = vadd.f32 %v2045_v63, %v1914_v53  ;;  %v4936_v19 = vld [vmem:[#allocation8_spill] sm:$0xff]  ;;  %v4938_v12 = vld [vmem:[#allocation5_spill] sm:$0xff] }
 0x16a   : > { %v1921_v38 = vadd.f32 %v4563_v46, %v1782_v36  ;;  %v2276_v6 = vadd.f32 %v3420_v30, %v2110_v45  ;;  %v1923_v62 = vadd.f32 %v4583_v0, %v1784_v59  ;;  %v1928_v4 = vadd.f32 %v4587_v61, %v1789_v34  ;;  %v4930_v0 = vld [vmem:[#allocation11_spill] sm:$0xff]  ;;  %v4934_v30 = vld [vmem:[#allocation6_spill] sm:$0xff] }
 0x16b   : > { %v4660_v56 = vpop.f32.mrf.mxu0  ;;  %v2350_v48 = vpop.f32.mrf.mxu1  ;;  %v2111_v46 = vadd.f32 %v4593_v10, %v1917_v2  ;;  %v2274_v13 = vadd.f32 %v4601_v3, %v2108_v41  ;;  %v1926_v44 = vadd.f32 %v4589_v60, %v1787_v17  ;;  %v1929_v39 = vadd.f32 %v4591_v51, %v1790_v23  ;;  %v4931_v60 = vld [vmem:[#allocation10_spill] sm:$0xff]  ;;  %v4932_v51 = vld [vmem:[#allocation3_spill] sm:$0xff]  ;;  %v4942_v41 = vld [vmem:[#allocation16_spill] sm:$0xff] }
 0x16c   : > { %v2415_v49 = vadd.f32 %v3438_v18, %v2276_v6  ;;  %v1927_v9 = vadd.f32 %v4595_v26, %v1788_v47  ;;  %v2109_v11 = vadd.f32 %v4928_v7, %v1915_v50  ;;  %v2114_v20 = vadd.f32 %v4929_v8, %v1920_v42  ;;  %v4933_v26 = vld [vmem:[#allocation12_spill] sm:$0xff]  ;;  %v4940_v59 = vld [vmem:[#allocation14_spill] sm:$0xff]  ;;  %v4943_v6 = vld [vmem:[#allocation17_spill] sm:$0xff] }
 0x16d   : > { %v4673_v28 = vpop.f32.mrf.mxu0  ;;  %v3439_v35 = vpop.f32.mrf.mxu1  ;;  %v2277_v16 = vadd.f32 %v4930_v0, %v2111_v46  ;;  %v2413_v61 = vadd.f32 %v2350_v48, %v2274_v13  ;;  %v2112_v63 = vadd.f32 %v4931_v60, %v1918_v31  ;;  %v2115_v10 = vadd.f32 %v4932_v51, %v1921_v38  ;;  %v4937_v18 = vld [vmem:[#allocation4_spill] sm:$0xff]  ;;  %v4944_v7 = vld [vmem:[#allocation18_spill] sm:$0xff]  ;;  %v4947_v0 = vld [vmem:[#allocation21_spill] sm:$0xff] }
 0x16e   : > { %v2275_v2 = vadd.f32 %v4933_v26, %v2109_v11  ;;  %v2113_v33 = vadd.f32 %v4934_v30, %v1919_v1  ;;  %v2280_v22 = vadd.f32 %v4935_v58, %v2114_v20  ;;  %v2118_v50 = vadd.f32 %v4936_v19, %v1924_v55  ;;  %v4946_v8 = vld [vmem:[#allocation20_spill] sm:$0xff]  ;;  %v4948_v51 = vld [vmem:[#allocation22_spill] sm:$0xff] }
 0x16f   : > { %v4684_v37 = vpop.f32.mrf.mxu0  ;;  %v2353_v24 = vpop.f32.mrf.mxu1  ;;  %v2416_v5 = vadd.f32 %v3439_v35, %v2277_v16  ;;  %v2278_v53 = vadd.f32 %v4937_v18, %v2112_v63  ;;  %v2116_v42 = vadd.f32 %v4938_v12, %v1922_v32  ;;  %v2281_v31 = vadd.f32 %v4939_v14, %v2115_v10  ;;  %v4941_v35 = vld [vmem:[#allocation15_spill] sm:$0xff] }
 0x170   : > { %v2414_v38 = vadd.f32 %v2353_v24, %v2275_v2  ;;  %v2119_v34 = vadd.f32 %v4940_v59, %v1925_v54  ;;  %v2279_v17 = vadd.f32 %v4941_v35, %v2113_v33  ;;  %v2117_v55 = vadd.f32 %v4942_v41, %v1923_v62  ;;  %v4950_v2 = vld [vmem:[#allocation24_spill] sm:$0xff] }
 0x171   : > { %v3456_v15 = vpop.f32.mrf.mxu0  ;;  %v3442_v29 = vpop.f32.mrf.mxu1  ;;  %v2284_v23 = vadd.f32 %v4943_v6, %v2118_v50  ;;  %v2122_v11 = vadd.f32 %v4944_v7, %v1928_v4  ;;  %v2120_v20 = vadd.f32 %v4946_v8, %v1926_v44  ;;  %v4735_v10 = vadd.f32 %v4948_v51, %v1929_v39  ;;  %v4949_v4 = vld [vmem:[#allocation23_spill] sm:$0xff] }
 0x172   : > { %v2609_v25 = vadd.f32 %v3456_v15, %v2415_v49  ;;  %v2419_v46 = vadd.f32 %v3442_v29, %v2280_v22  ;;  %v4945_v15 = vld [vmem:[#allocation19_spill] sm:$0xff]  ;;  %v4729_v62 = vadd.f32 %v4947_v0, %v2119_v34  ;;  %v4738_v26 = vadd.f32 %v4949_v4, %v2117_v55 }
 0x173   : > { %v2544_v3 = vpop.f32.mrf.mxu0  ;;  %v2366_v36 = vpop.f32.mrf.mxu1  ;;  %v2282_v54 = vadd.f32 %v4945_v15, %v2116_v42  ;;  %v4741_v44 = vadd.f32 %v4950_v2, %v1927_v9  ;;  %v4749_v39 = vadd.f32 %v4660_v56, %v2120_v20 }
 0x174   : > { %v2631_v52 = vadd.f32 %v4696_v57, %v2609_v25  ;;  %v2607_v21 = vadd.f32 %v2544_v3, %v2413_v61  ;;  %v2417_v30 = vadd.f32 %v2366_v36, %v2278_v53 }
 0x175   : > { %v3457_v48 = vpop.f32.mrf.mxu0  ;;  %v3443_v27 = vpop.f32.mrf.mxu1 }
 0x176   : > { %v3166_v40 = vpack.c.bf16 %v2631_v52, %v2631_v52  ;;  %v2629_v45 = vadd.f32 %v4696_v57, %v2607_v21  ;;  %v2610_v1 = vadd.f32 %v3457_v48, %v2416_v5  ;;  %v4746_v21 = vadd.f32 %v4654_v43, %v2122_v11 }
 0x177   : > { %v2547_v47 = vpop.f32.mrf.mxu0  ;;  %v2369_v32 = vpop.f32.mrf.mxu1  ;;  %v2420_v36 = vadd.f32 %v3443_v27, %v2281_v31 }
 0x178   : > { %2712 = vst.msk [vmem:[%s4711_s21 + $0x8] sm:$0xf] %vm2709_vm0, %v3166_v40  ;;  %v3164_v13 = vpack.c.bf16 %v2629_v45, %v2629_v45  ;;  %v2632_v24 = vadd.f32 %v4696_v57, %v2610_v1  ;;  %v2608_v49 = vadd.f32 %v2547_v47, %v2414_v38  ;;  %v2418_v53 = vadd.f32 %v2369_v32, %v2279_v17 }
 0x179   : > { %v3460_v16 = vpop.f32.mrf.mxu0  ;;  %v3446_v61 = vpop.f32.mrf.mxu1 }
 0x17a   : > { %2710 = vst.msk [vmem:[%s4711_s21] sm:$0xf] %vm2709_vm0, %v3164_v13  ;;  %v2646_v25 = vpack.c.bf16 %v2632_v24, %v2631_v52  ;;  %v3167_v29 = vpack.c.bf16 %v2632_v24, %v2632_v24  ;;  %v2630_v60 = vadd.f32 %v4696_v57, %v2608_v49  ;;  %v2613_v63 = vadd.f32 %v3460_v16, %v2419_v46 }
 0x17b   : > { %v2560_v33 = vpop.f32.mrf.mxu0  ;;  %v2382_v3 = vpop.f32.mrf.mxu1  ;;  %v2423_v12 = vadd.f32 %v3446_v61, %v2284_v23 }
 0x17c   : > { %2713 = vst.msk [vmem:[%s4711_s21 + $0xc] sm:$0xf] %vm2709_vm0, %v3167_v29  ;;  %v2728_v58 = vunpack.c.l.bf16 %v2646_v25  ;;  %v2729_v22 = vunpack.c.h.bf16 %v2646_v25  ;;  %v2645_v5 = vpack.c.bf16 %v2630_v60, %v2629_v45  ;;  %v3165_v52 = vpack.c.bf16 %v2630_v60, %v2630_v60 }
 0x17d   : > { %v2635_v19 = vadd.f32 %v4696_v57, %v2613_v63  ;;  %v2611_v9 = vadd.f32 %v2560_v33, %v2417_v30  ;;  %v3461_v50 = vpop.f32.mrf.mxu0  ;;  %v3447_v18 = vpop.f32.mrf.mxu1  ;;  %v2421_v42 = vadd.f32 %v2382_v3, %v2282_v54 }
 0x17e   : > { %2711 = vst.msk [vmem:[%s4711_s21 + $0x4] sm:$0xf] %vm2709_vm0, %v3165_v52  ;;  %v2726_v14 = vunpack.c.l.bf16 %v2645_v5  ;;  %v2727_v48 = vunpack.c.h.bf16 %v2645_v5  ;;  %v2745_v45 = vsel %vm1116_vm5, %v2728_v58, 0.0  ;;  %v2747_v1 = vsel %vm1116_vm5, %v2729_v22, 0.0 }
 0x17f   : > { %v3170_v38 = vpack.c.bf16 %v2635_v19, %v2635_v19  ;;  %v2633_v43 = vadd.f32 %v4696_v57, %v2611_v9  ;;  %v2563_v40 = vpop.f32.mrf.mxu0  ;;  %v2385_v56 = vpop.f32.mrf.mxu1  ;;  %v2781_v59 = vmul.f32 %v2728_v58, %v2728_v58  ;;  %v2614_v34 = vadd.f32 %v3461_v50, %v2420_v36 }
 0x180   : > { %v2742_v31 = vsel %vm1116_vm5, %v2726_v14, 0.0  ;;  %v2743_v27 = vsel %vm1116_vm5, %v2727_v48, 0.0  ;;  %v2779_v35 = vmul.f32 %v2726_v14, %v2726_v14  ;;  %v2780_v17 = vmul.f32 %v2727_v48, %v2727_v48 }
 0x181   : > { %2716 = vst.msk [vmem:[%s4711_s21 + $0x18] sm:$0xf] %vm2709_vm0, %v3170_v38  ;;  %v3464_v41 = vpop.f32.mrf.mxu0  ;;  %v2744_v55 = vadd.f32 %v2743_v27, %v2742_v31  ;;  %v3168_v6 = vpack.c.bf16 %v2633_v43, %v2633_v43  ;;  %v2636_v23 = vadd.f32 %v4696_v57, %v2614_v34  ;;  %v2612_v47 = vadd.f32 %v2563_v40, %v2418_v53  ;;  %v3450_v32 = vpop.f32.mrf.mxu1 }
 0x182   : > { %v2782_v46 = vmul.f32 %v2729_v22, %v2729_v22  ;;  %v2795_v13 = vsel %vm1116_vm5, %v2779_v35, 0.0  ;;  %v2796_v24 = vsel %vm1116_vm5, %v2780_v17, 0.0  ;;  %v2617_v49 = vadd.f32 %v3464_v41, %v2423_v12 }
 0x183   : > { %v2576_v7 = vpop.f32.mrf.mxu0  ;;  %v2746_v11 = vadd.f32 %v2745_v45, %v2744_v55  ;;  %v2797_v15 = vadd.f32 %v2796_v24, %v2795_v13  ;;  %2714 = vst.msk [vmem:[%s4711_s21 + $0x10] sm:$0xf] %vm2709_vm0, %v3168_v6  ;;  %v2648_v54 = vpack.c.bf16 %v2636_v23, %v2635_v19  ;;  %v3171_v8 = vpack.c.bf16 %v2636_v23, %v2636_v23  ;;  %v2398_v4 = vpop.f32.mrf.mxu1 }
 0x184   : > { %v2798_v20 = vsel %vm1116_vm5, %v2781_v59, 0.0  ;;  %v2634_v0 = vadd.f32 %v4696_v57, %v2612_v47  ;;  %v2639_v16 = vadd.f32 %v4696_v57, %v2617_v49  ;;  %v2615_v61 = vadd.f32 %v2576_v7, %v2421_v42 }
 0x185   : > { %v3465_v25 = vpop.f32.mrf.mxu0  ;;  %v2799_v29 = vadd.f32 %v2798_v20, %v2797_v15  ;;  %2717 = vst.msk [vmem:[%s4711_s21 + $0x1c] sm:$0xf] %vm2709_vm0, %v3171_v8  ;;  %v2732_v60 = vunpack.c.l.bf16 %v2648_v54  ;;  %v2733_v63 = vunpack.c.h.bf16 %v2648_v54  ;;  %v2748_v51 = vadd.f32 %v2747_v1, %v2746_v11  ;;  %v3451_v48 = vpop.f32.mrf.mxu1 }
 0x186   : > { %v2647_v2 = vpack.c.bf16 %v2634_v0, %v2633_v43  ;;  %v3169_v30 = vpack.c.bf16 %v2634_v0, %v2634_v0  ;;  %v3174_v33 = vpack.c.bf16 %v2639_v16, %v2639_v16  ;;  %v2637_v3 = vadd.f32 %v4696_v57, %v2615_v61 }
 0x187   : > { %v2579_v58 = vpop.f32.mrf.mxu0  ;;  %v2289_v22 = vadd.f32 %v4673_v28, %v4735_v10  ;;  %v2800_v5 = vsel %vm1116_vm5, %v2782_v46, 0.0  ;;  %v2424_v52 = vadd.f32 %v3447_v18, %v4729_v62  ;;  %v2422_v19 = vadd.f32 %v2385_v56, %v4738_v26 }
 0x188   : > { %2715 = vst.msk [vmem:[%s4711_s21 + $0x14] sm:$0xf] %vm2709_vm0, %v3169_v30  ;;  %v2730_v9 = vunpack.c.l.bf16 %v2647_v2  ;;  %v2731_v50 = vunpack.c.h.bf16 %v2647_v2  ;;  %v2801_v36 = vadd.f32 %v2800_v5, %v2799_v29  ;;  %2720 = vst.msk [vmem:[%s4711_s21 + $0x28] sm:$0xf] %vm2709_vm0, %v3174_v33  ;;  %v3172_v53 = vpack.c.bf16 %v2637_v3, %v2637_v3 }
 0x189   : > { %v3468_v12 = vpop.f32.mrf.mxu0  ;;  %v2753_v42 = vsel %vm1116_vm5, %v2732_v60, 0.0  ;;  %v2785_v14 = vmul.f32 %v2732_v60, %v2732_v60  ;;  %v2427_v28 = vadd.f32 %v3450_v32, %v4746_v21  ;;  %v2618_v10 = vadd.f32 %v3465_v25, %v2424_v52 }
 0x18a   : > { %v2786_v62 = vmul.f32 %v2733_v63, %v2733_v63  ;;  %v2749_v26 = vsel %vm1116_vm5, %v2730_v9, 0.0  ;;  %v2783_v18 = vmul.f32 %v2730_v9, %v2730_v9  ;;  %v2784_v38 = vmul.f32 %v2731_v50, %v2731_v50  ;;  %2718 = vst.msk [vmem:[%s4711_s21 + $0x20] sm:$0xf] %vm2709_vm0, %v3172_v53 }
 0x18b   : > { %v2592_v43 = vpop.f32.mrf.mxu0  ;;  %v2750_v40 = vadd.f32 %v2749_v26, %v2748_v51  ;;  %v2425_v56 = vadd.f32 %v2398_v4, %v4749_v39  ;;  %v2640_v45 = vadd.f32 %v4696_v57, %v2618_v10  ;;  %v2616_v1 = vadd.f32 %v2579_v58, %v2422_v19 }
 0x18c   : > { %v2751_v59 = vsel %vm1116_vm5, %v2731_v50, 0.0  ;;  %v2802_v21 = vsel %vm1116_vm5, %v2783_v18, 0.0  ;;  %v2428_v34 = vadd.f32 %v3451_v48, %v2289_v22  ;;  %v2621_v31 = vadd.f32 %v3468_v12, %v2427_v28 }
 0x18d   : > { %v3469_v27 = vpop.f32.mrf.mxu0  ;;  %v2752_v35 = vadd.f32 %v2751_v59, %v2750_v40  ;;  %v2803_v17 = vadd.f32 %v2802_v21, %v2801_v36  ;;  %v2650_v41 = vpack.c.bf16 %v2640_v45, %v2639_v16  ;;  %v3175_v55 = vpack.c.bf16 %v2640_v45, %v2640_v45  ;;  %v2401_v16 = vpop.f32.mrf.mxu1 }
 0x18e   : > { %v2804_v6 = vsel %vm1116_vm5, %v2784_v38, 0.0  ;;  %v2638_v23 = vadd.f32 %v4696_v57, %v2616_v1  ;;  %v2643_v39 = vadd.f32 %v4696_v57, %v2621_v31  ;;  %v2619_v47 = vadd.f32 %v2592_v43, %v2425_v56 }
 0x18f   : > { %v2806_v32 = vsel %vm1116_vm5, %v2785_v14, 0.0  ;;  %v2754_v46 = vadd.f32 %v2753_v42, %v2752_v35  ;;  %v2805_v13 = vadd.f32 %v2804_v6, %v2803_v17  ;;  %2721 = vst.msk [vmem:[%s4711_s21 + $0x2c] sm:$0xf] %vm2709_vm0, %v3175_v55  ;;  %v2622_v24 = vadd.f32 %v3469_v27, %v2428_v34 }
 0x190   : > { %v2649_v49 = vpack.c.bf16 %v2638_v23, %v2637_v3  ;;  %v3173_v7 = vpack.c.bf16 %v2638_v23, %v2638_v23  ;;  %v3178_v11 = vpack.c.bf16 %v2643_v39, %v2643_v39  ;;  %v2641_v15 = vadd.f32 %v4696_v57, %v2619_v47 }
 0x191   : > { %v2287_v54 = vadd.f32 %v4684_v37, %v4741_v44  ;;  %v2755_v8 = vsel %vm1116_vm5, %v2733_v63, 0.0  ;;  %v2808_v20 = vsel %vm1116_vm5, %v2786_v62, 0.0  ;;  %v2807_v0 = vadd.f32 %v2806_v32, %v2805_v13  ;;  %v2595_v37 = vpop.f32.mrf.mxu0 }
 0x192   : > { %v2736_v61 = vunpack.c.l.bf16 %v2650_v41  ;;  %2719 = vst.msk [vmem:[%s4711_s21 + $0x24] sm:$0xf] %vm2709_vm0, %v3173_v7  ;;  %v2734_v25 = vunpack.c.l.bf16 %v2649_v49  ;;  %v2735_v29 = vunpack.c.h.bf16 %v2649_v49  ;;  %v2756_v60 = vadd.f32 %v2755_v8, %v2754_v46  ;;  %2724 = vst.msk [vmem:[%s4711_s21 + $0x38] sm:$0xf] %vm2709_vm0, %v3178_v11 }
 0x193   : > { %v2809_v51 = vadd.f32 %v2808_v20, %v2807_v0  ;;  %v3176_v4 = vpack.c.bf16 %v2641_v15, %v2641_v15  ;;  %v2644_v2 = vadd.f32 %v4696_v57, %v2622_v24  ;;  %v2737_v44 = vunpack.c.h.bf16 %v2650_v41 }
 0x194   : > { %v2757_v63 = vsel %vm1116_vm5, %v2734_v25, 0.0  ;;  %v2787_v30 = vmul.f32 %v2734_v25, %v2734_v25  ;;  %v2426_v33 = vadd.f32 %v2401_v16, %v2287_v54  ;;  %v2788_v58 = vmul.f32 %v2735_v29, %v2735_v29 }
 0x195   : > { %v2758_v3 = vadd.f32 %v2757_v63, %v2756_v60  ;;  %2722 = vst.msk [vmem:[%s4711_s21 + $0x30] sm:$0xf] %vm2709_vm0, %v3176_v4  ;;  %v2652_v22 = vpack.c.bf16 %v2644_v2, %v2643_v39  ;;  %v3179_v5 = vpack.c.bf16 %v2644_v2, %v2644_v2  ;;  %v2789_v52 = vmul.f32 %v2736_v61, %v2736_v61 }
 0x196   : > { %v2759_v19 = vsel %vm1116_vm5, %v2735_v29, 0.0  ;;  %v2810_v9 = vsel %vm1116_vm5, %v2787_v30, 0.0  ;;  %v2620_v50 = vadd.f32 %v2595_v37, %v2426_v33  ;;  %v2761_v12 = vsel %vm1116_vm5, %v2736_v61, 0.0 }
 0x197   : > { %v2760_v36 = vadd.f32 %v2759_v19, %v2758_v3  ;;  %v2811_v53 = vadd.f32 %v2810_v9, %v2809_v51  ;;  %2725 = vst.msk [vmem:[%s4711_s21 + $0x3c] sm:$0xf] %vm2709_vm0, %v3179_v5  ;;  %v2790_v42 = vmul.f32 %v2737_v44, %v2737_v44  ;;  %v2812_v14 = vsel %vm1116_vm5, %v2788_v58, 0.0 }
 0x198   : > { %v2642_v28 = vadd.f32 %v4696_v57, %v2620_v50  ;;  %v2763_v62 = vsel %vm1116_vm5, %v2737_v44, 0.0  ;;  %v2814_v26 = vsel %vm1116_vm5, %v2789_v52, 0.0  ;;  %v2740_v45 = vunpack.c.l.bf16 %v2652_v22 }
 0x199   : > { %v2762_v10 = vadd.f32 %v2761_v12, %v2760_v36  ;;  %v2813_v48 = vadd.f32 %v2812_v14, %v2811_v53  ;;  %v2816_v56 = vsel %vm1116_vm5, %v2790_v42, 0.0  ;;  %v2741_v34 = vunpack.c.h.bf16 %v2652_v22 }
 0x19a   : > { %v2651_v18 = vpack.c.bf16 %v2642_v28, %v2641_v15  ;;  %v3177_v38 = vpack.c.bf16 %v2642_v28, %v2642_v28  ;;  %v2793_v17 = vmul.f32 %v2740_v45, %v2740_v45  ;;  %v2769_v39 = vsel %vm1116_vm5, %v2740_v45, 0.0 }
 0x19b   : > { %v2815_v43 = vadd.f32 %v2814_v26, %v2813_v48  ;;  %v2764_v40 = vadd.f32 %v2763_v62, %v2762_v10  ;;  %v2794_v47 = vmul.f32 %v2741_v34, %v2741_v34  ;;  %v2771_v24 = vsel %vm1116_vm5, %v2741_v34, 0.0 }
 0x19c   : > { %2723 = vst.msk [vmem:[%s4711_s21 + $0x34] sm:$0xf] %vm2709_vm0, %v3177_v38  ;;  %v2738_v1 = vunpack.c.l.bf16 %v2651_v18  ;;  %v2739_v59 = vunpack.c.h.bf16 %v2651_v18  ;;  %v2822_v49 = vsel %vm1116_vm5, %v2793_v17, 0.0 }
 0x19d   : > { %v2817_v21 = vadd.f32 %v2816_v56, %v2815_v43  ;;  %v2824_v15 = vsel %vm1116_vm5, %v2794_v47, 0.0 }
 0x19e   : > { %v2765_v57 = vsel %vm1116_vm5, %v2738_v1, 0.0  ;;  %v2791_v31 = vmul.f32 %v2738_v1, %v2738_v1  ;;  %v2792_v27 = vmul.f32 %v2739_v59, %v2739_v59  ;;  %v2767_v41 = vsel %vm1116_vm5, %v2739_v59, 0.0 }
 0x19f   : > { %v2766_v35 = vadd.f32 %v2765_v57, %v2764_v40 }
 0x1a0   : > { %v2818_v55 = vsel %vm1116_vm5, %v2791_v31, 0.0  ;;  %v2820_v32 = vsel %vm1116_vm5, %v2792_v27, 0.0 }
 0x1a1   : > { %v2768_v6 = vadd.f32 %v2767_v41, %v2766_v35  ;;  %v2819_v23 = vadd.f32 %v2818_v55, %v2817_v21 }
 0x1a3   : > { %v2770_v46 = vadd.f32 %v2769_v39, %v2768_v6  ;;  %v2821_v13 = vadd.f32 %v2820_v32, %v2819_v23 }
 0x1a5   : > { %v2772_v7 = vadd.f32 %v2771_v24, %v2770_v46  ;;  %v2823_v11 = vadd.f32 %v2822_v49, %v2821_v13 }
 0x1a7   : > { %v2773_v54 = vrot.slane %v2772_v7, 4  ;;  %v2825_v8 = vadd.f32 %v2824_v15, %v2823_v11 }
 0x1a9   : > { %v2774_v20 = vadd.f32 %v2773_v54, %v2772_v7  ;;  %v2826_v0 = vrot.slane %v2825_v8, 4 }
 0x1ab   : > { %v2775_v16 = vrot.slane %v2774_v20, 2  ;;  %v2827_v61 = vadd.f32 %v2826_v0, %v2825_v8 }
 0x1ad   : > { %v2776_v25 = vadd.f32 %v2775_v16, %v2774_v20  ;;  %v2828_v29 = vrot.slane %v2827_v61, 2 }
 0x1af   : > { %v2777_v60 = vrot.slane %v2776_v25, 1  ;;  %v2829_v51 = vadd.f32 %v2828_v29, %v2827_v61 }
 0x1b1   : > { %v2830_v4 = vrot.slane %v2829_v51, 1  ;;  %v2778_v2 = vadd.f32 %v2777_v60, %v2776_v25  ;;  %2836 = sbr.rel (%p3159_p11) target bundleno = 440 (0x1b8), region = 52 }
 0x1b3   : > { %v2831_v37 = vadd.f32 %v2830_v4, %v2829_v51 }
 0x1b5   : > { %v2832_v44 = vsel %vm622_vm3, %v2778_v2, %v2831_v37 }
 0x1b6   : > { %vm2837_vm4 = vcmask 25600   ;;  %v3567_v63 = vmov 0.0  }
 0x1b7   : > { %2838 = vst.msk [vmem:[%s3675_s24] sm:$0x3] %vm2837_vm4, %v3567_v63 }
 0x1b8 PF: > { %vm2841_vm5 = vcmask 25600  }
 0x1be   : > { %v2839_v30 = vld [vmem:[%s3675_s24] sm:$0x3] }
 0x1bf   : > { %v2840_v33 = vadd.f32 %v2839_v30, %v2832_v44 }
 0x1c1   : > { %2842 = vst.msk [vmem:[%s3675_s24] sm:$0x3] %vm2841_vm5, %v2840_v33 }
 0x1c2 PF: > { %s19_s9 = sadd.s32 1, %s3563_s9   ;;  %s4951_s27 = smov %s3555_s29 }
 0x1c3   : > { %p16_p12 = scmp.ge.s32.totalorder %s19_s9, 6   ;;  %s4952_s28 = smov %s3559_s30 }
 0x1c4   : > { %s4953_s29 = smov %s4956_s10  ;;  %s4954_s30 = smov %s4960_s11 }
 0x1c5   :  { %18 = sbr.rel (!%p16_p12) target bundleno = 3 (0x3), region = 108 }

</bundles_post_ra>
